<compile_context>
chip_gen: v5e
topology: v5e:2x2
jax: 0.10.0
libtpu: 0.0.40
codegen_flags: <defaults>
</compile_context>

<pallas_src>
import math

import jax
import jax.numpy as jnp
from jax.experimental import pallas as pl
from jax.experimental.pallas import tpu as pltpu

SEQ_LEN = 8          # the undefined SEQ_LEN constant in the reference module
FEATURE = 4          # feature_size / d_model
NHEAD = 4
HEAD_DIM = FEATURE // NHEAD          # = 1
NUM_LAYERS = 6
FFN = 2048                           # nn.TransformerEncoderLayer default dim_feedforward
EPS = 1e-5                           # LayerNorm default eps


def _layer_norm(y, g, b):
    mu = jnp.mean(y, axis=-1, keepdims=True)
    yc = y - mu
    var = jnp.mean(yc * yc, axis=-1, keepdims=True)
    return yc * jax.lax.rsqrt(var + EPS) * g + b


def transam_kernel(x_ref, pe_ref, w_attn_ref, small_ref, bff1_ref, wff_ref,
                   head_ref, out_ref):
    S, E = SEQ_LEN, FEATURE
    scale = 1.0 / math.sqrt(HEAD_DIM)          # == 1.0 for HEAD_DIM == 1

    x = x_ref[...] + pe_ref[...]               # (S, E) residual stream, f32

    for l in range(NUM_LAYERS):                # fully unrolled, static layer index
        w_attn = w_attn_ref[l]                 # (E, 4E): [wqkv | wo]
        wqkv = w_attn[:, 0:3 * E]
        wo = w_attn[:, 3 * E:4 * E]

        small = small_ref[l:l + 1, :]          # (1, 9E)
        bqkv = small[:, 0:3 * E]
        bo = small[:, 3 * E:4 * E]
        ln1g = small[:, 4 * E:5 * E]
        ln1b = small[:, 5 * E:6 * E]
        bff2 = small[:, 6 * E:7 * E]
        ln2g = small[:, 7 * E:8 * E]
        ln2b = small[:, 8 * E:9 * E]

        # ------------- multi-head self-attention (post-norm layer) -----------
        qkv = (jnp.dot(x, wqkv, preferred_element_type=jnp.float32) + bqkv)  # (S, 3E)
        qkvT = qkv.T                                                         # (3E, S)
        qT = qkvT[0:E, :]                      # (NHEAD, S)   (HEAD_DIM == 1)
        if scale != 1.0:                       # trace-time check; no-op here
            qT = qT * scale
        kT = qkvT[E:2 * E, :]
        vT = qkvT[2 * E:3 * E, :]

        # HEAD_DIM == 1  ->  per-head scores are rank-1 outer products.
        # Slab layout (NHEAD, S, S): softmax axis == lane axis (cheap reduces,
        # 4 live vregs).  Normalize AFTER the value reduction (no p3 slab).
        s3 = qT[:, :, None] * kT[:, None, :]                           # (H, S, S)
        m3 = jnp.max(s3, axis=-1, keepdims=True)                       # (H, S, 1)
        e3 = jnp.exp(s3 - m3)
        d2 = jnp.sum(e3, axis=-1)                                      # (H, S)
        attn_un = jnp.sum(e3 * vT[:, None, :], axis=-1)                # (H, S)
        attn_t = attn_un * pl.reciprocal(d2, approx=True)              # (H, S)
        attn = attn_t.T                                                # (S, E)

        attn = jnp.dot(attn, wo, preferred_element_type=jnp.float32) + bo
        x = _layer_norm(x + attn, ln1g, ln1b)

        # ------------- feed-forward 4 -> 2048 -> 4 (ReLU), native bf16 MXU ----
        w1 = wff_ref[2 * E * l: 2 * E * l + E, :]            # (E, FFN) bf16
        w2t = wff_ref[2 * E * l + E: 2 * E * l + 2 * E, :]   # (E, FFN) bf16 (pre-T)
        h1 = (jnp.dot(x.astype(jnp.bfloat16), w1,
                      preferred_element_type=jnp.float32)
              + bff1_ref[l:l + 1, :])                        # (S, FFN) f32
        h1 = jnp.maximum(h1, 0.0)
        # A @ B^T pattern (contraction (1,1)) keeps the 2048 axis lane-dense on
        # the stored weight; Mosaic lowers this to a transposed-RHS MXU matmul.
        ff = jax.lax.dot_general(h1.astype(jnp.bfloat16), w2t,
                                 (((1,), (1,)), ((), ())),
                                 preferred_element_type=jnp.float32)   # (S, E)
        ff = ff + bff2
        x = _layer_norm(x + ff, ln2g, ln2b)

    # ------------- head: folded decoder Linear(4,1) + Linear(S,1) -------------
    # out = sum_{s,e} x[s,e] * head_w[s,e] + head_b   (one VPU mul + full reduce)
    head_w = head_ref[:, 0:E]                                          # (S, E)
    out_ref[...] = (jnp.sum(x * head_w, keepdims=True)
                    + head_ref[0:1, E:E + 1])                          # (1, 1)


def positional_encoding(seq_len, d_model):
    pos = jnp.arange(seq_len, dtype=jnp.float32)[:, None]
    div = jnp.exp(jnp.arange(0, d_model, 2, dtype=jnp.float32) *
                  (-math.log(10000.0) / d_model))
    pe = jnp.zeros((seq_len, d_model), jnp.float32)
    pe = pe.at[:, 0::2].set(jnp.sin(pos * div))
    pe = pe.at[:, 1::2].set(jnp.cos(pos * div))
    return pe


def init_params(key):
    L, E, F, S = NUM_LAYERS, FEATURE, FFN, SEQ_LEN
    ks = list(jax.random.split(key, 12))

    def unif(k, shape, bound, dtype=jnp.float32):
        return jax.random.uniform(k, shape, jnp.float32, -bound, bound).astype(dtype)

    be = 1.0 / math.sqrt(E)
    bf = 1.0 / math.sqrt(F)
    bs = 1.0 / math.sqrt(S)

    wqkv = unif(ks[0], (L, E, 3 * E), be)       # stored transposed: y = x @ wqkv
    wo = unif(ks[1], (L, E, E), be)
    w_attn = jnp.concatenate([wqkv, wo], axis=2)            # (L, E, 4E)

    bqkv = unif(ks[2], (L, 3 * E), be)
    bo = unif(ks[3], (L, E), be)
    ln1g = jnp.ones((L, E), jnp.float32)
    ln1b = jnp.zeros((L, E), jnp.float32)
    bff2 = unif(ks[4], (L, E), bf)
    ln2g = jnp.ones((L, E), jnp.float32)
    ln2b = jnp.zeros((L, E), jnp.float32)
    small = jnp.concatenate([bqkv, bo, ln1g, ln1b, bff2, ln2g, ln2b], axis=1)  # (L, 9E)

    bff1 = unif(ks[5], (L, F), be)                           # (L, FFN) f32

    wff1 = unif(ks[6], (L, E, F), be, jnp.bfloat16)          # (E, FFN) per layer
    wff2t = unif(ks[7], (L, E, F), bf, jnp.bfloat16)         # pre-transposed (E, FFN)
    # interleave per layer: rows [8l:8l+4] = wff1[l], rows [8l+4:8l+8] = wff2t[l]
    wff = jnp.concatenate([wff1, wff2t], axis=1).reshape(L * 2 * E, F)  # (48, 2048)

    dec_w = unif(ks[8], (E, 1), 0.1)            # init_weights(): uniform(-0.1, 0.1)
    dec_b = jnp.zeros((1, 1), jnp.float32)      # init_weights(): zero
    lin1_w = unif(ks[9], (1, S), bs)
    lin1_b = unif(ks[10], (1, 1), bs)

    return dict(w_attn=w_attn, small=small, bff1=bff1, wff=wff,
                dec_w=dec_w, dec_b=dec_b, lin1_w=lin1_w, lin1_b=lin1_b)


def transam_forward(src, params):
    S, B, E = src.shape
    assert S == SEQ_LEN and B == 1 and E == FEATURE
    x2d = src[:, 0, :].astype(jnp.float32)
    pe = positional_encoding(S, E)

    # Fold decoder Linear(E,1) + linear1 Linear(S,1) into a single (S, E) weight
    # and a scalar bias:  out = sum(x * head_w) + head_b.
    head_w = params["lin1_w"].reshape(S, 1) * params["dec_w"].reshape(1, E)     # (S, E)
    head_b = (params["dec_b"][0, 0] * jnp.sum(params["lin1_w"])
              + params["lin1_b"][0, 0])
    head = jnp.concatenate(
        [head_w, jnp.full((S, 1), head_b, jnp.float32)], axis=1)                # (S, E+1)

    inputs = [x2d, pe, params["w_attn"], params["small"],
              params["bff1"], params["wff"], head]

    out = pl.pallas_call(
        transam_kernel,
        out_shape=jax.ShapeDtypeStruct((1, 1), jnp.float32),
        in_specs=[pl.BlockSpec(memory_space=pltpu.MemorySpace.VMEM)
                  for _ in inputs],
        out_specs=pl.BlockSpec(memory_space=pltpu.MemorySpace.VMEM),
    )(*inputs)

    return out.reshape(1)     # matches torch: linear1(np.squeeze(decoder_out)) -> (1,)


# ----------------------------- pure-JAX reference ------------------------------
def transam_reference(src, params):
    E = FEATURE
    x = src[:, 0, :].astype(jnp.float32) + positional_encoding(SEQ_LEN, FEATURE)

    def ln(y, g, b):
        mu = jnp.mean(y, -1, keepdims=True)
        var = jnp.mean((y - mu) ** 2, -1, keepdims=True)
        return (y - mu) * jax.lax.rsqrt(var + EPS) * g + b

    for l in range(NUM_LAYERS):
        w_attn = params["w_attn"][l]
        wqkv, wo = w_attn[:, :3 * E], w_attn[:, 3 * E:]
        small = params["small"][l]
        bqkv = small[0:3 * E]
        bo = small[3 * E:4 * E]
        ln1g, ln1b = small[4 * E:5 * E], small[5 * E:6 * E]
        bff2 = small[6 * E:7 * E]
        ln2g, ln2b = small[7 * E:8 * E], small[8 * E:9 * E]

        qkv = x @ wqkv + bqkv
        q, k, v = qkv[:, :E], qkv[:, E:2 * E], qkv[:, 2 * E:]
        heads = []
        for h in range(NHEAD):
            sl = slice(h * HEAD_DIM, (h + 1) * HEAD_DIM)
            s = (q[:, sl] / math.sqrt(HEAD_DIM)) @ k[:, sl].T
            p = jax.nn.softmax(s, axis=-1)
            heads.append(p @ v[:, sl])
        attn = jnp.concatenate(heads, axis=1) @ wo + bo
        x = ln(x + attn, ln1g, ln1b)

        w1 = params["wff"][8 * l:8 * l + 4]            # (E, FFN) bf16
        w2t = params["wff"][8 * l + 4:8 * l + 8]       # (E, FFN) bf16
        h1 = jnp.dot(x.astype(jnp.bfloat16), w1,
                     preferred_element_type=jnp.float32) + params["bff1"][l]
        h1 = jnp.maximum(h1, 0.0)
        ff = jnp.dot(h1.astype(jnp.bfloat16), w2t.T,
                     preferred_element_type=jnp.float32) + bff2
        x = ln(x + ff, ln2g, ln2b)

    dec = x @ params["dec_w"] + params["dec_b"]            # (S, 1)
    return (params["lin1_w"] @ dec + params["lin1_b"]).reshape(1)


if __name__ == "__main__":
    key = jax.random.PRNGKey(0)
    pkey, xkey = jax.random.split(key)
    params = init_params(pkey)
    src = jax.random.normal(xkey, (SEQ_LEN, 1, FEATURE), jnp.float32)

    out = transam_forward(src, params)
    jax.block_until_ready(out)

    ref = transam_reference(src, params)
    assert out.shape == (1,)
    # tolerance covers the approx EUP reciprocal in softmax and bf16 MXU operands
    assert jnp.allclose(out, ref, rtol=3e-3, atol=3e-3), (out, ref)

    print("KERNEL_OK")
</pallas_src>

<mosaic_0001>
module attributes {stable_mosaic.version = 11 : i64} {
  func.func @transam_kernel(%arg0: memref<8x4xf32, #tpu.memory_space<vmem>>, %arg1: memref<8x4xf32, #tpu.memory_space<vmem>>, %arg2: memref<6x4x16xf32, #tpu.memory_space<vmem>>, %arg3: memref<6x36xf32, #tpu.memory_space<vmem>>, %arg4: memref<6x2048xf32, #tpu.memory_space<vmem>>, %arg5: memref<48x2048xbf16, #tpu.memory_space<vmem>>, %arg6: memref<8x5xf32, #tpu.memory_space<vmem>>, %arg7: memref<1x1xf32, #tpu.memory_space<vmem>>) attributes {dimension_semantics = [], scalar_prefetch = 0 : i64, scratch_operands = 0 : i64, tpu.core_type = #tpu.core_type<tc>} {
    %c0 = arith.constant 0 : index
    %c0_0 = arith.constant 0 : index
    %0 = vector.load %arg0[%c0, %c0_0] : memref<8x4xf32, #tpu.memory_space<vmem>>, vector<8x4xf32>
    %c0_1 = arith.constant 0 : index
    %c0_2 = arith.constant 0 : index
    %1 = vector.load %arg1[%c0_1, %c0_2] : memref<8x4xf32, #tpu.memory_space<vmem>>, vector<8x4xf32>
    %2 = arith.addf %0, %1 : vector<8x4xf32>
    %c0_3 = arith.constant 0 : index
    %c0_4 = arith.constant 0 : index
    %c0_5 = arith.constant 0 : index
    %3 = vector.load %arg2[%c0_3, %c0_4, %c0_5] : memref<6x4x16xf32, #tpu.memory_space<vmem>>, vector<1x4x16xf32>
    %4 = vector.shape_cast %3 : vector<1x4x16xf32> to vector<4x16xf32>
    %5 = vector.extract_strided_slice %4 {offsets = [0, 0], sizes = [4, 12], strides = [1, 1]} : vector<4x16xf32> to vector<4x12xf32>
    %6 = vector.extract_strided_slice %4 {offsets = [0, 12], sizes = [4, 4], strides = [1, 1]} : vector<4x16xf32> to vector<4x4xf32>
    %c0_6 = arith.constant 0 : index
    %c0_7 = arith.constant 0 : index
    %7 = vector.load %arg3[%c0_6, %c0_7] : memref<6x36xf32, #tpu.memory_space<vmem>>, vector<1x36xf32>
    %8 = vector.extract_strided_slice %7 {offsets = [0, 0], sizes = [1, 12], strides = [1, 1]} : vector<1x36xf32> to vector<1x12xf32>
    %9 = vector.extract_strided_slice %7 {offsets = [0, 12], sizes = [1, 4], strides = [1, 1]} : vector<1x36xf32> to vector<1x4xf32>
    %10 = vector.extract_strided_slice %7 {offsets = [0, 16], sizes = [1, 4], strides = [1, 1]} : vector<1x36xf32> to vector<1x4xf32>
    %11 = vector.extract_strided_slice %7 {offsets = [0, 20], sizes = [1, 4], strides = [1, 1]} : vector<1x36xf32> to vector<1x4xf32>
    %12 = vector.extract_strided_slice %7 {offsets = [0, 24], sizes = [1, 4], strides = [1, 1]} : vector<1x36xf32> to vector<1x4xf32>
    %13 = vector.extract_strided_slice %7 {offsets = [0, 28], sizes = [1, 4], strides = [1, 1]} : vector<1x36xf32> to vector<1x4xf32>
    %14 = vector.extract_strided_slice %7 {offsets = [0, 32], sizes = [1, 4], strides = [1, 1]} : vector<1x36xf32> to vector<1x4xf32>
    %cst = arith.constant dense<0.000000e+00> : vector<8x12xf32>
    %15 = tpu.matmul %2, %5, %cst {dimension_numbers = #tpu.dot_dimension_numbers<[1], [0], [0], [1], [0, 0, 1, 1], [], []>} : vector<8x4xf32>, vector<4x12xf32>, vector<8x12xf32> -> vector<8x12xf32>
    %16 = vector.broadcast %8 : vector<1x12xf32> to vector<8x12xf32>
    %17 = arith.addf %15, %16 : vector<8x12xf32>
    %18 = tpu.transpose %17, [1, 0] : vector<8x12xf32> -> vector<12x8xf32>
    %19 = vector.extract_strided_slice %18 {offsets = [0, 0], sizes = [4, 8], strides = [1, 1]} : vector<12x8xf32> to vector<4x8xf32>
    %20 = vector.extract_strided_slice %18 {offsets = [4, 0], sizes = [4, 8], strides = [1, 1]} : vector<12x8xf32> to vector<4x8xf32>
    %21 = vector.extract_strided_slice %18 {offsets = [8, 0], sizes = [4, 8], strides = [1, 1]} : vector<12x8xf32> to vector<4x8xf32>
    %22 = vector.shape_cast %19 : vector<4x8xf32> to vector<4x8x1xf32>
    %23 = vector.shape_cast %20 : vector<4x8xf32> to vector<4x1x8xf32>
    %24 = vector.broadcast %22 : vector<4x8x1xf32> to vector<4x8x8xf32>
    %25 = vector.broadcast %23 : vector<4x1x8xf32> to vector<4x8x8xf32>
    %26 = arith.mulf %24, %25 : vector<4x8x8xf32>
    %cst_8 = arith.constant dense<0xFF800000> : vector<4x8xf32>
    %27 = vector.multi_reduction <maximumf>, %26, %cst_8 [2] : vector<4x8x8xf32> to vector<4x8xf32>
    %28 = vector.shape_cast %27 : vector<4x8xf32> to vector<4x8x1xf32>
    %29 = vector.broadcast %28 : vector<4x8x1xf32> to vector<4x8x8xf32>
    %30 = arith.subf %26, %29 : vector<4x8x8xf32>
    %31 = math.exp %30 : vector<4x8x8xf32>
    %cst_9 = arith.constant dense<0.000000e+00> : vector<4x8xf32>
    %32 = vector.multi_reduction <add>, %31, %cst_9 [2] : vector<4x8x8xf32> to vector<4x8xf32>
    %33 = vector.shape_cast %21 : vector<4x8xf32> to vector<4x1x8xf32>
    %34 = vector.broadcast %33 : vector<4x1x8xf32> to vector<4x8x8xf32>
    %35 = arith.mulf %31, %34 : vector<4x8x8xf32>
    %cst_10 = arith.constant dense<0.000000e+00> : vector<4x8xf32>
    %36 = vector.multi_reduction <add>, %35, %cst_10 [2] : vector<4x8x8xf32> to vector<4x8xf32>
    %37 = tpu.reciprocal %32 {approx = true} : vector<4x8xf32> -> vector<4x8xf32>
    %38 = arith.mulf %36, %37 : vector<4x8xf32>
    %39 = tpu.transpose %38, [1, 0] : vector<4x8xf32> -> vector<8x4xf32>
    %cst_11 = arith.constant dense<0.000000e+00> : vector<8x4xf32>
    %40 = tpu.matmul %39, %6, %cst_11 {dimension_numbers = #tpu.dot_dimension_numbers<[1], [0], [0], [1], [0, 0, 1, 1], [], []>} : vector<8x4xf32>, vector<4x4xf32>, vector<8x4xf32> -> vector<8x4xf32>
    %41 = vector.broadcast %9 : vector<1x4xf32> to vector<8x4xf32>
    %42 = arith.addf %40, %41 : vector<8x4xf32>
    %43 = arith.addf %2, %42 : vector<8x4xf32>
    %cst_12 = arith.constant dense<0.000000e+00> : vector<8xf32>
    %44 = vector.multi_reduction <add>, %43, %cst_12 [1] : vector<8x4xf32> to vector<8xf32>
    %45 = vector.shape_cast %44 : vector<8xf32> to vector<8x1xf32>
    %cst_13 = arith.constant 4.000000e+00 : f32
    %46 = vector.broadcast %cst_13 : f32 to vector<8x1xf32>
    %47 = arith.divf %45, %46 : vector<8x1xf32>
    %48 = vector.broadcast %47 : vector<8x1xf32> to vector<8x4xf32>
    %49 = arith.subf %43, %48 : vector<8x4xf32>
    %50 = arith.mulf %49, %49 : vector<8x4xf32>
    %cst_14 = arith.constant dense<0.000000e+00> : vector<8xf32>
    %51 = vector.multi_reduction <add>, %50, %cst_14 [1] : vector<8x4xf32> to vector<8xf32>
    %52 = vector.shape_cast %51 : vector<8xf32> to vector<8x1xf32>
    %cst_15 = arith.constant 4.000000e+00 : f32
    %53 = vector.broadcast %cst_15 : f32 to vector<8x1xf32>
    %54 = arith.divf %52, %53 : vector<8x1xf32>
    %cst_16 = arith.constant 9.99999974E-6 : f32
    %55 = vector.broadcast %cst_16 : f32 to vector<8x1xf32>
    %56 = arith.addf %54, %55 : vector<8x1xf32>
    %57 = math.rsqrt %56 : vector<8x1xf32>
    %58 = vector.broadcast %57 : vector<8x1xf32> to vector<8x4xf32>
    %59 = arith.mulf %49, %58 : vector<8x4xf32>
    %60 = vector.broadcast %10 : vector<1x4xf32> to vector<8x4xf32>
    %61 = arith.mulf %59, %60 : vector<8x4xf32>
    %62 = vector.broadcast %11 : vector<1x4xf32> to vector<8x4xf32>
    %63 = arith.addf %61, %62 : vector<8x4xf32>
    %c0_17 = arith.constant 0 : index
    %c0_18 = arith.constant 0 : index
    %64 = vector.load %arg5[%c0_17, %c0_18] : memref<48x2048xbf16, #tpu.memory_space<vmem>>, vector<4x2048xbf16>
    %c4 = arith.constant 4 : index
    %c0_19 = arith.constant 0 : index
    %65 = vector.load %arg5[%c4, %c0_19] : memref<48x2048xbf16, #tpu.memory_space<vmem>>, vector<4x2048xbf16>
    %66 = arith.truncf %63 : vector<8x4xf32> to vector<8x4xbf16>
    %cst_20 = arith.constant dense<0.000000e+00> : vector<8x2048xf32>
    %67 = tpu.matmul %66, %64, %cst_20 {dimension_numbers = #tpu.dot_dimension_numbers<[1], [0], [0], [1], [0, 0, 1, 1], [], []>} : vector<8x4xbf16>, vector<4x2048xbf16>, vector<8x2048xf32> -> vector<8x2048xf32>
    %c0_21 = arith.constant 0 : index
    %c0_22 = arith.constant 0 : index
    %68 = vector.load %arg4[%c0_21, %c0_22] : memref<6x2048xf32, #tpu.memory_space<vmem>>, vector<1x2048xf32>
    %69 = vector.broadcast %68 : vector<1x2048xf32> to vector<8x2048xf32>
    %70 = arith.addf %67, %69 : vector<8x2048xf32>
    %cst_23 = arith.constant 0.000000e+00 : f32
    %71 = vector.broadcast %cst_23 : f32 to vector<8x2048xf32>
    %72 = arith.maximumf %70, %71 : vector<8x2048xf32>
    %73 = arith.truncf %72 : vector<8x2048xf32> to vector<8x2048xbf16>
    %cst_24 = arith.constant dense<0.000000e+00> : vector<8x4xf32>
    %74 = tpu.matmul %73, %65, %cst_24 {dimension_numbers = #tpu.dot_dimension_numbers<[1], [1], [0], [0], [0, 0, 1, 0], [], []>} : vector<8x2048xbf16>, vector<4x2048xbf16>, vector<8x4xf32> -> vector<8x4xf32>
    %75 = vector.broadcast %12 : vector<1x4xf32> to vector<8x4xf32>
    %76 = arith.addf %74, %75 : vector<8x4xf32>
    %77 = arith.addf %63, %76 : vector<8x4xf32>
    %cst_25 = arith.constant dense<0.000000e+00> : vector<8xf32>
    %78 = vector.multi_reduction <add>, %77, %cst_25 [1] : vector<8x4xf32> to vector<8xf32>
    %79 = vector.shape_cast %78 : vector<8xf32> to vector<8x1xf32>
    %cst_26 = arith.constant 4.000000e+00 : f32
    %80 = vector.broadcast %cst_26 : f32 to vector<8x1xf32>
    %81 = arith.divf %79, %80 : vector<8x1xf32>
    %82 = vector.broadcast %81 : vector<8x1xf32> to vector<8x4xf32>
    %83 = arith.subf %77, %82 : vector<8x4xf32>
    %84 = arith.mulf %83, %83 : vector<8x4xf32>
    %cst_27 = arith.constant dense<0.000000e+00> : vector<8xf32>
    %85 = vector.multi_reduction <add>, %84, %cst_27 [1] : vector<8x4xf32> to vector<8xf32>
    %86 = vector.shape_cast %85 : vector<8xf32> to vector<8x1xf32>
    %cst_28 = arith.constant 4.000000e+00 : f32
    %87 = vector.broadcast %cst_28 : f32 to vector<8x1xf32>
    %88 = arith.divf %86, %87 : vector<8x1xf32>
    %cst_29 = arith.constant 9.99999974E-6 : f32
    %89 = vector.broadcast %cst_29 : f32 to vector<8x1xf32>
    %90 = arith.addf %88, %89 : vector<8x1xf32>
    %91 = math.rsqrt %90 : vector<8x1xf32>
    %92 = vector.broadcast %91 : vector<8x1xf32> to vector<8x4xf32>
    %93 = arith.mulf %83, %92 : vector<8x4xf32>
    %94 = vector.broadcast %13 : vector<1x4xf32> to vector<8x4xf32>
    %95 = arith.mulf %93, %94 : vector<8x4xf32>
    %96 = vector.broadcast %14 : vector<1x4xf32> to vector<8x4xf32>
    %97 = arith.addf %95, %96 : vector<8x4xf32>
    %c1 = arith.constant 1 : index
    %c0_30 = arith.constant 0 : index
    %c0_31 = arith.constant 0 : index
    %98 = vector.load %arg2[%c1, %c0_30, %c0_31] : memref<6x4x16xf32, #tpu.memory_space<vmem>>, vector<1x4x16xf32>
    %99 = vector.shape_cast %98 : vector<1x4x16xf32> to vector<4x16xf32>
    %100 = vector.extract_strided_slice %99 {offsets = [0, 0], sizes = [4, 12], strides = [1, 1]} : vector<4x16xf32> to vector<4x12xf32>
    %101 = vector.extract_strided_slice %99 {offsets = [0, 12], sizes = [4, 4], strides = [1, 1]} : vector<4x16xf32> to vector<4x4xf32>
    %c1_32 = arith.constant 1 : index
    %c0_33 = arith.constant 0 : index
    %102 = vector.load %arg3[%c1_32, %c0_33] : memref<6x36xf32, #tpu.memory_space<vmem>>, vector<1x36xf32>
    %103 = vector.extract_strided_slice %102 {offsets = [0, 0], sizes = [1, 12], strides = [1, 1]} : vector<1x36xf32> to vector<1x12xf32>
    %104 = vector.extract_strided_slice %102 {offsets = [0, 12], sizes = [1, 4], strides = [1, 1]} : vector<1x36xf32> to vector<1x4xf32>
    %105 = vector.extract_strided_slice %102 {offsets = [0, 16], sizes = [1, 4], strides = [1, 1]} : vector<1x36xf32> to vector<1x4xf32>
    %106 = vector.extract_strided_slice %102 {offsets = [0, 20], sizes = [1, 4], strides = [1, 1]} : vector<1x36xf32> to vector<1x4xf32>
    %107 = vector.extract_strided_slice %102 {offsets = [0, 24], sizes = [1, 4], strides = [1, 1]} : vector<1x36xf32> to vector<1x4xf32>
    %108 = vector.extract_strided_slice %102 {offsets = [0, 28], sizes = [1, 4], strides = [1, 1]} : vector<1x36xf32> to vector<1x4xf32>
    %109 = vector.extract_strided_slice %102 {offsets = [0, 32], sizes = [1, 4], strides = [1, 1]} : vector<1x36xf32> to vector<1x4xf32>
    %cst_34 = arith.constant dense<0.000000e+00> : vector<8x12xf32>
    %110 = tpu.matmul %97, %100, %cst_34 {dimension_numbers = #tpu.dot_dimension_numbers<[1], [0], [0], [1], [0, 0, 1, 1], [], []>} : vector<8x4xf32>, vector<4x12xf32>, vector<8x12xf32> -> vector<8x12xf32>
    %111 = vector.broadcast %103 : vector<1x12xf32> to vector<8x12xf32>
    %112 = arith.addf %110, %111 : vector<8x12xf32>
    %113 = tpu.transpose %112, [1, 0] : vector<8x12xf32> -> vector<12x8xf32>
    %114 = vector.extract_strided_slice %113 {offsets = [0, 0], sizes = [4, 8], strides = [1, 1]} : vector<12x8xf32> to vector<4x8xf32>
    %115 = vector.extract_strided_slice %113 {offsets = [4, 0], sizes = [4, 8], strides = [1, 1]} : vector<12x8xf32> to vector<4x8xf32>
    %116 = vector.extract_strided_slice %113 {offsets = [8, 0], sizes = [4, 8], strides = [1, 1]} : vector<12x8xf32> to vector<4x8xf32>
    %117 = vector.shape_cast %114 : vector<4x8xf32> to vector<4x8x1xf32>
    %118 = vector.shape_cast %115 : vector<4x8xf32> to vector<4x1x8xf32>
    %119 = vector.broadcast %117 : vector<4x8x1xf32> to vector<4x8x8xf32>
    %120 = vector.broadcast %118 : vector<4x1x8xf32> to vector<4x8x8xf32>
    %121 = arith.mulf %119, %120 : vector<4x8x8xf32>
    %cst_35 = arith.constant dense<0xFF800000> : vector<4x8xf32>
    %122 = vector.multi_reduction <maximumf>, %121, %cst_35 [2] : vector<4x8x8xf32> to vector<4x8xf32>
    %123 = vector.shape_cast %122 : vector<4x8xf32> to vector<4x8x1xf32>
    %124 = vector.broadcast %123 : vector<4x8x1xf32> to vector<4x8x8xf32>
    %125 = arith.subf %121, %124 : vector<4x8x8xf32>
    %126 = math.exp %125 : vector<4x8x8xf32>
    %cst_36 = arith.constant dense<0.000000e+00> : vector<4x8xf32>
    %127 = vector.multi_reduction <add>, %126, %cst_36 [2] : vector<4x8x8xf32> to vector<4x8xf32>
    %128 = vector.shape_cast %116 : vector<4x8xf32> to vector<4x1x8xf32>
    %129 = vector.broadcast %128 : vector<4x1x8xf32> to vector<4x8x8xf32>
    %130 = arith.mulf %126, %129 : vector<4x8x8xf32>
    %cst_37 = arith.constant dense<0.000000e+00> : vector<4x8xf32>
    %131 = vector.multi_reduction <add>, %130, %cst_37 [2] : vector<4x8x8xf32> to vector<4x8xf32>
    %132 = tpu.reciprocal %127 {approx = true} : vector<4x8xf32> -> vector<4x8xf32>
    %133 = arith.mulf %131, %132 : vector<4x8xf32>
    %134 = tpu.transpose %133, [1, 0] : vector<4x8xf32> -> vector<8x4xf32>
    %cst_38 = arith.constant dense<0.000000e+00> : vector<8x4xf32>
    %135 = tpu.matmul %134, %101, %cst_38 {dimension_numbers = #tpu.dot_dimension_numbers<[1], [0], [0], [1], [0, 0, 1, 1], [], []>} : vector<8x4xf32>, vector<4x4xf32>, vector<8x4xf32> -> vector<8x4xf32>
    %136 = vector.broadcast %104 : vector<1x4xf32> to vector<8x4xf32>
    %137 = arith.addf %135, %136 : vector<8x4xf32>
    %138 = arith.addf %97, %137 : vector<8x4xf32>
    %cst_39 = arith.constant dense<0.000000e+00> : vector<8xf32>
    %139 = vector.multi_reduction <add>, %138, %cst_39 [1] : vector<8x4xf32> to vector<8xf32>
    %140 = vector.shape_cast %139 : vector<8xf32> to vector<8x1xf32>
    %cst_40 = arith.constant 4.000000e+00 : f32
    %141 = vector.broadcast %cst_40 : f32 to vector<8x1xf32>
    %142 = arith.divf %140, %141 : vector<8x1xf32>
    %143 = vector.broadcast %142 : vector<8x1xf32> to vector<8x4xf32>
    %144 = arith.subf %138, %143 : vector<8x4xf32>
    %145 = arith.mulf %144, %144 : vector<8x4xf32>
    %cst_41 = arith.constant dense<0.000000e+00> : vector<8xf32>
    %146 = vector.multi_reduction <add>, %145, %cst_41 [1] : vector<8x4xf32> to vector<8xf32>
    %147 = vector.shape_cast %146 : vector<8xf32> to vector<8x1xf32>
    %cst_42 = arith.constant 4.000000e+00 : f32
    %148 = vector.broadcast %cst_42 : f32 to vector<8x1xf32>
    %149 = arith.divf %147, %148 : vector<8x1xf32>
    %cst_43 = arith.constant 9.99999974E-6 : f32
    %150 = vector.broadcast %cst_43 : f32 to vector<8x1xf32>
    %151 = arith.addf %149, %150 : vector<8x1xf32>
    %152 = math.rsqrt %151 : vector<8x1xf32>
    %153 = vector.broadcast %152 : vector<8x1xf32> to vector<8x4xf32>
    %154 = arith.mulf %144, %153 : vector<8x4xf32>
    %155 = vector.broadcast %105 : vector<1x4xf32> to vector<8x4xf32>
    %156 = arith.mulf %154, %155 : vector<8x4xf32>
    %157 = vector.broadcast %106 : vector<1x4xf32> to vector<8x4xf32>
    %158 = arith.addf %156, %157 : vector<8x4xf32>
    %c8 = arith.constant 8 : index
    %c0_44 = arith.constant 0 : index
    %159 = vector.load %arg5[%c8, %c0_44] : memref<48x2048xbf16, #tpu.memory_space<vmem>>, vector<4x2048xbf16>
    %c12 = arith.constant 12 : index
    %c0_45 = arith.constant 0 : index
    %160 = vector.load %arg5[%c12, %c0_45] : memref<48x2048xbf16, #tpu.memory_space<vmem>>, vector<4x2048xbf16>
    %161 = arith.truncf %158 : vector<8x4xf32> to vector<8x4xbf16>
    %cst_46 = arith.constant dense<0.000000e+00> : vector<8x2048xf32>
    %162 = tpu.matmul %161, %159, %cst_46 {dimension_numbers = #tpu.dot_dimension_numbers<[1], [0], [0], [1], [0, 0, 1, 1], [], []>} : vector<8x4xbf16>, vector<4x2048xbf16>, vector<8x2048xf32> -> vector<8x2048xf32>
    %c1_47 = arith.constant 1 : index
    %c0_48 = arith.constant 0 : index
    %163 = vector.load %arg4[%c1_47, %c0_48] : memref<6x2048xf32, #tpu.memory_space<vmem>>, vector<1x2048xf32>
    %164 = vector.broadcast %163 : vector<1x2048xf32> to vector<8x2048xf32>
    %165 = arith.addf %162, %164 : vector<8x2048xf32>
    %cst_49 = arith.constant 0.000000e+00 : f32
    %166 = vector.broadcast %cst_49 : f32 to vector<8x2048xf32>
    %167 = arith.maximumf %165, %166 : vector<8x2048xf32>
    %168 = arith.truncf %167 : vector<8x2048xf32> to vector<8x2048xbf16>
    %cst_50 = arith.constant dense<0.000000e+00> : vector<8x4xf32>
    %169 = tpu.matmul %168, %160, %cst_50 {dimension_numbers = #tpu.dot_dimension_numbers<[1], [1], [0], [0], [0, 0, 1, 0], [], []>} : vector<8x2048xbf16>, vector<4x2048xbf16>, vector<8x4xf32> -> vector<8x4xf32>
    %170 = vector.broadcast %107 : vector<1x4xf32> to vector<8x4xf32>
    %171 = arith.addf %169, %170 : vector<8x4xf32>
    %172 = arith.addf %158, %171 : vector<8x4xf32>
    %cst_51 = arith.constant dense<0.000000e+00> : vector<8xf32>
    %173 = vector.multi_reduction <add>, %172, %cst_51 [1] : vector<8x4xf32> to vector<8xf32>
    %174 = vector.shape_cast %173 : vector<8xf32> to vector<8x1xf32>
    %cst_52 = arith.constant 4.000000e+00 : f32
    %175 = vector.broadcast %cst_52 : f32 to vector<8x1xf32>
    %176 = arith.divf %174, %175 : vector<8x1xf32>
    %177 = vector.broadcast %176 : vector<8x1xf32> to vector<8x4xf32>
    %178 = arith.subf %172, %177 : vector<8x4xf32>
    %179 = arith.mulf %178, %178 : vector<8x4xf32>
    %cst_53 = arith.constant dense<0.000000e+00> : vector<8xf32>
    %180 = vector.multi_reduction <add>, %179, %cst_53 [1] : vector<8x4xf32> to vector<8xf32>
    %181 = vector.shape_cast %180 : vector<8xf32> to vector<8x1xf32>
    %cst_54 = arith.constant 4.000000e+00 : f32
    %182 = vector.broadcast %cst_54 : f32 to vector<8x1xf32>
    %183 = arith.divf %181, %182 : vector<8x1xf32>
    %cst_55 = arith.constant 9.99999974E-6 : f32
    %184 = vector.broadcast %cst_55 : f32 to vector<8x1xf32>
    %185 = arith.addf %183, %184 : vector<8x1xf32>
    %186 = math.rsqrt %185 : vector<8x1xf32>
    %187 = vector.broadcast %186 : vector<8x1xf32> to vector<8x4xf32>
    %188 = arith.mulf %178, %187 : vector<8x4xf32>
    %189 = vector.broadcast %108 : vector<1x4xf32> to vector<8x4xf32>
    %190 = arith.mulf %188, %189 : vector<8x4xf32>
    %191 = vector.broadcast %109 : vector<1x4xf32> to vector<8x4xf32>
    %192 = arith.addf %190, %191 : vector<8x4xf32>
    %c2 = arith.constant 2 : index
    %c0_56 = arith.constant 0 : index
    %c0_57 = arith.constant 0 : index
    %193 = vector.load %arg2[%c2, %c0_56, %c0_57] : memref<6x4x16xf32, #tpu.memory_space<vmem>>, vector<1x4x16xf32>
    %194 = vector.shape_cast %193 : vector<1x4x16xf32> to vector<4x16xf32>
    %195 = vector.extract_strided_slice %194 {offsets = [0, 0], sizes = [4, 12], strides = [1, 1]} : vector<4x16xf32> to vector<4x12xf32>
    %196 = vector.extract_strided_slice %194 {offsets = [0, 12], sizes = [4, 4], strides = [1, 1]} : vector<4x16xf32> to vector<4x4xf32>
    %c2_58 = arith.constant 2 : index
    %c0_59 = arith.constant 0 : index
    %197 = vector.load %arg3[%c2_58, %c0_59] : memref<6x36xf32, #tpu.memory_space<vmem>>, vector<1x36xf32>
    %198 = vector.extract_strided_slice %197 {offsets = [0, 0], sizes = [1, 12], strides = [1, 1]} : vector<1x36xf32> to vector<1x12xf32>
    %199 = vector.extract_strided_slice %197 {offsets = [0, 12], sizes = [1, 4], strides = [1, 1]} : vector<1x36xf32> to vector<1x4xf32>
    %200 = vector.extract_strided_slice %197 {offsets = [0, 16], sizes = [1, 4], strides = [1, 1]} : vector<1x36xf32> to vector<1x4xf32>
    %201 = vector.extract_strided_slice %197 {offsets = [0, 20], sizes = [1, 4], strides = [1, 1]} : vector<1x36xf32> to vector<1x4xf32>
    %202 = vector.extract_strided_slice %197 {offsets = [0, 24], sizes = [1, 4], strides = [1, 1]} : vector<1x36xf32> to vector<1x4xf32>
    %203 = vector.extract_strided_slice %197 {offsets = [0, 28], sizes = [1, 4], strides = [1, 1]} : vector<1x36xf32> to vector<1x4xf32>
    %204 = vector.extract_strided_slice %197 {offsets = [0, 32], sizes = [1, 4], strides = [1, 1]} : vector<1x36xf32> to vector<1x4xf32>
    %cst_60 = arith.constant dense<0.000000e+00> : vector<8x12xf32>
    %205 = tpu.matmul %192, %195, %cst_60 {dimension_numbers = #tpu.dot_dimension_numbers<[1], [0], [0], [1], [0, 0, 1, 1], [], []>} : vector<8x4xf32>, vector<4x12xf32>, vector<8x12xf32> -> vector<8x12xf32>
    %206 = vector.broadcast %198 : vector<1x12xf32> to vector<8x12xf32>
    %207 = arith.addf %205, %206 : vector<8x12xf32>
    %208 = tpu.transpose %207, [1, 0] : vector<8x12xf32> -> vector<12x8xf32>
    %209 = vector.extract_strided_slice %208 {offsets = [0, 0], sizes = [4, 8], strides = [1, 1]} : vector<12x8xf32> to vector<4x8xf32>
    %210 = vector.extract_strided_slice %208 {offsets = [4, 0], sizes = [4, 8], strides = [1, 1]} : vector<12x8xf32> to vector<4x8xf32>
    %211 = vector.extract_strided_slice %208 {offsets = [8, 0], sizes = [4, 8], strides = [1, 1]} : vector<12x8xf32> to vector<4x8xf32>
    %212 = vector.shape_cast %209 : vector<4x8xf32> to vector<4x8x1xf32>
    %213 = vector.shape_cast %210 : vector<4x8xf32> to vector<4x1x8xf32>
    %214 = vector.broadcast %212 : vector<4x8x1xf32> to vector<4x8x8xf32>
    %215 = vector.broadcast %213 : vector<4x1x8xf32> to vector<4x8x8xf32>
    %216 = arith.mulf %214, %215 : vector<4x8x8xf32>
    %cst_61 = arith.constant dense<0xFF800000> : vector<4x8xf32>
    %217 = vector.multi_reduction <maximumf>, %216, %cst_61 [2] : vector<4x8x8xf32> to vector<4x8xf32>
    %218 = vector.shape_cast %217 : vector<4x8xf32> to vector<4x8x1xf32>
    %219 = vector.broadcast %218 : vector<4x8x1xf32> to vector<4x8x8xf32>
    %220 = arith.subf %216, %219 : vector<4x8x8xf32>
    %221 = math.exp %220 : vector<4x8x8xf32>
    %cst_62 = arith.constant dense<0.000000e+00> : vector<4x8xf32>
    %222 = vector.multi_reduction <add>, %221, %cst_62 [2] : vector<4x8x8xf32> to vector<4x8xf32>
    %223 = vector.shape_cast %211 : vector<4x8xf32> to vector<4x1x8xf32>
    %224 = vector.broadcast %223 : vector<4x1x8xf32> to vector<4x8x8xf32>
    %225 = arith.mulf %221, %224 : vector<4x8x8xf32>
    %cst_63 = arith.constant dense<0.000000e+00> : vector<4x8xf32>
    %226 = vector.multi_reduction <add>, %225, %cst_63 [2] : vector<4x8x8xf32> to vector<4x8xf32>
    %227 = tpu.reciprocal %222 {approx = true} : vector<4x8xf32> -> vector<4x8xf32>
    %228 = arith.mulf %226, %227 : vector<4x8xf32>
    %229 = tpu.transpose %228, [1, 0] : vector<4x8xf32> -> vector<8x4xf32>
    %cst_64 = arith.constant dense<0.000000e+00> : vector<8x4xf32>
    %230 = tpu.matmul %229, %196, %cst_64 {dimension_numbers = #tpu.dot_dimension_numbers<[1], [0], [0], [1], [0, 0, 1, 1], [], []>} : vector<8x4xf32>, vector<4x4xf32>, vector<8x4xf32> -> vector<8x4xf32>
    %231 = vector.broadcast %199 : vector<1x4xf32> to vector<8x4xf32>
    %232 = arith.addf %230, %231 : vector<8x4xf32>
    %233 = arith.addf %192, %232 : vector<8x4xf32>
    %cst_65 = arith.constant dense<0.000000e+00> : vector<8xf32>
    %234 = vector.multi_reduction <add>, %233, %cst_65 [1] : vector<8x4xf32> to vector<8xf32>
    %235 = vector.shape_cast %234 : vector<8xf32> to vector<8x1xf32>
    %cst_66 = arith.constant 4.000000e+00 : f32
    %236 = vector.broadcast %cst_66 : f32 to vector<8x1xf32>
    %237 = arith.divf %235, %236 : vector<8x1xf32>
    %238 = vector.broadcast %237 : vector<8x1xf32> to vector<8x4xf32>
    %239 = arith.subf %233, %238 : vector<8x4xf32>
    %240 = arith.mulf %239, %239 : vector<8x4xf32>
    %cst_67 = arith.constant dense<0.000000e+00> : vector<8xf32>
    %241 = vector.multi_reduction <add>, %240, %cst_67 [1] : vector<8x4xf32> to vector<8xf32>
    %242 = vector.shape_cast %241 : vector<8xf32> to vector<8x1xf32>
    %cst_68 = arith.constant 4.000000e+00 : f32
    %243 = vector.broadcast %cst_68 : f32 to vector<8x1xf32>
    %244 = arith.divf %242, %243 : vector<8x1xf32>
    %cst_69 = arith.constant 9.99999974E-6 : f32
    %245 = vector.broadcast %cst_69 : f32 to vector<8x1xf32>
    %246 = arith.addf %244, %245 : vector<8x1xf32>
    %247 = math.rsqrt %246 : vector<8x1xf32>
    %248 = vector.broadcast %247 : vector<8x1xf32> to vector<8x4xf32>
    %249 = arith.mulf %239, %248 : vector<8x4xf32>
    %250 = vector.broadcast %200 : vector<1x4xf32> to vector<8x4xf32>
    %251 = arith.mulf %249, %250 : vector<8x4xf32>
    %252 = vector.broadcast %201 : vector<1x4xf32> to vector<8x4xf32>
    %253 = arith.addf %251, %252 : vector<8x4xf32>
    %c16 = arith.constant 16 : index
    %c0_70 = arith.constant 0 : index
    %254 = vector.load %arg5[%c16, %c0_70] : memref<48x2048xbf16, #tpu.memory_space<vmem>>, vector<4x2048xbf16>
    %c20 = arith.constant 20 : index
    %c0_71 = arith.constant 0 : index
    %255 = vector.load %arg5[%c20, %c0_71] : memref<48x2048xbf16, #tpu.memory_space<vmem>>, vector<4x2048xbf16>
    %256 = arith.truncf %253 : vector<8x4xf32> to vector<8x4xbf16>
    %cst_72 = arith.constant dense<0.000000e+00> : vector<8x2048xf32>
    %257 = tpu.matmul %256, %254, %cst_72 {dimension_numbers = #tpu.dot_dimension_numbers<[1], [0], [0], [1], [0, 0, 1, 1], [], []>} : vector<8x4xbf16>, vector<4x2048xbf16>, vector<8x2048xf32> -> vector<8x2048xf32>
    %c2_73 = arith.constant 2 : index
    %c0_74 = arith.constant 0 : index
    %258 = vector.load %arg4[%c2_73, %c0_74] : memref<6x2048xf32, #tpu.memory_space<vmem>>, vector<1x2048xf32>
    %259 = vector.broadcast %258 : vector<1x2048xf32> to vector<8x2048xf32>
    %260 = arith.addf %257, %259 : vector<8x2048xf32>
    %cst_75 = arith.constant 0.000000e+00 : f32
    %261 = vector.broadcast %cst_75 : f32 to vector<8x2048xf32>
    %262 = arith.maximumf %260, %261 : vector<8x2048xf32>
    %263 = arith.truncf %262 : vector<8x2048xf32> to vector<8x2048xbf16>
    %cst_76 = arith.constant dense<0.000000e+00> : vector<8x4xf32>
    %264 = tpu.matmul %263, %255, %cst_76 {dimension_numbers = #tpu.dot_dimension_numbers<[1], [1], [0], [0], [0, 0, 1, 0], [], []>} : vector<8x2048xbf16>, vector<4x2048xbf16>, vector<8x4xf32> -> vector<8x4xf32>
    %265 = vector.broadcast %202 : vector<1x4xf32> to vector<8x4xf32>
    %266 = arith.addf %264, %265 : vector<8x4xf32>
    %267 = arith.addf %253, %266 : vector<8x4xf32>
    %cst_77 = arith.constant dense<0.000000e+00> : vector<8xf32>
    %268 = vector.multi_reduction <add>, %267, %cst_77 [1] : vector<8x4xf32> to vector<8xf32>
    %269 = vector.shape_cast %268 : vector<8xf32> to vector<8x1xf32>
    %cst_78 = arith.constant 4.000000e+00 : f32
    %270 = vector.broadcast %cst_78 : f32 to vector<8x1xf32>
    %271 = arith.divf %269, %270 : vector<8x1xf32>
    %272 = vector.broadcast %271 : vector<8x1xf32> to vector<8x4xf32>
    %273 = arith.subf %267, %272 : vector<8x4xf32>
    %274 = arith.mulf %273, %273 : vector<8x4xf32>
    %cst_79 = arith.constant dense<0.000000e+00> : vector<8xf32>
    %275 = vector.multi_reduction <add>, %274, %cst_79 [1] : vector<8x4xf32> to vector<8xf32>
    %276 = vector.shape_cast %275 : vector<8xf32> to vector<8x1xf32>
    %cst_80 = arith.constant 4.000000e+00 : f32
    %277 = vector.broadcast %cst_80 : f32 to vector<8x1xf32>
    %278 = arith.divf %276, %277 : vector<8x1xf32>
    %cst_81 = arith.constant 9.99999974E-6 : f32
    %279 = vector.broadcast %cst_81 : f32 to vector<8x1xf32>
    %280 = arith.addf %278, %279 : vector<8x1xf32>
    %281 = math.rsqrt %280 : vector<8x1xf32>
    %282 = vector.broadcast %281 : vector<8x1xf32> to vector<8x4xf32>
    %283 = arith.mulf %273, %282 : vector<8x4xf32>
    %284 = vector.broadcast %203 : vector<1x4xf32> to vector<8x4xf32>
    %285 = arith.mulf %283, %284 : vector<8x4xf32>
    %286 = vector.broadcast %204 : vector<1x4xf32> to vector<8x4xf32>
    %287 = arith.addf %285, %286 : vector<8x4xf32>
    %c3 = arith.constant 3 : index
    %c0_82 = arith.constant 0 : index
    %c0_83 = arith.constant 0 : index
    %288 = vector.load %arg2[%c3, %c0_82, %c0_83] : memref<6x4x16xf32, #tpu.memory_space<vmem>>, vector<1x4x16xf32>
    %289 = vector.shape_cast %288 : vector<1x4x16xf32> to vector<4x16xf32>
    %290 = vector.extract_strided_slice %289 {offsets = [0, 0], sizes = [4, 12], strides = [1, 1]} : vector<4x16xf32> to vector<4x12xf32>
    %291 = vector.extract_strided_slice %289 {offsets = [0, 12], sizes = [4, 4], strides = [1, 1]} : vector<4x16xf32> to vector<4x4xf32>
    %c3_84 = arith.constant 3 : index
    %c0_85 = arith.constant 0 : index
    %292 = vector.load %arg3[%c3_84, %c0_85] : memref<6x36xf32, #tpu.memory_space<vmem>>, vector<1x36xf32>
    %293 = vector.extract_strided_slice %292 {offsets = [0, 0], sizes = [1, 12], strides = [1, 1]} : vector<1x36xf32> to vector<1x12xf32>
    %294 = vector.extract_strided_slice %292 {offsets = [0, 12], sizes = [1, 4], strides = [1, 1]} : vector<1x36xf32> to vector<1x4xf32>
    %295 = vector.extract_strided_slice %292 {offsets = [0, 16], sizes = [1, 4], strides = [1, 1]} : vector<1x36xf32> to vector<1x4xf32>
    %296 = vector.extract_strided_slice %292 {offsets = [0, 20], sizes = [1, 4], strides = [1, 1]} : vector<1x36xf32> to vector<1x4xf32>
    %297 = vector.extract_strided_slice %292 {offsets = [0, 24], sizes = [1, 4], strides = [1, 1]} : vector<1x36xf32> to vector<1x4xf32>
    %298 = vector.extract_strided_slice %292 {offsets = [0, 28], sizes = [1, 4], strides = [1, 1]} : vector<1x36xf32> to vector<1x4xf32>
    %299 = vector.extract_strided_slice %292 {offsets = [0, 32], sizes = [1, 4], strides = [1, 1]} : vector<1x36xf32> to vector<1x4xf32>
    %cst_86 = arith.constant dense<0.000000e+00> : vector<8x12xf32>
    %300 = tpu.matmul %287, %290, %cst_86 {dimension_numbers = #tpu.dot_dimension_numbers<[1], [0], [0], [1], [0, 0, 1, 1], [], []>} : vector<8x4xf32>, vector<4x12xf32>, vector<8x12xf32> -> vector<8x12xf32>
    %301 = vector.broadcast %293 : vector<1x12xf32> to vector<8x12xf32>
    %302 = arith.addf %300, %301 : vector<8x12xf32>
    %303 = tpu.transpose %302, [1, 0] : vector<8x12xf32> -> vector<12x8xf32>
    %304 = vector.extract_strided_slice %303 {offsets = [0, 0], sizes = [4, 8], strides = [1, 1]} : vector<12x8xf32> to vector<4x8xf32>
    %305 = vector.extract_strided_slice %303 {offsets = [4, 0], sizes = [4, 8], strides = [1, 1]} : vector<12x8xf32> to vector<4x8xf32>
    %306 = vector.extract_strided_slice %303 {offsets = [8, 0], sizes = [4, 8], strides = [1, 1]} : vector<12x8xf32> to vector<4x8xf32>
    %307 = vector.shape_cast %304 : vector<4x8xf32> to vector<4x8x1xf32>
    %308 = vector.shape_cast %305 : vector<4x8xf32> to vector<4x1x8xf32>
    %309 = vector.broadcast %307 : vector<4x8x1xf32> to vector<4x8x8xf32>
    %310 = vector.broadcast %308 : vector<4x1x8xf32> to vector<4x8x8xf32>
    %311 = arith.mulf %309, %310 : vector<4x8x8xf32>
    %cst_87 = arith.constant dense<0xFF800000> : vector<4x8xf32>
    %312 = vector.multi_reduction <maximumf>, %311, %cst_87 [2] : vector<4x8x8xf32> to vector<4x8xf32>
    %313 = vector.shape_cast %312 : vector<4x8xf32> to vector<4x8x1xf32>
    %314 = vector.broadcast %313 : vector<4x8x1xf32> to vector<4x8x8xf32>
    %315 = arith.subf %311, %314 : vector<4x8x8xf32>
    %316 = math.exp %315 : vector<4x8x8xf32>
    %cst_88 = arith.constant dense<0.000000e+00> : vector<4x8xf32>
    %317 = vector.multi_reduction <add>, %316, %cst_88 [2] : vector<4x8x8xf32> to vector<4x8xf32>
    %318 = vector.shape_cast %306 : vector<4x8xf32> to vector<4x1x8xf32>
    %319 = vector.broadcast %318 : vector<4x1x8xf32> to vector<4x8x8xf32>
    %320 = arith.mulf %316, %319 : vector<4x8x8xf32>
    %cst_89 = arith.constant dense<0.000000e+00> : vector<4x8xf32>
    %321 = vector.multi_reduction <add>, %320, %cst_89 [2] : vector<4x8x8xf32> to vector<4x8xf32>
    %322 = tpu.reciprocal %317 {approx = true} : vector<4x8xf32> -> vector<4x8xf32>
    %323 = arith.mulf %321, %322 : vector<4x8xf32>
    %324 = tpu.transpose %323, [1, 0] : vector<4x8xf32> -> vector<8x4xf32>
    %cst_90 = arith.constant dense<0.000000e+00> : vector<8x4xf32>
    %325 = tpu.matmul %324, %291, %cst_90 {dimension_numbers = #tpu.dot_dimension_numbers<[1], [0], [0], [1], [0, 0, 1, 1], [], []>} : vector<8x4xf32>, vector<4x4xf32>, vector<8x4xf32> -> vector<8x4xf32>
    %326 = vector.broadcast %294 : vector<1x4xf32> to vector<8x4xf32>
    %327 = arith.addf %325, %326 : vector<8x4xf32>
    %328 = arith.addf %287, %327 : vector<8x4xf32>
    %cst_91 = arith.constant dense<0.000000e+00> : vector<8xf32>
    %329 = vector.multi_reduction <add>, %328, %cst_91 [1] : vector<8x4xf32> to vector<8xf32>
    %330 = vector.shape_cast %329 : vector<8xf32> to vector<8x1xf32>
    %cst_92 = arith.constant 4.000000e+00 : f32
    %331 = vector.broadcast %cst_92 : f32 to vector<8x1xf32>
    %332 = arith.divf %330, %331 : vector<8x1xf32>
    %333 = vector.broadcast %332 : vector<8x1xf32> to vector<8x4xf32>
    %334 = arith.subf %328, %333 : vector<8x4xf32>
    %335 = arith.mulf %334, %334 : vector<8x4xf32>
    %cst_93 = arith.constant dense<0.000000e+00> : vector<8xf32>
    %336 = vector.multi_reduction <add>, %335, %cst_93 [1] : vector<8x4xf32> to vector<8xf32>
    %337 = vector.shape_cast %336 : vector<8xf32> to vector<8x1xf32>
    %cst_94 = arith.constant 4.000000e+00 : f32
    %338 = vector.broadcast %cst_94 : f32 to vector<8x1xf32>
    %339 = arith.divf %337, %338 : vector<8x1xf32>
    %cst_95 = arith.constant 9.99999974E-6 : f32
    %340 = vector.broadcast %cst_95 : f32 to vector<8x1xf32>
    %341 = arith.addf %339, %340 : vector<8x1xf32>
    %342 = math.rsqrt %341 : vector<8x1xf32>
    %343 = vector.broadcast %342 : vector<8x1xf32> to vector<8x4xf32>
    %344 = arith.mulf %334, %343 : vector<8x4xf32>
    %345 = vector.broadcast %295 : vector<1x4xf32> to vector<8x4xf32>
    %346 = arith.mulf %344, %345 : vector<8x4xf32>
    %347 = vector.broadcast %296 : vector<1x4xf32> to vector<8x4xf32>
    %348 = arith.addf %346, %347 : vector<8x4xf32>
    %c24 = arith.constant 24 : index
    %c0_96 = arith.constant 0 : index
    %349 = vector.load %arg5[%c24, %c0_96] : memref<48x2048xbf16, #tpu.memory_space<vmem>>, vector<4x2048xbf16>
    %c28 = arith.constant 28 : index
    %c0_97 = arith.constant 0 : index
    %350 = vector.load %arg5[%c28, %c0_97] : memref<48x2048xbf16, #tpu.memory_space<vmem>>, vector<4x2048xbf16>
    %351 = arith.truncf %348 : vector<8x4xf32> to vector<8x4xbf16>
    %cst_98 = arith.constant dense<0.000000e+00> : vector<8x2048xf32>
    %352 = tpu.matmul %351, %349, %cst_98 {dimension_numbers = #tpu.dot_dimension_numbers<[1], [0], [0], [1], [0, 0, 1, 1], [], []>} : vector<8x4xbf16>, vector<4x2048xbf16>, vector<8x2048xf32> -> vector<8x2048xf32>
    %c3_99 = arith.constant 3 : index
    %c0_100 = arith.constant 0 : index
    %353 = vector.load %arg4[%c3_99, %c0_100] : memref<6x2048xf32, #tpu.memory_space<vmem>>, vector<1x2048xf32>
    %354 = vector.broadcast %353 : vector<1x2048xf32> to vector<8x2048xf32>
    %355 = arith.addf %352, %354 : vector<8x2048xf32>
    %cst_101 = arith.constant 0.000000e+00 : f32
    %356 = vector.broadcast %cst_101 : f32 to vector<8x2048xf32>
    %357 = arith.maximumf %355, %356 : vector<8x2048xf32>
    %358 = arith.truncf %357 : vector<8x2048xf32> to vector<8x2048xbf16>
    %cst_102 = arith.constant dense<0.000000e+00> : vector<8x4xf32>
    %359 = tpu.matmul %358, %350, %cst_102 {dimension_numbers = #tpu.dot_dimension_numbers<[1], [1], [0], [0], [0, 0, 1, 0], [], []>} : vector<8x2048xbf16>, vector<4x2048xbf16>, vector<8x4xf32> -> vector<8x4xf32>
    %360 = vector.broadcast %297 : vector<1x4xf32> to vector<8x4xf32>
    %361 = arith.addf %359, %360 : vector<8x4xf32>
    %362 = arith.addf %348, %361 : vector<8x4xf32>
    %cst_103 = arith.constant dense<0.000000e+00> : vector<8xf32>
    %363 = vector.multi_reduction <add>, %362, %cst_103 [1] : vector<8x4xf32> to vector<8xf32>
    %364 = vector.shape_cast %363 : vector<8xf32> to vector<8x1xf32>
    %cst_104 = arith.constant 4.000000e+00 : f32
    %365 = vector.broadcast %cst_104 : f32 to vector<8x1xf32>
    %366 = arith.divf %364, %365 : vector<8x1xf32>
    %367 = vector.broadcast %366 : vector<8x1xf32> to vector<8x4xf32>
    %368 = arith.subf %362, %367 : vector<8x4xf32>
    %369 = arith.mulf %368, %368 : vector<8x4xf32>
    %cst_105 = arith.constant dense<0.000000e+00> : vector<8xf32>
    %370 = vector.multi_reduction <add>, %369, %cst_105 [1] : vector<8x4xf32> to vector<8xf32>
    %371 = vector.shape_cast %370 : vector<8xf32> to vector<8x1xf32>
    %cst_106 = arith.constant 4.000000e+00 : f32
    %372 = vector.broadcast %cst_106 : f32 to vector<8x1xf32>
    %373 = arith.divf %371, %372 : vector<8x1xf32>
    %cst_107 = arith.constant 9.99999974E-6 : f32
    %374 = vector.broadcast %cst_107 : f32 to vector<8x1xf32>
    %375 = arith.addf %373, %374 : vector<8x1xf32>
    %376 = math.rsqrt %375 : vector<8x1xf32>
    %377 = vector.broadcast %376 : vector<8x1xf32> to vector<8x4xf32>
    %378 = arith.mulf %368, %377 : vector<8x4xf32>
    %379 = vector.broadcast %298 : vector<1x4xf32> to vector<8x4xf32>
    %380 = arith.mulf %378, %379 : vector<8x4xf32>
    %381 = vector.broadcast %299 : vector<1x4xf32> to vector<8x4xf32>
    %382 = arith.addf %380, %381 : vector<8x4xf32>
    %c4_108 = arith.constant 4 : index
    %c0_109 = arith.constant 0 : index
    %c0_110 = arith.constant 0 : index
    %383 = vector.load %arg2[%c4_108, %c0_109, %c0_110] : memref<6x4x16xf32, #tpu.memory_space<vmem>>, vector<1x4x16xf32>
    %384 = vector.shape_cast %383 : vector<1x4x16xf32> to vector<4x16xf32>
    %385 = vector.extract_strided_slice %384 {offsets = [0, 0], sizes = [4, 12], strides = [1, 1]} : vector<4x16xf32> to vector<4x12xf32>
    %386 = vector.extract_strided_slice %384 {offsets = [0, 12], sizes = [4, 4], strides = [1, 1]} : vector<4x16xf32> to vector<4x4xf32>
    %c4_111 = arith.constant 4 : index
    %c0_112 = arith.constant 0 : index
    %387 = vector.load %arg3[%c4_111, %c0_112] : memref<6x36xf32, #tpu.memory_space<vmem>>, vector<1x36xf32>
    %388 = vector.extract_strided_slice %387 {offsets = [0, 0], sizes = [1, 12], strides = [1, 1]} : vector<1x36xf32> to vector<1x12xf32>
    %389 = vector.extract_strided_slice %387 {offsets = [0, 12], sizes = [1, 4], strides = [1, 1]} : vector<1x36xf32> to vector<1x4xf32>
    %390 = vector.extract_strided_slice %387 {offsets = [0, 16], sizes = [1, 4], strides = [1, 1]} : vector<1x36xf32> to vector<1x4xf32>
    %391 = vector.extract_strided_slice %387 {offsets = [0, 20], sizes = [1, 4], strides = [1, 1]} : vector<1x36xf32> to vector<1x4xf32>
    %392 = vector.extract_strided_slice %387 {offsets = [0, 24], sizes = [1, 4], strides = [1, 1]} : vector<1x36xf32> to vector<1x4xf32>
    %393 = vector.extract_strided_slice %387 {offsets = [0, 28], sizes = [1, 4], strides = [1, 1]} : vector<1x36xf32> to vector<1x4xf32>
    %394 = vector.extract_strided_slice %387 {offsets = [0, 32], sizes = [1, 4], strides = [1, 1]} : vector<1x36xf32> to vector<1x4xf32>
    %cst_113 = arith.constant dense<0.000000e+00> : vector<8x12xf32>
    %395 = tpu.matmul %382, %385, %cst_113 {dimension_numbers = #tpu.dot_dimension_numbers<[1], [0], [0], [1], [0, 0, 1, 1], [], []>} : vector<8x4xf32>, vector<4x12xf32>, vector<8x12xf32> -> vector<8x12xf32>
    %396 = vector.broadcast %388 : vector<1x12xf32> to vector<8x12xf32>
    %397 = arith.addf %395, %396 : vector<8x12xf32>
    %398 = tpu.transpose %397, [1, 0] : vector<8x12xf32> -> vector<12x8xf32>
    %399 = vector.extract_strided_slice %398 {offsets = [0, 0], sizes = [4, 8], strides = [1, 1]} : vector<12x8xf32> to vector<4x8xf32>
    %400 = vector.extract_strided_slice %398 {offsets = [4, 0], sizes = [4, 8], strides = [1, 1]} : vector<12x8xf32> to vector<4x8xf32>
    %401 = vector.extract_strided_slice %398 {offsets = [8, 0], sizes = [4, 8], strides = [1, 1]} : vector<12x8xf32> to vector<4x8xf32>
    %402 = vector.shape_cast %399 : vector<4x8xf32> to vector<4x8x1xf32>
    %403 = vector.shape_cast %400 : vector<4x8xf32> to vector<4x1x8xf32>
    %404 = vector.broadcast %402 : vector<4x8x1xf32> to vector<4x8x8xf32>
    %405 = vector.broadcast %403 : vector<4x1x8xf32> to vector<4x8x8xf32>
    %406 = arith.mulf %404, %405 : vector<4x8x8xf32>
    %cst_114 = arith.constant dense<0xFF800000> : vector<4x8xf32>
    %407 = vector.multi_reduction <maximumf>, %406, %cst_114 [2] : vector<4x8x8xf32> to vector<4x8xf32>
    %408 = vector.shape_cast %407 : vector<4x8xf32> to vector<4x8x1xf32>
    %409 = vector.broadcast %408 : vector<4x8x1xf32> to vector<4x8x8xf32>
    %410 = arith.subf %406, %409 : vector<4x8x8xf32>
    %411 = math.exp %410 : vector<4x8x8xf32>
    %cst_115 = arith.constant dense<0.000000e+00> : vector<4x8xf32>
    %412 = vector.multi_reduction <add>, %411, %cst_115 [2] : vector<4x8x8xf32> to vector<4x8xf32>
    %413 = vector.shape_cast %401 : vector<4x8xf32> to vector<4x1x8xf32>
    %414 = vector.broadcast %413 : vector<4x1x8xf32> to vector<4x8x8xf32>
    %415 = arith.mulf %411, %414 : vector<4x8x8xf32>
    %cst_116 = arith.constant dense<0.000000e+00> : vector<4x8xf32>
    %416 = vector.multi_reduction <add>, %415, %cst_116 [2] : vector<4x8x8xf32> to vector<4x8xf32>
    %417 = tpu.reciprocal %412 {approx = true} : vector<4x8xf32> -> vector<4x8xf32>
    %418 = arith.mulf %416, %417 : vector<4x8xf32>
    %419 = tpu.transpose %418, [1, 0] : vector<4x8xf32> -> vector<8x4xf32>
    %cst_117 = arith.constant dense<0.000000e+00> : vector<8x4xf32>
    %420 = tpu.matmul %419, %386, %cst_117 {dimension_numbers = #tpu.dot_dimension_numbers<[1], [0], [0], [1], [0, 0, 1, 1], [], []>} : vector<8x4xf32>, vector<4x4xf32>, vector<8x4xf32> -> vector<8x4xf32>
    %421 = vector.broadcast %389 : vector<1x4xf32> to vector<8x4xf32>
    %422 = arith.addf %420, %421 : vector<8x4xf32>
    %423 = arith.addf %382, %422 : vector<8x4xf32>
    %cst_118 = arith.constant dense<0.000000e+00> : vector<8xf32>
    %424 = vector.multi_reduction <add>, %423, %cst_118 [1] : vector<8x4xf32> to vector<8xf32>
    %425 = vector.shape_cast %424 : vector<8xf32> to vector<8x1xf32>
    %cst_119 = arith.constant 4.000000e+00 : f32
    %426 = vector.broadcast %cst_119 : f32 to vector<8x1xf32>
    %427 = arith.divf %425, %426 : vector<8x1xf32>
    %428 = vector.broadcast %427 : vector<8x1xf32> to vector<8x4xf32>
    %429 = arith.subf %423, %428 : vector<8x4xf32>
    %430 = arith.mulf %429, %429 : vector<8x4xf32>
    %cst_120 = arith.constant dense<0.000000e+00> : vector<8xf32>
    %431 = vector.multi_reduction <add>, %430, %cst_120 [1] : vector<8x4xf32> to vector<8xf32>
    %432 = vector.shape_cast %431 : vector<8xf32> to vector<8x1xf32>
    %cst_121 = arith.constant 4.000000e+00 : f32
    %433 = vector.broadcast %cst_121 : f32 to vector<8x1xf32>
    %434 = arith.divf %432, %433 : vector<8x1xf32>
    %cst_122 = arith.constant 9.99999974E-6 : f32
    %435 = vector.broadcast %cst_122 : f32 to vector<8x1xf32>
    %436 = arith.addf %434, %435 : vector<8x1xf32>
    %437 = math.rsqrt %436 : vector<8x1xf32>
    %438 = vector.broadcast %437 : vector<8x1xf32> to vector<8x4xf32>
    %439 = arith.mulf %429, %438 : vector<8x4xf32>
    %440 = vector.broadcast %390 : vector<1x4xf32> to vector<8x4xf32>
    %441 = arith.mulf %439, %440 : vector<8x4xf32>
    %442 = vector.broadcast %391 : vector<1x4xf32> to vector<8x4xf32>
    %443 = arith.addf %441, %442 : vector<8x4xf32>
    %c32 = arith.constant 32 : index
    %c0_123 = arith.constant 0 : index
    %444 = vector.load %arg5[%c32, %c0_123] : memref<48x2048xbf16, #tpu.memory_space<vmem>>, vector<4x2048xbf16>
    %c36 = arith.constant 36 : index
    %c0_124 = arith.constant 0 : index
    %445 = vector.load %arg5[%c36, %c0_124] : memref<48x2048xbf16, #tpu.memory_space<vmem>>, vector<4x2048xbf16>
    %446 = arith.truncf %443 : vector<8x4xf32> to vector<8x4xbf16>
    %cst_125 = arith.constant dense<0.000000e+00> : vector<8x2048xf32>
    %447 = tpu.matmul %446, %444, %cst_125 {dimension_numbers = #tpu.dot_dimension_numbers<[1], [0], [0], [1], [0, 0, 1, 1], [], []>} : vector<8x4xbf16>, vector<4x2048xbf16>, vector<8x2048xf32> -> vector<8x2048xf32>
    %c4_126 = arith.constant 4 : index
    %c0_127 = arith.constant 0 : index
    %448 = vector.load %arg4[%c4_126, %c0_127] : memref<6x2048xf32, #tpu.memory_space<vmem>>, vector<1x2048xf32>
    %449 = vector.broadcast %448 : vector<1x2048xf32> to vector<8x2048xf32>
    %450 = arith.addf %447, %449 : vector<8x2048xf32>
    %cst_128 = arith.constant 0.000000e+00 : f32
    %451 = vector.broadcast %cst_128 : f32 to vector<8x2048xf32>
    %452 = arith.maximumf %450, %451 : vector<8x2048xf32>
    %453 = arith.truncf %452 : vector<8x2048xf32> to vector<8x2048xbf16>
    %cst_129 = arith.constant dense<0.000000e+00> : vector<8x4xf32>
    %454 = tpu.matmul %453, %445, %cst_129 {dimension_numbers = #tpu.dot_dimension_numbers<[1], [1], [0], [0], [0, 0, 1, 0], [], []>} : vector<8x2048xbf16>, vector<4x2048xbf16>, vector<8x4xf32> -> vector<8x4xf32>
    %455 = vector.broadcast %392 : vector<1x4xf32> to vector<8x4xf32>
    %456 = arith.addf %454, %455 : vector<8x4xf32>
    %457 = arith.addf %443, %456 : vector<8x4xf32>
    %cst_130 = arith.constant dense<0.000000e+00> : vector<8xf32>
    %458 = vector.multi_reduction <add>, %457, %cst_130 [1] : vector<8x4xf32> to vector<8xf32>
    %459 = vector.shape_cast %458 : vector<8xf32> to vector<8x1xf32>
    %cst_131 = arith.constant 4.000000e+00 : f32
    %460 = vector.broadcast %cst_131 : f32 to vector<8x1xf32>
    %461 = arith.divf %459, %460 : vector<8x1xf32>
    %462 = vector.broadcast %461 : vector<8x1xf32> to vector<8x4xf32>
    %463 = arith.subf %457, %462 : vector<8x4xf32>
    %464 = arith.mulf %463, %463 : vector<8x4xf32>
    %cst_132 = arith.constant dense<0.000000e+00> : vector<8xf32>
    %465 = vector.multi_reduction <add>, %464, %cst_132 [1] : vector<8x4xf32> to vector<8xf32>
    %466 = vector.shape_cast %465 : vector<8xf32> to vector<8x1xf32>
    %cst_133 = arith.constant 4.000000e+00 : f32
    %467 = vector.broadcast %cst_133 : f32 to vector<8x1xf32>
    %468 = arith.divf %466, %467 : vector<8x1xf32>
    %cst_134 = arith.constant 9.99999974E-6 : f32
    %469 = vector.broadcast %cst_134 : f32 to vector<8x1xf32>
    %470 = arith.addf %468, %469 : vector<8x1xf32>
    %471 = math.rsqrt %470 : vector<8x1xf32>
    %472 = vector.broadcast %471 : vector<8x1xf32> to vector<8x4xf32>
    %473 = arith.mulf %463, %472 : vector<8x4xf32>
    %474 = vector.broadcast %393 : vector<1x4xf32> to vector<8x4xf32>
    %475 = arith.mulf %473, %474 : vector<8x4xf32>
    %476 = vector.broadcast %394 : vector<1x4xf32> to vector<8x4xf32>
    %477 = arith.addf %475, %476 : vector<8x4xf32>
    %c5 = arith.constant 5 : index
    %c0_135 = arith.constant 0 : index
    %c0_136 = arith.constant 0 : index
    %478 = vector.load %arg2[%c5, %c0_135, %c0_136] : memref<6x4x16xf32, #tpu.memory_space<vmem>>, vector<1x4x16xf32>
    %479 = vector.shape_cast %478 : vector<1x4x16xf32> to vector<4x16xf32>
    %480 = vector.extract_strided_slice %479 {offsets = [0, 0], sizes = [4, 12], strides = [1, 1]} : vector<4x16xf32> to vector<4x12xf32>
    %481 = vector.extract_strided_slice %479 {offsets = [0, 12], sizes = [4, 4], strides = [1, 1]} : vector<4x16xf32> to vector<4x4xf32>
    %c5_137 = arith.constant 5 : index
    %c0_138 = arith.constant 0 : index
    %482 = vector.load %arg3[%c5_137, %c0_138] : memref<6x36xf32, #tpu.memory_space<vmem>>, vector<1x36xf32>
    %483 = vector.extract_strided_slice %482 {offsets = [0, 0], sizes = [1, 12], strides = [1, 1]} : vector<1x36xf32> to vector<1x12xf32>
    %484 = vector.extract_strided_slice %482 {offsets = [0, 12], sizes = [1, 4], strides = [1, 1]} : vector<1x36xf32> to vector<1x4xf32>
    %485 = vector.extract_strided_slice %482 {offsets = [0, 16], sizes = [1, 4], strides = [1, 1]} : vector<1x36xf32> to vector<1x4xf32>
    %486 = vector.extract_strided_slice %482 {offsets = [0, 20], sizes = [1, 4], strides = [1, 1]} : vector<1x36xf32> to vector<1x4xf32>
    %487 = vector.extract_strided_slice %482 {offsets = [0, 24], sizes = [1, 4], strides = [1, 1]} : vector<1x36xf32> to vector<1x4xf32>
    %488 = vector.extract_strided_slice %482 {offsets = [0, 28], sizes = [1, 4], strides = [1, 1]} : vector<1x36xf32> to vector<1x4xf32>
    %489 = vector.extract_strided_slice %482 {offsets = [0, 32], sizes = [1, 4], strides = [1, 1]} : vector<1x36xf32> to vector<1x4xf32>
    %cst_139 = arith.constant dense<0.000000e+00> : vector<8x12xf32>
    %490 = tpu.matmul %477, %480, %cst_139 {dimension_numbers = #tpu.dot_dimension_numbers<[1], [0], [0], [1], [0, 0, 1, 1], [], []>} : vector<8x4xf32>, vector<4x12xf32>, vector<8x12xf32> -> vector<8x12xf32>
    %491 = vector.broadcast %483 : vector<1x12xf32> to vector<8x12xf32>
    %492 = arith.addf %490, %491 : vector<8x12xf32>
    %493 = tpu.transpose %492, [1, 0] : vector<8x12xf32> -> vector<12x8xf32>
    %494 = vector.extract_strided_slice %493 {offsets = [0, 0], sizes = [4, 8], strides = [1, 1]} : vector<12x8xf32> to vector<4x8xf32>
    %495 = vector.extract_strided_slice %493 {offsets = [4, 0], sizes = [4, 8], strides = [1, 1]} : vector<12x8xf32> to vector<4x8xf32>
    %496 = vector.extract_strided_slice %493 {offsets = [8, 0], sizes = [4, 8], strides = [1, 1]} : vector<12x8xf32> to vector<4x8xf32>
    %497 = vector.shape_cast %494 : vector<4x8xf32> to vector<4x8x1xf32>
    %498 = vector.shape_cast %495 : vector<4x8xf32> to vector<4x1x8xf32>
    %499 = vector.broadcast %497 : vector<4x8x1xf32> to vector<4x8x8xf32>
    %500 = vector.broadcast %498 : vector<4x1x8xf32> to vector<4x8x8xf32>
    %501 = arith.mulf %499, %500 : vector<4x8x8xf32>
    %cst_140 = arith.constant dense<0xFF800000> : vector<4x8xf32>
    %502 = vector.multi_reduction <maximumf>, %501, %cst_140 [2] : vector<4x8x8xf32> to vector<4x8xf32>
    %503 = vector.shape_cast %502 : vector<4x8xf32> to vector<4x8x1xf32>
    %504 = vector.broadcast %503 : vector<4x8x1xf32> to vector<4x8x8xf32>
    %505 = arith.subf %501, %504 : vector<4x8x8xf32>
    %506 = math.exp %505 : vector<4x8x8xf32>
    %cst_141 = arith.constant dense<0.000000e+00> : vector<4x8xf32>
    %507 = vector.multi_reduction <add>, %506, %cst_141 [2] : vector<4x8x8xf32> to vector<4x8xf32>
    %508 = vector.shape_cast %496 : vector<4x8xf32> to vector<4x1x8xf32>
    %509 = vector.broadcast %508 : vector<4x1x8xf32> to vector<4x8x8xf32>
    %510 = arith.mulf %506, %509 : vector<4x8x8xf32>
    %cst_142 = arith.constant dense<0.000000e+00> : vector<4x8xf32>
    %511 = vector.multi_reduction <add>, %510, %cst_142 [2] : vector<4x8x8xf32> to vector<4x8xf32>
    %512 = tpu.reciprocal %507 {approx = true} : vector<4x8xf32> -> vector<4x8xf32>
    %513 = arith.mulf %511, %512 : vector<4x8xf32>
    %514 = tpu.transpose %513, [1, 0] : vector<4x8xf32> -> vector<8x4xf32>
    %cst_143 = arith.constant dense<0.000000e+00> : vector<8x4xf32>
    %515 = tpu.matmul %514, %481, %cst_143 {dimension_numbers = #tpu.dot_dimension_numbers<[1], [0], [0], [1], [0, 0, 1, 1], [], []>} : vector<8x4xf32>, vector<4x4xf32>, vector<8x4xf32> -> vector<8x4xf32>
    %516 = vector.broadcast %484 : vector<1x4xf32> to vector<8x4xf32>
    %517 = arith.addf %515, %516 : vector<8x4xf32>
    %518 = arith.addf %477, %517 : vector<8x4xf32>
    %cst_144 = arith.constant dense<0.000000e+00> : vector<8xf32>
    %519 = vector.multi_reduction <add>, %518, %cst_144 [1] : vector<8x4xf32> to vector<8xf32>
    %520 = vector.shape_cast %519 : vector<8xf32> to vector<8x1xf32>
    %cst_145 = arith.constant 4.000000e+00 : f32
    %521 = vector.broadcast %cst_145 : f32 to vector<8x1xf32>
    %522 = arith.divf %520, %521 : vector<8x1xf32>
    %523 = vector.broadcast %522 : vector<8x1xf32> to vector<8x4xf32>
    %524 = arith.subf %518, %523 : vector<8x4xf32>
    %525 = arith.mulf %524, %524 : vector<8x4xf32>
    %cst_146 = arith.constant dense<0.000000e+00> : vector<8xf32>
    %526 = vector.multi_reduction <add>, %525, %cst_146 [1] : vector<8x4xf32> to vector<8xf32>
    %527 = vector.shape_cast %526 : vector<8xf32> to vector<8x1xf32>
    %cst_147 = arith.constant 4.000000e+00 : f32
    %528 = vector.broadcast %cst_147 : f32 to vector<8x1xf32>
    %529 = arith.divf %527, %528 : vector<8x1xf32>
    %cst_148 = arith.constant 9.99999974E-6 : f32
    %530 = vector.broadcast %cst_148 : f32 to vector<8x1xf32>
    %531 = arith.addf %529, %530 : vector<8x1xf32>
    %532 = math.rsqrt %531 : vector<8x1xf32>
    %533 = vector.broadcast %532 : vector<8x1xf32> to vector<8x4xf32>
    %534 = arith.mulf %524, %533 : vector<8x4xf32>
    %535 = vector.broadcast %485 : vector<1x4xf32> to vector<8x4xf32>
    %536 = arith.mulf %534, %535 : vector<8x4xf32>
    %537 = vector.broadcast %486 : vector<1x4xf32> to vector<8x4xf32>
    %538 = arith.addf %536, %537 : vector<8x4xf32>
    %c40 = arith.constant 40 : index
    %c0_149 = arith.constant 0 : index
    %539 = vector.load %arg5[%c40, %c0_149] : memref<48x2048xbf16, #tpu.memory_space<vmem>>, vector<4x2048xbf16>
    %c44 = arith.constant 44 : index
    %c0_150 = arith.constant 0 : index
    %540 = vector.load %arg5[%c44, %c0_150] : memref<48x2048xbf16, #tpu.memory_space<vmem>>, vector<4x2048xbf16>
    %541 = arith.truncf %538 : vector<8x4xf32> to vector<8x4xbf16>
    %cst_151 = arith.constant dense<0.000000e+00> : vector<8x2048xf32>
    %542 = tpu.matmul %541, %539, %cst_151 {dimension_numbers = #tpu.dot_dimension_numbers<[1], [0], [0], [1], [0, 0, 1, 1], [], []>} : vector<8x4xbf16>, vector<4x2048xbf16>, vector<8x2048xf32> -> vector<8x2048xf32>
    %c5_152 = arith.constant 5 : index
    %c0_153 = arith.constant 0 : index
    %543 = vector.load %arg4[%c5_152, %c0_153] : memref<6x2048xf32, #tpu.memory_space<vmem>>, vector<1x2048xf32>
    %544 = vector.broadcast %543 : vector<1x2048xf32> to vector<8x2048xf32>
    %545 = arith.addf %542, %544 : vector<8x2048xf32>
    %cst_154 = arith.constant 0.000000e+00 : f32
    %546 = vector.broadcast %cst_154 : f32 to vector<8x2048xf32>
    %547 = arith.maximumf %545, %546 : vector<8x2048xf32>
    %548 = arith.truncf %547 : vector<8x2048xf32> to vector<8x2048xbf16>
    %cst_155 = arith.constant dense<0.000000e+00> : vector<8x4xf32>
    %549 = tpu.matmul %548, %540, %cst_155 {dimension_numbers = #tpu.dot_dimension_numbers<[1], [1], [0], [0], [0, 0, 1, 0], [], []>} : vector<8x2048xbf16>, vector<4x2048xbf16>, vector<8x4xf32> -> vector<8x4xf32>
    %550 = vector.broadcast %487 : vector<1x4xf32> to vector<8x4xf32>
    %551 = arith.addf %549, %550 : vector<8x4xf32>
    %552 = arith.addf %538, %551 : vector<8x4xf32>
    %cst_156 = arith.constant dense<0.000000e+00> : vector<8xf32>
    %553 = vector.multi_reduction <add>, %552, %cst_156 [1] : vector<8x4xf32> to vector<8xf32>
    %554 = vector.shape_cast %553 : vector<8xf32> to vector<8x1xf32>
    %cst_157 = arith.constant 4.000000e+00 : f32
    %555 = vector.broadcast %cst_157 : f32 to vector<8x1xf32>
    %556 = arith.divf %554, %555 : vector<8x1xf32>
    %557 = vector.broadcast %556 : vector<8x1xf32> to vector<8x4xf32>
    %558 = arith.subf %552, %557 : vector<8x4xf32>
    %559 = arith.mulf %558, %558 : vector<8x4xf32>
    %cst_158 = arith.constant dense<0.000000e+00> : vector<8xf32>
    %560 = vector.multi_reduction <add>, %559, %cst_158 [1] : vector<8x4xf32> to vector<8xf32>
    %561 = vector.shape_cast %560 : vector<8xf32> to vector<8x1xf32>
    %cst_159 = arith.constant 4.000000e+00 : f32
    %562 = vector.broadcast %cst_159 : f32 to vector<8x1xf32>
    %563 = arith.divf %561, %562 : vector<8x1xf32>
    %cst_160 = arith.constant 9.99999974E-6 : f32
    %564 = vector.broadcast %cst_160 : f32 to vector<8x1xf32>
    %565 = arith.addf %563, %564 : vector<8x1xf32>
    %566 = math.rsqrt %565 : vector<8x1xf32>
    %567 = vector.broadcast %566 : vector<8x1xf32> to vector<8x4xf32>
    %568 = arith.mulf %558, %567 : vector<8x4xf32>
    %569 = vector.broadcast %488 : vector<1x4xf32> to vector<8x4xf32>
    %570 = arith.mulf %568, %569 : vector<8x4xf32>
    %571 = vector.broadcast %489 : vector<1x4xf32> to vector<8x4xf32>
    %572 = arith.addf %570, %571 : vector<8x4xf32>
    %c0_161 = arith.constant 0 : index
    %c0_162 = arith.constant 0 : index
    %573 = vector.load %arg6[%c0_161, %c0_162] : memref<8x5xf32, #tpu.memory_space<vmem>>, vector<8x4xf32>
    %574 = arith.mulf %572, %573 : vector<8x4xf32>
    %575 = vector.shape_cast %574 : vector<8x4xf32> to vector<1x8x4xf32>
    %cst_163 = arith.constant dense<0.000000e+00> : vector<1xf32>
    %576 = vector.multi_reduction <add>, %575, %cst_163 [1, 2] : vector<1x8x4xf32> to vector<1xf32>
    %577 = vector.shape_cast %576 : vector<1xf32> to vector<1x1x1xf32>
    %578 = vector.extract %577[0, 0, 0] : f32 from vector<1x1x1xf32>
    %579 = vector.broadcast %578 : f32 to vector<1x1xf32>
    %c0_164 = arith.constant 0 : index
    %c4_165 = arith.constant 4 : index
    %580 = vector.load %arg6[%c0_164, %c4_165] : memref<8x5xf32, #tpu.memory_space<vmem>>, vector<1x1xf32>
    %581 = arith.addf %579, %580 : vector<1x1xf32>
    %c0_166 = arith.constant 0 : index
    %c0_167 = arith.constant 0 : index
    %582 = vector.load %arg7[%c0_166, %c0_167] : memref<1x1xf32, #tpu.memory_space<vmem>>, vector<1x1xf32>
    tpu.vector_store %arg7[%c0_166, %c0_167], %581 {strides = array<i32>} : memref<1x1xf32, #tpu.memory_space<vmem>>, vector<1x1xf32>,
    return
  }
}

</mosaic_0001>

<bundles_post_ra>
// kernel: tpu_custom_call.1
= control target key start
LH: loop header
LB: loop body
LE: loop exit
PB: predicated region body
PF: predicated region fallthrough
CT: control target
= control target key end

     0   :  { %12 = vsyncpa [#allocation3], 0  ;;  %s7189_s0 = inlined_call_operand.vmem [shape: f32[8,4], index: 0, kind: input, shape index: {}]   ;;  %s7190_s1 = inlined_call_operand.vmem [shape: f32[8,4], index: 1, kind: input, shape index: {}]   ;;  %s7191_s2 = inlined_call_operand.hbm [shape: f32[6,4,16], index: 2, kind: input, shape index: {}]   ;;  %s7192_s3 = inlined_call_operand.vmem [shape: f32[6,36], index: 3, kind: input, shape index: {}]   ;;  %s7193_s4 = inlined_call_operand.hbm [shape: f32[6,2048], index: 4, kind: input, shape index: {}]   ;;  %s7194_s5 = inlined_call_operand.hbm [shape: bf16[48,2048], index: 5, kind: input, shape index: {}]   ;;  %s7195_s6 = inlined_call_operand.vmem [shape: f32[8,5], index: 6, kind: input, shape index: {}]   ;;  %s7196_s7 = inlined_call_operand.hbm [shape: f32[1,1], index: 7, kind: output, shape index: {}]  }
   0x1   :  { %13 = vsyncpa [#allocation6], 0  ;;  %s39_s26 = sshll.u32 %s7193_s4, 4  ;;  %s40_s26 = int_to_ptr.hbm [resolvable:$true] %s39_s26 }
   0x2   :  { %14 = vsyncpa [#allocation4], 0  ;;  %s6465_s27 = smov [#allocation5]   ;;  %s23_s8 = sshll.u32 %s7191_s2, 4  ;;  %s24_s8 = int_to_ptr.hbm [resolvable:$true] %s23_s8 }
   0x3   :  { %s41_s28 = sshll.u32 %s6465_s27, 4  ;;  %s6466_s9 = smov [#allocation2]   ;;  %s42_s28 = int_to_ptr.vmem [resolvable:$true] %s41_s28 }
   0x4   :  { %44 = dma.hbm_to_vmem [thread:$0]  %s40_s26, 2048, %s42_s28, [#allocation6]  }
   0x5   :  { %s25_s10 = sshll.u32 %s6466_s9, 4  ;;  %s6467_s11 = smov 64   ;;  %s26_s10 = int_to_ptr.vmem [resolvable:$true] %s25_s10 }
   0x6   :  { %s6468_s12 = smov 4   ;;  %s49_s4 = sshll.u32 %s7194_s5, 4  ;;  %s50_s4 = int_to_ptr.hbm [resolvable:$true] %s49_s4 }
   0x7   :  { %31 = dma.hbm_to_vmem [thread:$0]  %s24_s8, 384, %s26_s10, [#allocation3], %s6467_s11, %s6467_s11, %s6468_s12  }
   0x8   :  { %s6469_s15 = smov [#allocation7]   ;;  %s6470_s17 = smov 1024  }
   0x9   :  { %s51_s16 = sshll.u32 %s6469_s15, 4  ;;  %s52_s16 = int_to_ptr.vmem [resolvable:$true] %s51_s16 }
   0xa   :  { %57 = dma.hbm_to_vmem [thread:$0]  %s50_s4, 6144, %s52_s16, [#allocation6], %s6470_s17, %s6470_s17, %s6467_s11  }
   0xb   :  { %6459 = dma.done.wait [#allocation3], 384  }
   0xc   :  { %6460 = vsyncadd [#allocation3], 4294966912 }
   0xd   :  { %6461 = dma.done.wait [#allocation6], 8192  }
   0xe   :  { %6462 = vsyncadd [#allocation6], 4294959104  ;;  %vm83_vm0 = vcmask 1043456   ;;  %v6529_v0 = vld [vmem:[#allocation2] sm:$0xf]  ;;  %v73_v1 = vld [vmem:[%s7189_s0] sm:$0xff]  ;;  %v140_v4 = vlaneseq }
   0xf   :  { %v74_v2 = vld [vmem:[%s7190_s1] sm:$0xff]  ;;  %vm79_vm1 = vcmask 31744   ;;  %6093 = vmatpush.msk.msra.mxu0 %vm83_vm0, %v6529_v0  ;;  %vm189_vm2 = vcmask 64512   ;;  %s6471_s1 = smov 116   ;;  %vm272_vm3 = vcmask 1041409   ;;  %vm274_vm4 = vcmask 1042434  }
  0x10   :  { %v6539_v3 = vadd.f32 %v74_v2, %v73_v1  ;;  %v141_v5 = vshrl.u32 %v140_v4, 7  ;;  %v6547_v6 = vld [vmem:[%s7192_s3] ss:$0 sm:$0xff]  ;;  %vm276_vm5 = vcmask 1043459   ;;  %s6472_s21 = smov 112   ;;  %s6473_s22 = smov 108  }
  0x11   :  { %vm481_vm7 = vcmask 1041408   ;;  %s6475_s23 = smov 104   ;;  %s6476_s24 = smov 100  }
  0x12   :  { %6094 = vmatmul.msk.f32.vlgmr.msra.gmra.mxu0 %vm79_vm1, %v6539_v3  ;;  %6233 = vset.pattern.permute.xlu2 %v141_v5  ;;  %s6477_s27 = smov 96   ;;  %s6478_s2 = smov 124  }
  0x13   :  { %6232 = vset.pattern.permute.xlu1 %v141_v5  ;;  %s6479_s18 = smov [#allocation8]   ;;  %s6082_s0 = sshll.u32 %s7196_s7, 4  ;;  %s6083_s0 = int_to_ptr.hbm [resolvable:$true] %s6082_s0 }
  0x14   :  { %s6080_s19 = sshll.u32 %s6479_s18, 4  ;;  %s6081_s19 = int_to_ptr.vmem [resolvable:$true] %s6080_s19 }
  0x8f   :  { %v104_v7 = vpop.f32.mrf.mxu0 }
  0x90   :  { %v105_v8 = vadd.f32 %v6547_v6, %v104_v7 }
  0x92   :  { %107 = vxpose.xlu0.b32.start.end [1/1] (short) (narrow) %v105_v8, 16 }
  0xf9   :  { %6231 = vset.pattern.permute.xlu0 %v141_v5 }
 0x136   :  { %v123_v9 = vpop.trf.xlu0 }
 0x137   :  { %168 = vst [vmem:[#allocation1] sm:$0xff] %v123_v9  ;;  %v160_v10 = vperm.slane %v123_v9, 3  ;;  %v146_v11 = vperm.slane %v123_v9, 1  ;;  %v139_v12 = vperm.slane %v123_v9, 0  ;;  %v153_v13 = vperm.slane %v123_v9, 2 }
 0x139   :  { %165 = vperm.xlu2 %6233, %v160_v10   ;;  %151 = vperm.xlu1 %6232, %v146_v11  }
 0x13a   :  { %144 = vperm.xlu0 %6231, %v139_v12  }
 0x13e   :  { %v6550_v14 = vpop.trf.xlu0  ;;  %v172_v15 = vld [vmem:[#allocation1 + $0x5] ss:$9 sm:$0xff]  ;;  %v176_v29 = vld [vmem:[#allocation1 + $0x7] ss:$9 sm:$0xff] }
 0x13f   :  { %v170_v16 = vld [vmem:[#allocation1 + $0x4] ss:$9 sm:$0xff]  ;;  %v178_v17 = vperm.slane %v172_v15, 0  ;;  %v174_v25 = vld [vmem:[#allocation1 + $0x6] ss:$9 sm:$0xff]  ;;  %v180_v32 = vperm.slane %v176_v29, 0 }
 0x140   :  { %v177_v19 = vperm.slane %v170_v16, 0  ;;  %v179_v26 = vperm.slane %v174_v25, 0  ;;  %v230_v53 = vperm.slane %v6550_v14, 0  ;;  %v228_v55 = vrot.slane %v6550_v14, 2 }
 0x141   :  { %158 = vperm.xlu1 %6232, %v153_v13   ;;  %v227_v56 = vrot.slane %v6550_v14, 1  ;;  %v229_v1 = vrot.slane %v6550_v14, 3 }
 0x142   :  { %v232_v60 = vperm.slane %v228_v55, 0 }
 0x143   :  { %v231_v61 = vperm.slane %v227_v56, 0  ;;  %v233_v7 = vperm.slane %v229_v1, 0 }
 0x193   :  { %v166_v31 = vpop.permute.xlu2 %165 }
 0x194   :  { %v188_v33 = vmul.f32 %v180_v32, %v166_v31 }
 0x196   :  { %v199_v34 = vsel %vm189_vm2, %v188_v33, -inf }
 0x1ab   :  { %v152_v18 = vpop.permute.xlu1 %151 }
 0x1ac   :  { %v186_v20 = vmul.f32 %v178_v17, %v152_v18  ;;  %v145_v21 = vpop.permute.xlu0 %144 }
 0x1ad   :  { %v185_v22 = vmul.f32 %v177_v19, %v145_v21 }
 0x1ae   :  { %v193_v23 = vsel %vm189_vm2, %v186_v20, -inf }
 0x1af   :  { %194 = vmax.xlane.f32.xlu1 %v193_v23  ;;  %v190_v24 = vsel %vm189_vm2, %v185_v22, -inf }
 0x1b0   :  { %191 = vmax.xlane.f32.xlu2 %v190_v24 }
 0x1b3   :  { %v159_v27 = vpop.permute.xlu1 %158 }
 0x1b4   :  { %v187_v28 = vmul.f32 %v179_v26, %v159_v27 }
 0x1b6   :  { %v196_v30 = vsel %vm189_vm2, %v187_v28, -inf }
 0x1b8   :  { %197 = vmax.xlane.f32.xlu2 %v196_v30 }
 0x1c0   :  { %200 = vmax.xlane.f32.xlu2 %v199_v34 }
 0x222   :  { %v195_v35 = vpop.xlane.xlu1 %194 }
 0x223   :  { %v203_v36 = vsub.f32 %v186_v20, %v195_v35  ;;  %v192_v37 = vpop.xlane.xlu2 %191 }
 0x224   :  { %v202_v38 = vsub.f32 %v185_v22, %v192_v37 }
 0x225   :  { %v208_v39 = vmul.f32 1.442695, %v203_v36 }
 0x226   :  { %v206_v40 = vmul.f32 1.442695, %v202_v38 }
 0x227   :  { %6240 = vpow2.f32 %v208_v39  ;;  %v6474_v39 = vmov 4.0  }
 0x228   :  { %6242 = vpow2.f32 %v206_v40 }
 0x22b   :  { %v198_v41 = vpop.xlane.xlu2 %197 }
 0x22c   :  { %v204_v42 = vsub.f32 %v187_v28, %v198_v41 }
 0x22d   :  { %v6241_v43 = vpop.eup %6240 }
 0x22e   :  { %v6243_v44 = vpop.eup %6242  ;;  %v210_v45 = vmul.f32 1.442695, %v204_v42  ;;  %v217_v46 = vsel %vm189_vm2, %v6241_v43, 0.0  ;;  %v239_v63 = vmul.f32 %v6241_v43, %v231_v61 }
 0x22f   :  { %218 = vadd.xlane.f32.xlu2 %v217_v46  ;;  %v214_v47 = vsel %vm189_vm2, %v6243_v44, 0.0  ;;  %v238_v54 = vmul.f32 %v6243_v44, %v230_v53 }
 0x230   :  { %6244 = vpow2.f32 %v210_v45  ;;  %215 = vadd.xlane.f32.xlu1 %v214_v47  ;;  %v245_v5 = vsel %vm189_vm2, %v239_v63, 0.0 }
 0x231   :  { %v242_v58 = vsel %vm189_vm2, %v238_v54, 0.0 }
 0x233   :  { %v201_v48 = vpop.xlane.xlu2 %200 }
 0x234   :  { %v205_v49 = vsub.f32 %v188_v33, %v201_v48 }
 0x236   :  { %v6245_v50 = vpop.eup %6244  ;;  %v212_v51 = vmul.f32 1.442695, %v205_v49 }
 0x237   :  { %v220_v52 = vsel %vm189_vm2, %v6245_v50, 0.0  ;;  %v240_v62 = vmul.f32 %v6245_v50, %v232_v60  ;;  %v380_v50 = vld [vmem:[#allocation7] sm:$0x33] }
 0x238   :  { %6246 = vpow2.f32 %v212_v51  ;;  %221 = vadd.xlane.f32.xlu1 %v220_v52  ;;  %v381_v51 = vld [vmem:[#allocation7 + $0x8] sm:$0x33]  ;;  %v446_v52 = vunpack.c.l.b16 %v380_v50  ;;  %v447_v53 = vunpack.c.h.b16 %v380_v50 }
 0x239   :  { %v248_v2 = vsel %vm189_vm2, %v240_v62, 0.0  ;;  %v448_v54 = vunpack.c.l.b16 %v381_v51  ;;  %v449_v55 = vunpack.c.h.b16 %v381_v51 }
 0x23a   :  { %v462_v56 = vpack.c.b16 %v446_v52, %v446_v52 }
 0x23c   :  { %v483_v60 = vsel %vm481_vm7, %v462_v56, 0 }
 0x23d   :  { %537 = vmatpush.bf16.msra.mxu2 %v483_v60 }
 0x23e   :  { %v6247_v57 = vpop.eup %6246 }
 0x23f   :  { %v223_v59 = vsel %vm189_vm2, %v6247_v57, 0.0  ;;  %v241_v8 = vmul.f32 %v6247_v57, %v233_v7  ;;  %v463_v57 = vpack.c.b16 %v447_v53, %v447_v53 }
 0x240   :  { %243 = vadd.xlane.f32.xlu1 %v242_v58  ;;  %224 = vadd.xlane.f32.xlu2 %v223_v59  ;;  %v464_v58 = vpack.c.b16 %v448_v54, %v448_v54  ;;  %v465_v59 = vpack.c.b16 %v449_v55, %v449_v55 }
 0x241   :  { %v251_v9 = vsel %vm189_vm2, %v241_v8, 0.0  ;;  %v486_v61 = vsel %vm481_vm7, %v463_v57, 0 }
 0x242   :  { %v489_v62 = vsel %vm481_vm7, %v464_v58, 0  ;;  %v492_v63 = vsel %vm481_vm7, %v465_v59, 0  ;;  %550 = vmatpush.bf16.msra.mxu3 %v486_v61  ;;  %v388_v61 = vld [vmem:[#allocation7] sm:$0xcc] }
 0x243   :  { %563 = vmatpush.bf16.msrb.mxu0 %v489_v62  ;;  %v778_v62 = vunpack.c.l.b16 %v388_v61 }
 0x248   :  { %249 = vadd.xlane.f32.xlu1 %v248_v2  ;;  %246 = vadd.xlane.f32.xlu2 %v245_v5  ;;  %v382_v2 = vld [vmem:[#allocation7 + $0x10] sm:$0x33]  ;;  %v383_v5 = vld [vmem:[#allocation7 + $0x18] sm:$0x33] }
 0x249   :  { %v450_v8 = vunpack.c.l.b16 %v382_v2 }
 0x250   :  { %252 = vadd.xlane.f32.xlu2 %v251_v9  ;;  %v451_v9 = vunpack.c.h.b16 %v382_v2 }
 0x261   :  { %311 = vrot.lane.b32.xlu1 %v6529_v0, %s6471_s1  ;;  %v6573_v0 = vand.u32 127, %v140_v4 }
 0x269   :  { %314 = vrot.lane.b32.xlu1 %v6547_v6, %s6471_s1 }
 0x2a2   :  { %v219_v11 = vpop.xlane.xlu2 %218 }
 0x2a3   :  { %v216_v10 = vpop.xlane.xlu1 %215  ;;  %6248 = vrcp.f32 %v219_v11  ;;  %v453_v11 = vunpack.c.h.b16 %v383_v5 }
 0x2a4   :  { %6250 = vrcp.f32 %v216_v10  ;;  %v452_v10 = vunpack.c.l.b16 %v383_v5 }
 0x2a9   :  { %v6249_v15 = vpop.eup %6248 }
 0x2aa   :  { %v6251_v19 = vpop.eup %6250 }
 0x2ab   :  { %v222_v12 = vpop.xlane.xlu1 %221 }
 0x2ac   :  { %6252 = vrcp.f32 %v222_v12 }
 0x2b2   :  { %v6253_v20 = vpop.eup %6252 }
 0x2b3   :  { %v244_v13 = vpop.xlane.xlu1 %243  ;;  %v225_v14 = vpop.xlane.xlu2 %224 }
 0x2b4   :  { %6254 = vrcp.f32 %v225_v14  ;;  %v258_v21 = vmul.f32 %v6251_v19, %v244_v13  ;;  %v466_v13 = vpack.c.b16 %v450_v8, %v450_v8  ;;  %v467_v14 = vpack.c.b16 %v451_v9, %v451_v9  ;;  %v389_v8 = vld [vmem:[#allocation7 + $0x8] sm:$0xcc] }
 0x2b5   :  { %6256 = vrcp.f32 %v6474_v39  ;;  %v780_v9 = vunpack.c.l.b16 %v389_v8 }
 0x2b6   :  { %v268_v24 = vperm.slane %v258_v21, %v6573_v0 }
 0x2ba   :  { %v6255_v25 = vpop.eup %6254 }
 0x2bb   :  { %v247_v16 = vpop.xlane.xlu2 %246  ;;  %v250_v17 = vpop.xlane.xlu1 %249 }
 0x2bc   :  { %v259_v18 = vmul.f32 %v6249_v15, %v247_v16  ;;  %v260_v22 = vmul.f32 %v6253_v20, %v250_v17  ;;  %v6257_v40 = vpop.eup %6256  ;;  %v468_v15 = vpack.c.b16 %v452_v10, %v452_v10  ;;  %v469_v16 = vpack.c.b16 %v453_v11, %v453_v11 }
 0x2bd   :  { %v347_v41 = vmul.f32 4.0, %v6257_v40  ;;  %vm351_vm6 = vweird.f32 %v6257_v40  ;;  %v495_v17 = vsel %vm481_vm7, %v466_v13, 0  ;;  %v781_v10 = vunpack.c.h.b16 %v389_v8 }
 0x2be   :  { %v269_v23 = vperm.slane %v259_v18, %v6573_v0  ;;  %v270_v26 = vperm.slane %v260_v22, %v6573_v0  ;;  %v498_v18 = vsel %vm481_vm7, %v467_v14, 0  ;;  %589 = vmatpush.bf16.msrb.mxu2 %v495_v17  ;;  %v501_v19 = vsel %vm481_vm7, %v468_v15, 0  ;;  %v391_v15 = vld [vmem:[#allocation7 + $0x18] sm:$0xcc] }
 0x2bf   :  { %v348_v42 = vsub.f32 1.0, %v347_v41  ;;  %602 = vmatpush.bf16.msrb.mxu3 %v498_v18  ;;  %v504_v20 = vsel %vm481_vm7, %v469_v16, 0  ;;  %615 = vmatpush.bf16.msra.mxu0 %v501_v19  ;;  %v796_v11 = vpack.c.b16 %v780_v9, %v780_v9  ;;  %v784_v16 = vunpack.c.l.b16 %v391_v15  ;;  %v390_v18 = vld [vmem:[#allocation7 + $0x10] sm:$0xcc] }
 0x2c0   :  { %v273_v29 = vsel %vm272_vm3, %v269_v23, %v268_v24  ;;  %v785_v17 = vunpack.c.h.b16 %v391_v15  ;;  %v394_v15 = vld [vmem:[#allocation7 + $0x30] sm:$0xcc] }
 0x2c1   :  { %v275_v4 = vsel %vm274_vm4, %v270_v26, %v273_v29  ;;  %v349_v43 = vmul.f32 %v6257_v40, %v348_v42  ;;  %v384_v26 = vld [vmem:[#allocation7 + $0x20] sm:$0x33]  ;;  %v812_v13 = vrot.slane %v796_v11, 2  ;;  %v800_v19 = vpack.c.b16 %v784_v16, %v784_v16 }
 0x2c3   :  { %v253_v27 = vpop.xlane.xlu2 %252  ;;  %v350_v44 = vadd.f32 %v6257_v40, %v349_v43 }
 0x2c4   :  { %v261_v28 = vmul.f32 %v6255_v25, %v253_v27 }
 0x2c5   :  { %v6590_v45 = vsel %vm351_vm6, %v6257_v40, %v350_v44 }
 0x2c6   :  { %v271_v30 = vperm.slane %v261_v28, %v6573_v0  ;;  %v385_v28 = vld [vmem:[#allocation7 + $0x28] sm:$0x33] }
 0x2c8   :  { %v277_v31 = vsel %vm276_vm5, %v271_v30, %v275_v4  ;;  %v454_v4 = vunpack.c.l.b16 %v384_v26 }
 0x2c9   :  { %279 = vxpose.xlu2.b32.start.end [1/1] (short) (narrow) %v277_v31, 8  ;;  %v455_v31 = vunpack.c.h.b16 %v384_v26 }
 0x2d3   :  { %v312_v32 = vpop.permute.xlu1 %311 }
 0x2d4   :  { %6095 = vmatpush.msk.msra.mxu1 %vm83_vm0, %v312_v32 }
 0x2d6   :  { %576 = vmatpush.bf16.msrb.mxu1 %v492_v63  ;;  %v779_v63 = vunpack.c.h.b16 %v388_v61 }
 0x2d8   :  { %v795_v2 = vpack.c.b16 %v779_v63, %v779_v63 }
 0x2db   :  { %v315_v34 = vpop.permute.xlu1 %314 }
 0x332   :  { %372 = vrot.lane.b32.xlu2 %v6547_v6, %s6472_s21 }
 0x362   :  { %v295_v33 = vpop.trf.xlu2 }
 0x363   :  { %6096 = vmatmul.msk.f32.vlgmr.msra.gmra.mxu1 %vm79_vm1, %v295_v33  ;;  %v456_v33 = vunpack.c.l.b16 %v385_v28 }
 0x364   :  { %628 = vmatpush.bf16.msra.mxu1 %v504_v20  ;;  %v801_v20 = vpack.c.b16 %v785_v17, %v785_v17 }
 0x365   :  { %v472_v40 = vpack.c.b16 %v456_v33, %v456_v33 }
 0x38c   :  { %v373_v30 = vpop.permute.xlu2 %372 }
 0x3e0   :  { %v339_v35 = vpop.f32.mrf.mxu1 }
 0x3e1   :  { %v340_v36 = vadd.f32 %v339_v35, %v315_v34  ;;  %v457_v34 = vunpack.c.h.b16 %v385_v28 }
 0x3e3   :  { %v342_v37 = vadd.f32 %v340_v36, %v6539_v3  ;;  %v473_v41 = vpack.c.b16 %v457_v34, %v457_v34 }
 0x3e5   :  { %v343_v38 = vsel %vm79_vm1, %v342_v37, 0.0 }
 0x3e6   :  { %344 = vadd.xlane.f32.xlu1 %v343_v38  ;;  %v471_v38 = vpack.c.b16 %v455_v31, %v455_v31  ;;  %v393_v31 = vld [vmem:[#allocation7 + $0x28] sm:$0xcc] }
 0x3e7   :  { %v789_v33 = vunpack.c.h.b16 %v393_v31 }
 0x3e8   :  { %v510_v44 = vsel %vm481_vm7, %v471_v38, 0 }
 0x3ff   :  { %376 = vrot.lane.b32.xlu1 %v6547_v6, %s6473_s22 }
 0x459   :  { %v345_v46 = vpop.xlane.xlu1 %344 }
 0x45a   :  { %v353_v3 = vmul.f32 %v6590_v45, %v345_v46  ;;  %v513_v46 = vsel %vm481_vm7, %v472_v40, 0 }
 0x45c   :  { %v354_v47 = vsub.f32 %v342_v37, %v353_v3  ;;  %v470_v37 = vpack.c.b16 %v454_v4, %v454_v4  ;;  %v516_v3 = vsel %vm481_vm7, %v473_v41, 0  ;;  %v805_v41 = vpack.c.b16 %v789_v33, %v789_v33 }
 0x45e   :  { %v355_v48 = vmul.f32 %v354_v47, %v354_v47  ;;  %v507_v43 = vsel %vm481_vm7, %v470_v37, 0 }
 0x460   :  { %v356_v49 = vsel %vm79_vm1, %v355_v48, 0.0  ;;  %v387_v48 = vld [vmem:[#allocation7 + $0x38] sm:$0x33] }
 0x461   :  { %357 = vadd.xlane.f32.xlu0 %v356_v49  ;;  %v460_v51 = vunpack.c.l.b16 %v387_v48  ;;  %v461_v52 = vunpack.c.h.b16 %v387_v48 }
 0x463   :  { %v476_v55 = vpack.c.b16 %v460_v51, %v460_v51  ;;  %v477_v56 = vpack.c.b16 %v461_v52, %v461_v52  ;;  %v821_v51 = vrot.slane %v805_v41, 2 }
 0x465   :  { %v525_v59 = vsel %vm481_vm7, %v476_v55, 0  ;;  %v528_v60 = vsel %vm481_vm7, %v477_v56, 0 }
 0x471   :  { %v377_v35 = vpop.permute.xlu1 %376 }
 0x475   :  { %842 = vrot.lane.b32.xlu0 %v6547_v6, %s6475_s23 }
 0x4d4   :  { %v358_v1 = vpop.xlane.xlu0 %357 }
 0x4d5   :  { %v359_v7 = vmul.f32 %v358_v1, %v6590_v45  ;;  %v794_v1 = vpack.c.b16 %v778_v62, %v778_v62 }
 0x4d7   :  { %v360_v12 = vadd.f32 1e-05, %v359_v7  ;;  %v810_v5 = vrot.slane %v794_v1, 2  ;;  %v811_v7 = vrot.slane %v795_v2, 2 }
 0x4d9   :  { %6258 = vrsqrt.f32 %v360_v12  ;;  %vm367_vm9 = vweird.f32 %v360_v12 }
 0x4df   :  { %v6259_v21 = vpop.eup %6258 }
 0x4e0   :  { %v362_v22 = vmul.f32 %v6259_v21, %v360_v12  ;;  %vm368_vm8 = vweird.f32 %v6259_v21  ;;  %v797_v12 = vpack.c.b16 %v781_v10, %v781_v10 }
 0x4e1   :  { %vm369_vm10 = vmor %vm367_vm9, %vm368_vm8 }
 0x4e2   :  { %v363_v23 = vmul.f32 %v6259_v21, %v362_v22  ;;  %v813_v14 = vrot.slane %v797_v12, 2  ;;  %v783_v22 = vunpack.c.h.b16 %v390_v18 }
 0x4e4   :  { %v364_v24 = vmul.f32 0.5, %v363_v23  ;;  %v816_v23 = vrot.slane %v800_v19, 2  ;;  %v799_v26 = vpack.c.b16 %v783_v22, %v783_v22  ;;  %v790_v22 = vunpack.c.l.b16 %v394_v15 }
 0x4e6   :  { %v365_v25 = vsub.f32 1.5, %v364_v24  ;;  %v817_v24 = vrot.slane %v801_v20, 2  ;;  %v815_v28 = vrot.slane %v799_v26, 2 }
 0x4e8   :  { %v366_v27 = vmul.f32 %v6259_v21, %v365_v25 }
 0x4ea   :  { %v370_v29 = vsel %vm369_vm10, %v6259_v21, %v366_v27  ;;  %v782_v21 = vunpack.c.l.b16 %v390_v18 }
 0x4eb   :  { %v371_v32 = vmul.f32 %v370_v29, %v354_v47  ;;  %v386_v47 = vld [vmem:[#allocation7 + $0x30] sm:$0x33] }
 0x4ec   :  { %v458_v49 = vunpack.c.l.b16 %v386_v47  ;;  %v459_v50 = vunpack.c.h.b16 %v386_v47  ;;  %v798_v25 = vpack.c.b16 %v782_v21, %v782_v21  ;;  %v397_v29 = vld [vmem:[#allocation5] ss:$8 sm:$0xf] }
 0x4ed   :  { %v375_v36 = vmul.f32 %v373_v30, %v371_v32  ;;  %v398_v30 = vld [vmem:[#allocation5] ss:$8 sm:$0xf0]  ;;  %v788_v32 = vunpack.c.l.b16 %v393_v31 }
 0x4ee   :  { %v474_v53 = vpack.c.b16 %v458_v49, %v458_v49  ;;  %v475_v54 = vpack.c.b16 %v459_v50, %v459_v50  ;;  %v814_v27 = vrot.slane %v798_v25, 2  ;;  %v6633_v4 = vor.u32 %v398_v30, %v397_v29 }
 0x4ef   :  { %v6603_v39 = vadd.f32 %v377_v35, %v375_v36  ;;  %v392_v36 = vld [vmem:[#allocation7 + $0x20] sm:$0xcc]  ;;  %v804_v40 = vpack.c.b16 %v788_v32, %v788_v32 }
 0x4f0   :  { %v519_v57 = vsel %vm481_vm7, %v474_v53, 0  ;;  %v522_v58 = vsel %vm481_vm7, %v475_v54, 0  ;;  %v408_v34 = vperm.slane %v6633_v4, 2  ;;  %v409_v35 = vperm.slane %v6633_v4, 3 }
 0x4f1   :  { %v396_v42 = vpack.c.bf16 %v6603_v39, %v6603_v39  ;;  %v407_v47 = vperm.slane %v6633_v4, 1  ;;  %v820_v50 = vrot.slane %v804_v40, 2  ;;  %v411_v25 = vperm.slane %v6633_v4, 5  ;;  %v402_v40 = vld [vmem:[#allocation5 + $0x40] ss:$8 sm:$0xf0] }
 0x4f3   :  { %6097 = vmatmul.msk.bf16.vlgmr.msra.gmra.mxu2 %vm79_vm1, %v396_v42  ;;  %6098 = vmatmul.msk.bf16.vlgmr.msra.gmra.mxu3 %vm79_vm1, %v396_v42 }
 0x4f4   :  { %6099 = vmatmul.msk.bf16.vlgmr.msrb.gmra.mxu0 %vm79_vm1, %v396_v42  ;;  %6100 = vmatmul.msk.bf16.vlgmr.msrb.gmra.mxu1 %vm79_vm1, %v396_v42 }
 0x4f5   :  { %641 = vmatpush.bf16.msra.mxu2 %v507_v43  ;;  %654 = vmatpush.bf16.msra.mxu3 %v510_v44  ;;  %v786_v44 = vunpack.c.l.b16 %v392_v36 }
 0x4f6   :  { %667 = vmatpush.bf16.msrb.mxu0 %v513_v46  ;;  %680 = vmatpush.bf16.msrb.mxu1 %v516_v3  ;;  %v787_v46 = vunpack.c.h.b16 %v392_v36  ;;  %v406_v3 = vperm.slane %v6633_v4, 0 }
 0x4f7   :  { %v802_v56 = vpack.c.b16 %v786_v44, %v786_v44 }
 0x4f9   :  { %v818_v1 = vrot.slane %v802_v56, 2 }
 0x503   :  { %6101 = vmatmul.msk.bf16.vlgmr.msrb.gmra.mxu2 %vm79_vm1, %v396_v42  ;;  %6102 = vmatmul.msk.bf16.vlgmr.msrb.gmra.mxu3 %vm79_vm1, %v396_v42 }
 0x504   :  { %6103 = vmatmul.msk.bf16.vlgmr.msra.gmra.mxu0 %vm79_vm1, %v396_v42  ;;  %6104 = vmatmul.msk.bf16.vlgmr.msra.gmra.mxu1 %vm79_vm1, %v396_v42 }
 0x505   :  { %693 = vmatpush.bf16.msrb.mxu2 %v519_v57  ;;  %706 = vmatpush.bf16.msrb.mxu3 %v522_v58  ;;  %v803_v57 = vpack.c.b16 %v787_v46, %v787_v46 }
 0x506   :  { %719 = vmatpush.bf16.msra.mxu0 %v525_v59  ;;  %732 = vmatpush.bf16.msra.mxu1 %v528_v60 }
 0x507   :  { %v819_v2 = vrot.slane %v803_v57, 2 }
 0x513   :  { %6105 = vmatmul.msk.bf16.vlgmr.msra.gmra.mxu2 %vm79_vm1, %v396_v42  ;;  %6106 = vmatmul.msk.bf16.vlgmr.msra.gmra.mxu3 %vm79_vm1, %v396_v42 }
 0x514   :  { %6107 = vmatmul.msk.bf16.vlgmr.msrb.gmra.mxu0 %vm79_vm1, %v396_v42  ;;  %6108 = vmatmul.msk.bf16.vlgmr.msrb.gmra.mxu1 %vm79_vm1, %v396_v42 }
 0x515   :  { %852 = vmatpush.bf16.xpose.msra.mxu2 %v810_v5  ;;  %865 = vmatpush.bf16.xpose.msra.mxu3 %v811_v7  ;;  %v395_v5 = vld [vmem:[#allocation7 + $0x38] sm:$0xcc] }
 0x516   :  { %878 = vmatpush.bf16.xpose.msrb.mxu0 %v812_v13  ;;  %891 = vmatpush.bf16.xpose.msrb.mxu1 %v813_v14  ;;  %v792_v9 = vunpack.c.l.b16 %v395_v5  ;;  %v793_v10 = vunpack.c.h.b16 %v395_v5  ;;  %v412_v13 = vperm.slane %v6633_v4, 6  ;;  %v413_v14 = vperm.slane %v6633_v4, 7 }
 0x518   :  { %v808_v18 = vpack.c.b16 %v792_v9, %v792_v9  ;;  %v809_v19 = vpack.c.b16 %v793_v10, %v793_v10 }
 0x51a   :  { %v825_v29 = vrot.slane %v809_v19, 2 }
 0x523   :  { %6109 = vmatmul.msk.bf16.vlgmr.msrb.gmra.mxu2 %vm79_vm1, %v396_v42  ;;  %6110 = vmatmul.msk.bf16.vlgmr.msrb.gmra.mxu3 %vm79_vm1, %v396_v42 }
 0x524   :  { %6111 = vmatmul.msk.bf16.vlgmr.msra.gmra.mxu0 %vm79_vm1, %v396_v42  ;;  %6112 = vmatmul.msk.bf16.vlgmr.msra.gmra.mxu1 %vm79_vm1, %v396_v42 }
 0x525   :  { %930 = vmatpush.bf16.xpose.msra.mxu0 %v816_v23  ;;  %943 = vmatpush.bf16.xpose.msra.mxu1 %v817_v24  ;;  %v791_v23 = vunpack.c.h.b16 %v394_v15  ;;  %v410_v24 = vperm.slane %v6633_v4, 4 }
 0x526   :  { %904 = vmatpush.bf16.xpose.msrb.mxu2 %v814_v27  ;;  %917 = vmatpush.bf16.xpose.msrb.mxu3 %v815_v28  ;;  %v824_v28 = vrot.slane %v808_v18, 2 }
 0x571   :  { %v565_v37 = vpop.f32.mrf.mxu0  ;;  %v578_v38 = vpop.f32.mrf.mxu1 }
 0x572   :  { %v566_v42 = vadd.f32 %v565_v37, %v408_v34  ;;  %v579_v43 = vadd.f32 %v578_v38, %v409_v35  ;;  %v806_v34 = vpack.c.b16 %v790_v22, %v790_v22  ;;  %v807_v35 = vpack.c.b16 %v791_v23, %v791_v23  ;;  %v401_v38 = vld [vmem:[#allocation5 + $0x40] ss:$8 sm:$0xf] }
 0x573   :  { %v403_v44 = vor.u32 %v402_v40, %v401_v38 }
 0x574   :  { %v740_v48 = vmax.f32 %v566_v42, 0.0  ;;  %v741_v49 = vmax.f32 %v579_v43, 0.0  ;;  %v822_v46 = vrot.slane %v806_v34, 2 }
 0x575   :  { %v414_v57 = vperm.slane %v403_v44, 0  ;;  %v420_v15 = vperm.slane %v403_v44, 6  ;;  %v419_v22 = vperm.slane %v403_v44, 5 }
 0x576   :  { %v756_v52 = vpack.c.bf16 %v740_v48, %v740_v48  ;;  %v757_v53 = vpack.c.bf16 %v741_v49, %v741_v49  ;;  %v539_v54 = vpop.f32.mrf.mxu2  ;;  %v552_v55 = vpop.f32.mrf.mxu3 }
 0x577   :  { %v540_v58 = vadd.f32 %v539_v54, %v406_v3  ;;  %v553_v59 = vadd.f32 %v552_v55, %v407_v47  ;;  %v823_v3 = vrot.slane %v807_v35, 2 }
 0x578   :  { %879 = vmatmul.bf16.vlgmr.msrb.gmra.mxu0 %v756_v52  ;;  %892 = vmatmul.bf16.vlgmr.msrb.gmra.mxu1 %v757_v53  ;;  %v417_v52 = vperm.slane %v403_v44, 3 }
 0x579   :  { %v738_v60 = vmax.f32 %v540_v58, 0.0  ;;  %v739_v61 = vmax.f32 %v553_v59, 0.0  ;;  %v567_v62 = vpop.f32.mrf.mxu0  ;;  %v580_v63 = vpop.f32.mrf.mxu1  ;;  %982 = vmatpush.bf16.xpose.msrb.mxu0 %v820_v50  ;;  %995 = vmatpush.bf16.xpose.msrb.mxu1 %v821_v51  ;;  %v416_v51 = vperm.slane %v403_v44, 2  ;;  %v415_v58 = vperm.slane %v403_v44, 1 }
 0x57b   :  { %v754_v7 = vpack.c.bf16 %v738_v60, %v738_v60  ;;  %v755_v8 = vpack.c.bf16 %v739_v61, %v739_v61 }
 0x57d   :  { %853 = vmatmul.bf16.vlgmr.msra.gmra.mxu2 %v754_v7  ;;  %866 = vmatmul.bf16.vlgmr.msra.gmra.mxu3 %v755_v8 }
 0x57e   :  { %v541_v11 = vpop.f32.mrf.mxu2  ;;  %v554_v12 = vpop.f32.mrf.mxu3  ;;  %956 = vmatpush.bf16.xpose.msra.mxu2 %v818_v1  ;;  %969 = vmatpush.bf16.xpose.msra.mxu3 %v819_v2 }
 0x581   :  { %v617_v16 = vpop.f32.mrf.mxu0  ;;  %v630_v17 = vpop.f32.mrf.mxu1 }
 0x582   :  { %v618_v20 = vadd.f32 %v617_v16, %v412_v13  ;;  %v631_v21 = vadd.f32 %v630_v17, %v413_v14  ;;  %v421_v16 = vperm.slane %v403_v44, 7 }
 0x584   :  { %v744_v26 = vmax.f32 %v618_v20, 0.0  ;;  %v745_v27 = vmax.f32 %v631_v21, 0.0  ;;  %v418_v21 = vperm.slane %v403_v44, 4 }
 0x586   :  { %v760_v30 = vpack.c.bf16 %v744_v26, %v744_v26  ;;  %v761_v31 = vpack.c.bf16 %v745_v27, %v745_v27  ;;  %v591_v32 = vpop.f32.mrf.mxu2  ;;  %v604_v33 = vpop.f32.mrf.mxu3 }
 0x587   :  { %v592_v36 = vadd.f32 %v591_v32, %v410_v24  ;;  %v605_v37 = vadd.f32 %v604_v33, %v411_v25 }
 0x588   :  { %931 = vmatmul.bf16.vlgmr.msra.gmra.mxu0 %v760_v30  ;;  %944 = vmatmul.bf16.vlgmr.msra.gmra.mxu1 %v761_v31 }
 0x589   :  { %v742_v41 = vmax.f32 %v592_v36, 0.0  ;;  %v743_v42 = vmax.f32 %v605_v37, 0.0  ;;  %v619_v43 = vpop.f32.mrf.mxu0  ;;  %v632_v4 = vpop.f32.mrf.mxu1  ;;  %1034 = vmatpush.bf16.xpose.msra.mxu0 %v824_v28  ;;  %1047 = vmatpush.bf16.xpose.msra.mxu1 %v825_v29 }
 0x58b   :  { %v758_v47 = vpack.c.bf16 %v742_v41, %v742_v41  ;;  %v759_v48 = vpack.c.bf16 %v743_v42, %v743_v42 }
 0x58d   :  { %905 = vmatmul.bf16.vlgmr.msrb.gmra.mxu2 %v758_v47  ;;  %918 = vmatmul.bf16.vlgmr.msrb.gmra.mxu3 %v759_v48 }
 0x58e   :  { %v593_v49 = vpop.f32.mrf.mxu2  ;;  %v606_v50 = vpop.f32.mrf.mxu3  ;;  %1008 = vmatpush.bf16.xpose.msrb.mxu2 %v822_v46  ;;  %1021 = vmatpush.bf16.xpose.msrb.mxu3 %v823_v3 }
 0x58f   :  { %v843_v46 = vpop.permute.xlu0 %842 }
 0x591   :  { %v669_v53 = vpop.f32.mrf.mxu0  ;;  %v682_v54 = vpop.f32.mrf.mxu1 }
 0x592   :  { %v670_v55 = vadd.f32 %v669_v53, %v416_v51  ;;  %v683_v56 = vadd.f32 %v682_v54, %v417_v52 }
 0x594   :  { %v748_v59 = vmax.f32 %v670_v55, 0.0  ;;  %v749_v60 = vmax.f32 %v683_v56, 0.0 }
 0x596   :  { %v764_v61 = vpack.c.bf16 %v748_v59, %v748_v59  ;;  %v765_v62 = vpack.c.bf16 %v749_v60, %v749_v60  ;;  %v643_v63 = vpop.f32.mrf.mxu2  ;;  %v656_v1 = vpop.f32.mrf.mxu3 }
 0x597   :  { %v644_v2 = vadd.f32 %v643_v63, %v414_v57  ;;  %v657_v5 = vadd.f32 %v656_v1, %v415_v58 }
 0x598   :  { %983 = vmatmul.bf16.vlgmr.msrb.gmra.mxu0 %v764_v61  ;;  %996 = vmatmul.bf16.vlgmr.msrb.gmra.mxu1 %v765_v62 }
 0x599   :  { %v746_v7 = vmax.f32 %v644_v2, 0.0  ;;  %v747_v8 = vmax.f32 %v657_v5, 0.0  ;;  %v671_v9 = vpop.f32.mrf.mxu0  ;;  %v684_v10 = vpop.f32.mrf.mxu1 }
 0x59b   :  { %v762_v11 = vpack.c.bf16 %v746_v7, %v746_v7  ;;  %v763_v12 = vpack.c.bf16 %v747_v8, %v747_v8 }
 0x59d   :  { %957 = vmatmul.bf16.vlgmr.msra.gmra.mxu2 %v762_v11  ;;  %970 = vmatmul.bf16.vlgmr.msra.gmra.mxu3 %v763_v12 }
 0x59e   :  { %v645_v13 = vpop.f32.mrf.mxu2  ;;  %v658_v14 = vpop.f32.mrf.mxu3 }
 0x5a1   :  { %v721_v17 = vpop.f32.mrf.mxu0  ;;  %v734_v18 = vpop.f32.mrf.mxu1 }
 0x5a2   :  { %v722_v19 = vadd.f32 %v721_v17, %v420_v15  ;;  %v735_v20 = vadd.f32 %v734_v18, %v421_v16 }
 0x5a4   :  { %v752_v23 = vmax.f32 %v722_v19, 0.0  ;;  %v753_v24 = vmax.f32 %v735_v20, 0.0 }
 0x5a6   :  { %v768_v25 = vpack.c.bf16 %v752_v23, %v752_v23  ;;  %v769_v26 = vpack.c.bf16 %v753_v24, %v753_v24  ;;  %v695_v27 = vpop.f32.mrf.mxu2  ;;  %v708_v28 = vpop.f32.mrf.mxu3 }
 0x5a7   :  { %v696_v29 = vadd.f32 %v695_v27, %v418_v21  ;;  %v709_v30 = vadd.f32 %v708_v28, %v419_v22 }
 0x5a8   :  { %1035 = vmatmul.bf16.vlgmr.msra.gmra.mxu0 %v768_v25  ;;  %1048 = vmatmul.bf16.vlgmr.msra.gmra.mxu1 %v769_v26 }
 0x5a9   :  { %v750_v31 = vmax.f32 %v696_v29, 0.0  ;;  %v751_v32 = vmax.f32 %v709_v30, 0.0  ;;  %v723_v33 = vpop.f32.mrf.mxu0  ;;  %v736_v34 = vpop.f32.mrf.mxu1 }
 0x5ab   :  { %v766_v35 = vpack.c.bf16 %v750_v31, %v750_v31  ;;  %v767_v36 = vpack.c.bf16 %v751_v32, %v751_v32 }
 0x5ad   :  { %1009 = vmatmul.bf16.vlgmr.msrb.gmra.mxu2 %v766_v35  ;;  %1022 = vmatmul.bf16.vlgmr.msrb.gmra.mxu3 %v767_v36  ;;  %v6362_v35 = vld [vmem:[%s7192_s3] ss:$0 sm:$0xff] }
 0x5ae   :  { %v697_v37 = vpop.f32.mrf.mxu2  ;;  %v710_v38 = vpop.f32.mrf.mxu3 }
 0x5f5   :  { %v880_v40 = vpop.f32.mrf.mxu0  ;;  %v893_v41 = vpop.f32.mrf.mxu1 }
 0x5fd   :  { %v882_v42 = vpop.f32.mrf.mxu0  ;;  %v895_v43 = vpop.f32.mrf.mxu1 }
 0x600   :  { %v854_v4 = vpop.f32.mrf.mxu2  ;;  %v867_v44 = vpop.f32.mrf.mxu3 }
 0x601   :  { %v855_v48 = vadd.f32 %v854_v4, %v843_v46 }
 0x603   :  { %v868_v51 = vadd.f32 %v867_v44, %v855_v48 }
 0x605   :  { %v932_v3 = vpop.f32.mrf.mxu0  ;;  %v945_v47 = vpop.f32.mrf.mxu1  ;;  %v881_v54 = vadd.f32 %v880_v40, %v868_v51 }
 0x607   :  { %v894_v57 = vadd.f32 %v893_v41, %v881_v54 }
 0x608   :  { %v856_v49 = vpop.f32.mrf.mxu2  ;;  %v869_v50 = vpop.f32.mrf.mxu3 }
 0x609   :  { %v6665_v50 = vld [vmem:[%s7192_s3 + $0x1] ss:$0 sm:$0xff] }
 0x60d   :  { %v934_v52 = vpop.f32.mrf.mxu0  ;;  %v947_v53 = vpop.f32.mrf.mxu1 }
 0x610   :  { %v906_v55 = vpop.f32.mrf.mxu2  ;;  %v919_v56 = vpop.f32.mrf.mxu3 }
 0x611   :  { %v907_v58 = vadd.f32 %v906_v55, %v894_v57 }
 0x613   :  { %v920_v63 = vadd.f32 %v919_v56, %v907_v58 }
 0x615   :  { %v984_v59 = vpop.f32.mrf.mxu0  ;;  %v997_v60 = vpop.f32.mrf.mxu1  ;;  %v933_v1 = vadd.f32 %v932_v3, %v920_v63 }
 0x617   :  { %v946_v9 = vadd.f32 %v945_v47, %v933_v1 }
 0x618   :  { %v908_v61 = vpop.f32.mrf.mxu2  ;;  %v921_v62 = vpop.f32.mrf.mxu3 }
 0x61d   :  { %v986_v2 = vpop.f32.mrf.mxu0  ;;  %v999_v5 = vpop.f32.mrf.mxu1 }
 0x620   :  { %v958_v7 = vpop.f32.mrf.mxu2  ;;  %v971_v8 = vpop.f32.mrf.mxu3 }
 0x621   :  { %v959_v10 = vadd.f32 %v958_v7, %v946_v9 }
 0x623   :  { %v972_v13 = vadd.f32 %v971_v8, %v959_v10 }
 0x625   :  { %v1036_v11 = vpop.f32.mrf.mxu0  ;;  %v1049_v12 = vpop.f32.mrf.mxu1  ;;  %v985_v16 = vadd.f32 %v984_v59, %v972_v13 }
 0x627   :  { %v998_v19 = vadd.f32 %v997_v60, %v985_v16 }
 0x628   :  { %v960_v14 = vpop.f32.mrf.mxu2  ;;  %v973_v15 = vpop.f32.mrf.mxu3 }
 0x62d   :  { %v1038_v17 = vpop.f32.mrf.mxu0  ;;  %v1051_v18 = vpop.f32.mrf.mxu1 }
 0x630   :  { %v1010_v20 = vpop.f32.mrf.mxu2  ;;  %v1023_v21 = vpop.f32.mrf.mxu3 }
 0x631   :  { %v1011_v22 = vadd.f32 %v1010_v20, %v998_v19 }
 0x633   :  { %v1024_v23 = vadd.f32 %v1023_v21, %v1011_v22 }
 0x635   :  { %v1037_v24 = vadd.f32 %v1036_v11, %v1024_v23 }
 0x637   :  { %v1050_v25 = vadd.f32 %v1049_v12, %v1037_v24 }
 0x638   :  { %v1012_v26 = vpop.f32.mrf.mxu2  ;;  %v1025_v27 = vpop.f32.mrf.mxu3 }
 0x639   :  { %v1053_v28 = vadd.f32 %v1050_v25, %v6603_v39  ;;  %v6653_v39 = vld [vmem:[#allocation2 + $0x4] sm:$0xf] }
 0x63a   :  { %6113 = vmatpush.msk.msra.mxu2 %vm83_vm0, %v6653_v39 }
 0x63b   :  { %v1054_v29 = vsel %vm79_vm1, %v1053_v28, 0.0 }
 0x63c   :  { %1055 = vadd.xlane.f32.xlu0 %v1054_v29 }
 0x650   :  { %1076 = vrot.lane.b32.xlu0 %v6547_v6, %s6476_s24 }
 0x6af   :  { %v1056_v30 = vpop.xlane.xlu0 %1055 }
 0x6b0   :  { %v1057_v31 = vmul.f32 %v1056_v30, %v6590_v45 }
 0x6b2   :  { %v1058_v32 = vsub.f32 %v1053_v28, %v1057_v31 }
 0x6b4   :  { %v1059_v33 = vmul.f32 %v1058_v32, %v1058_v32 }
 0x6b6   :  { %v1060_v34 = vsel %vm79_vm1, %v1059_v33, 0.0 }
 0x6b7   :  { %1061 = vadd.xlane.f32.xlu1 %v1060_v34 }
 0x6c2   :  { %v1077_v46 = vpop.permute.xlu0 %1076 }
 0x6d0   :  { %1080 = vrot.lane.b32.xlu1 %v6362_v35, %s6477_s27 }
 0x72a   :  { %v1062_v6 = vpop.xlane.xlu1 %1061 }
 0x72b   :  { %v1063_v36 = vmul.f32 %v1062_v6, %v6590_v45 }
 0x72d   :  { %v1064_v37 = vadd.f32 1e-05, %v1063_v36 }
 0x72f   :  { %6260 = vrsqrt.f32 %v1064_v37  ;;  %vm1071_vm12 = vweird.f32 %v1064_v37 }
 0x735   :  { %v6261_v38 = vpop.eup %6260 }
 0x736   :  { %v1066_v40 = vmul.f32 %v6261_v38, %v1064_v37  ;;  %vm1072_vm11 = vweird.f32 %v6261_v38 }
 0x737   :  { %vm1073_vm13 = vmor %vm1071_vm12, %vm1072_vm11 }
 0x738   :  { %v1067_v41 = vmul.f32 %v6261_v38, %v1066_v40 }
 0x73a   :  { %v1068_v42 = vmul.f32 0.5, %v1067_v41 }
 0x73c   :  { %v1069_v43 = vsub.f32 1.5, %v1068_v42 }
 0x73e   :  { %v1070_v4 = vmul.f32 %v6261_v38, %v1069_v43 }
 0x740   :  { %v1074_v44 = vsel %vm1073_vm13, %v6261_v38, %v1070_v4 }
 0x741   :  { %v1075_v3 = vmul.f32 %v1074_v44, %v1058_v32 }
 0x742   :  { %v1081_v47 = vpop.permute.xlu1 %1080 }
 0x743   :  { %v1079_v48 = vmul.f32 %v1077_v46, %v1075_v3 }
 0x745   :  { %v6658_v49 = vadd.f32 %v1081_v47, %v1079_v48 }
 0x747   :  { %6114 = vmatmul.msk.f32.vlgmr.msra.gmra.mxu2 %vm79_vm1, %v6658_v49 }
 0x7ca   :  { %v1111_v51 = vpop.f32.mrf.mxu2 }
 0x7cb   :  { %v1112_v52 = vadd.f32 %v6665_v50, %v1111_v51 }
 0x7cd   :  { %1114 = vxpose.xlu2.b32.start.end [1/1] (short) (narrow) %v1112_v52, 16 }
 0x866   :  { %v1130_v53 = vpop.trf.xlu2 }
 0x867   :  { %1175 = vst [vmem:[#allocation1] sm:$0xff] %v1130_v53  ;;  %v1153_v54 = vperm.slane %v1130_v53, 1  ;;  %v1146_v55 = vperm.slane %v1130_v53, 0  ;;  %v1167_v56 = vperm.slane %v1130_v53, 3  ;;  %v1160_v57 = vperm.slane %v1130_v53, 2 }
 0x869   :  { %1158 = vperm.xlu1 %6232, %v1153_v54   ;;  %1151 = vperm.xlu0 %6231, %v1146_v55  }
 0x86e   :  { %v1179_v58 = vld [vmem:[#allocation1 + $0x5] ss:$9 sm:$0xff]  ;;  %v1183_v8 = vld [vmem:[#allocation1 + $0x7] ss:$9 sm:$0xff]  ;;  %v1131_v18 = vpop.trf.xlu2 }
 0x86f   :  { %v1177_v59 = vld [vmem:[#allocation1 + $0x4] ss:$9 sm:$0xff]  ;;  %v1185_v60 = vperm.slane %v1179_v58, 0  ;;  %v1181_v9 = vld [vmem:[#allocation1 + $0x6] ss:$9 sm:$0xff]  ;;  %v1187_v10 = vperm.slane %v1183_v8, 0 }
 0x870   :  { %v1184_v61 = vperm.slane %v1177_v59, 0  ;;  %v1186_v11 = vperm.slane %v1181_v9, 0  ;;  %v1233_v35 = vrot.slane %v1131_v18, 1  ;;  %v1236_v41 = vperm.slane %v1131_v18, 0 }
 0x871   :  { %1172 = vperm.xlu1 %6232, %v1167_v56   ;;  %1165 = vperm.xlu0 %6231, %v1160_v57   ;;  %v1235_v4 = vrot.slane %v1131_v18, 3  ;;  %v1234_v44 = vrot.slane %v1131_v18, 2 }
 0x872   :  { %v1237_v40 = vperm.slane %v1233_v35, 0 }
 0x873   :  { %v1239_v47 = vperm.slane %v1235_v4, 0  ;;  %v1238_v48 = vperm.slane %v1234_v44, 0  ;;  %v1376_v4 = vld [vmem:[#allocation7 + $0x50] sm:$0x33] }
 0x8db   :  { %v1159_v62 = vpop.permute.xlu1 %1158  ;;  %v1152_v63 = vpop.permute.xlu0 %1151 }
 0x8dc   :  { %v1193_v1 = vmul.f32 %v1185_v60, %v1159_v62  ;;  %v1192_v2 = vmul.f32 %v1184_v61, %v1152_v63 }
 0x8de   :  { %v1199_v5 = vsel %vm189_vm2, %v1193_v1, -inf  ;;  %v1196_v7 = vsel %vm189_vm2, %v1192_v2, -inf }
 0x8df   :  { %1200 = vmax.xlane.f32.xlu1 %v1199_v5  ;;  %1197 = vmax.xlane.f32.xlu0 %v1196_v7 }
 0x8e3   :  { %v1173_v12 = vpop.permute.xlu1 %1172  ;;  %v1166_v13 = vpop.permute.xlu0 %1165 }
 0x8e4   :  { %v1195_v14 = vmul.f32 %v1187_v10, %v1173_v12  ;;  %v1194_v15 = vmul.f32 %v1186_v11, %v1166_v13 }
 0x8e6   :  { %v1205_v16 = vsel %vm189_vm2, %v1195_v14, -inf  ;;  %v1202_v17 = vsel %vm189_vm2, %v1194_v15, -inf }
 0x8e7   :  { %1206 = vmax.xlane.f32.xlu0 %v1205_v16  ;;  %1203 = vmax.xlane.f32.xlu2 %v1202_v17 }
 0x8ff   :  { %1366 = vrot.lane.b32.xlu2 %v6665_v50, %s6472_s21 }
 0x907   :  { %1836 = vrot.lane.b32.xlu2 %v6665_v50, %s6475_s23 }
 0x952   :  { %v1201_v19 = vpop.xlane.xlu1 %1200  ;;  %v1198_v20 = vpop.xlane.xlu0 %1197 }
 0x953   :  { %v1209_v21 = vsub.f32 %v1193_v1, %v1201_v19  ;;  %v1208_v22 = vsub.f32 %v1192_v2, %v1198_v20 }
 0x955   :  { %v1214_v23 = vmul.f32 1.442695, %v1209_v21  ;;  %v1212_v24 = vmul.f32 1.442695, %v1208_v22 }
 0x957   :  { %6262 = vpow2.f32 %v1214_v23 }
 0x958   :  { %6264 = vpow2.f32 %v1212_v24 }
 0x95a   :  { %v1207_v25 = vpop.xlane.xlu0 %1206  ;;  %v1204_v26 = vpop.xlane.xlu2 %1203 }
 0x95b   :  { %v1211_v27 = vsub.f32 %v1195_v14, %v1207_v25  ;;  %v1210_v28 = vsub.f32 %v1194_v15, %v1204_v26 }
 0x95d   :  { %v6263_v29 = vpop.eup %6262  ;;  %v1218_v30 = vmul.f32 1.442695, %v1211_v27  ;;  %v1216_v31 = vmul.f32 1.442695, %v1210_v28 }
 0x95e   :  { %v6265_v32 = vpop.eup %6264  ;;  %v1223_v33 = vsel %vm189_vm2, %v6263_v29, 0.0  ;;  %v1245_v42 = vmul.f32 %v6263_v29, %v1237_v40  ;;  %v1374_v29 = vld [vmem:[#allocation7 + $0x40] sm:$0x33] }
 0x95f   :  { %6266 = vpow2.f32 %v1218_v30  ;;  %1224 = vadd.xlane.f32.xlu0 %v1223_v33  ;;  %v1220_v34 = vsel %vm189_vm2, %v6265_v32, 0.0  ;;  %v1244_v43 = vmul.f32 %v6265_v32, %v1236_v41  ;;  %v1375_v30 = vld [vmem:[#allocation7 + $0x48] sm:$0x33] }
 0x960   :  { %6268 = vpow2.f32 %v1216_v31  ;;  %1221 = vadd.xlane.f32.xlu1 %v1220_v34  ;;  %v1251_v46 = vsel %vm189_vm2, %v1245_v42, 0.0  ;;  %v1441_v31 = vunpack.c.l.b16 %v1374_v29  ;;  %v1443_v32 = vunpack.c.l.b16 %v1375_v30 }
 0x961   :  { %v1248_v3 = vsel %vm189_vm2, %v1244_v43, 0.0  ;;  %v1377_v43 = vld [vmem:[#allocation7 + $0x58] sm:$0x33] }
 0x962   :  { %v1457_v33 = vpack.c.b16 %v1441_v31, %v1441_v31 }
 0x964   :  { %v1477_v34 = vsel %vm481_vm7, %v1457_v33, 0 }
 0x965   :  { %v6267_v6 = vpop.eup %6266  ;;  %1531 = vmatpush.bf16.msrb.mxu0 %v1477_v34 }
 0x966   :  { %v6269_v36 = vpop.eup %6268  ;;  %v1229_v37 = vsel %vm189_vm2, %v6267_v6, 0.0  ;;  %v1247_v51 = vmul.f32 %v6267_v6, %v1239_v47  ;;  %v1442_v6 = vunpack.c.h.b16 %v1374_v29  ;;  %v1445_v47 = vunpack.c.l.b16 %v1376_v4 }
 0x967   :  { %1230 = vadd.xlane.f32.xlu0 %v1229_v37  ;;  %v1226_v38 = vsel %vm189_vm2, %v6269_v36, 0.0  ;;  %v1246_v52 = vmul.f32 %v6269_v36, %v1238_v48  ;;  %v1444_v36 = vunpack.c.h.b16 %v1375_v30  ;;  %v1446_v48 = vunpack.c.h.b16 %v1376_v4 }
 0x968   :  { %1227 = vadd.xlane.f32.xlu1 %v1226_v38  ;;  %v1257_v53 = vsel %vm189_vm2, %v1247_v51, 0.0  ;;  %v1458_v37 = vpack.c.b16 %v1442_v6, %v1442_v6 }
 0x969   :  { %v1254_v54 = vsel %vm189_vm2, %v1246_v52, 0.0  ;;  %v1460_v38 = vpack.c.b16 %v1444_v36, %v1444_v36 }
 0x96a   :  { %v1480_v40 = vsel %vm481_vm7, %v1458_v37, 0 }
 0x96b   :  { %v1486_v41 = vsel %vm481_vm7, %v1460_v38, 0  ;;  %1544 = vmatpush.bf16.msrb.mxu1 %v1480_v40  ;;  %v1383_v38 = vld [vmem:[#allocation7 + $0x48] sm:$0xcc]  ;;  %v1382_v40 = vld [vmem:[#allocation7 + $0x40] sm:$0xcc] }
 0x96f   :  { %1252 = vadd.xlane.f32.xlu0 %v1251_v46  ;;  %v1447_v46 = vunpack.c.l.b16 %v1377_v43 }
 0x970   :  { %1249 = vadd.xlane.f32.xlu1 %v1248_v3  ;;  %v1448_v3 = vunpack.c.h.b16 %v1377_v43  ;;  %v1775_v43 = vunpack.c.h.b16 %v1383_v38 }
 0x971   :  { %v1463_v52 = vpack.c.b16 %v1447_v46, %v1447_v46 }
 0x972   :  { %v1791_v46 = vpack.c.b16 %v1775_v43, %v1775_v43 }
 0x977   :  { %1258 = vadd.xlane.f32.xlu0 %v1257_v53  ;;  %v1464_v53 = vpack.c.b16 %v1448_v3, %v1448_v3 }
 0x978   :  { %1255 = vadd.xlane.f32.xlu1 %v1254_v54  ;;  %v1461_v54 = vpack.c.b16 %v1445_v47, %v1445_v47 }
 0x991   :  { %1312 = vrot.lane.b32.xlu1 %v6653_v39, %s6471_s1 }
 0x999   :  { %1315 = vrot.lane.b32.xlu1 %v6665_v50, %s6471_s1 }
 0x9d2   :  { %v1225_v55 = vpop.xlane.xlu0 %1224 }
 0x9d3   :  { %v1222_v56 = vpop.xlane.xlu1 %1221  ;;  %6270 = vrcp.f32 %v1225_v55  ;;  %v1462_v55 = vpack.c.b16 %v1446_v48, %v1446_v48  ;;  %v1807_v48 = vrot.slane %v1791_v46, 2 }
 0x9d4   :  { %6272 = vrcp.f32 %v1222_v56  ;;  %v1495_v56 = vsel %vm481_vm7, %v1463_v52, 0 }
 0x9d9   :  { %v6271_v61 = vpop.eup %6270 }
 0x9da   :  { %v1231_v57 = vpop.xlane.xlu0 %1230  ;;  %v6273_v62 = vpop.eup %6272 }
 0x9db   :  { %v1228_v58 = vpop.xlane.xlu1 %1227  ;;  %6274 = vrcp.f32 %v1231_v57  ;;  %v1498_v57 = vsel %vm481_vm7, %v1464_v53, 0 }
 0x9dc   :  { %6276 = vrcp.f32 %v1228_v58  ;;  %v1489_v58 = vsel %vm481_vm7, %v1461_v54, 0  ;;  %v1384_v54 = vld [vmem:[#allocation7 + $0x50] sm:$0xcc] }
 0x9dd   :  { %1583 = vmatpush.bf16.msra.mxu0 %v1489_v58 }
 0x9e1   :  { %v6275_v2 = vpop.eup %6274 }
 0x9e2   :  { %v1253_v59 = vpop.xlane.xlu0 %1252  ;;  %v6277_v39 = vpop.eup %6276 }
 0x9e3   :  { %v1250_v60 = vpop.xlane.xlu1 %1249  ;;  %v1265_v63 = vmul.f32 %v6271_v61, %v1253_v59  ;;  %v1492_v59 = vsel %vm481_vm7, %v1462_v55, 0  ;;  %v1776_v55 = vunpack.c.l.b16 %v1384_v54 }
 0x9e4   :  { %v1264_v1 = vmul.f32 %v6273_v62, %v1250_v60  ;;  %1596 = vmatpush.bf16.msra.mxu1 %v1492_v59  ;;  %v1385_v59 = vld [vmem:[#allocation7 + $0x58] sm:$0xcc] }
 0x9e5   :  { %v1273_v7 = vperm.slane %v1265_v63, %v6573_v0 }
 0x9e6   :  { %v1272_v8 = vperm.slane %v1264_v1, %v6573_v0 }
 0x9e8   :  { %v1276_v14 = vsel %vm272_vm3, %v1273_v7, %v1272_v8  ;;  %v1367_v8 = vpop.permute.xlu2 %1366 }
 0x9ea   :  { %v1259_v5 = vpop.xlane.xlu0 %1258 }
 0x9eb   :  { %v1267_v9 = vmul.f32 %v6275_v2, %v1259_v5  ;;  %v1256_v10 = vpop.xlane.xlu1 %1255  ;;  %v1379_v2 = vld [vmem:[#allocation7 + $0x68] sm:$0x33] }
 0x9ec   :  { %v1266_v11 = vmul.f32 %v6277_v39, %v1256_v10  ;;  %v1378_v39 = vld [vmem:[#allocation7 + $0x60] sm:$0x33]  ;;  %v1452_v10 = vunpack.c.h.b16 %v1379_v2 }
 0x9ed   :  { %v1275_v12 = vperm.slane %v1267_v9, %v6573_v0  ;;  %v1451_v9 = vunpack.c.l.b16 %v1379_v2 }
 0x9ee   :  { %v1274_v13 = vperm.slane %v1266_v11, %v6573_v0 }
 0x9f0   :  { %v1277_v15 = vsel %vm274_vm4, %v1274_v13, %v1276_v14  ;;  %v1450_v13 = vunpack.c.h.b16 %v1378_v39 }
 0x9f1   :  { %v1278_v16 = vsel %vm276_vm5, %v1275_v12, %v1277_v15  ;;  %v1449_v12 = vunpack.c.l.b16 %v1378_v39 }
 0x9f2   :  { %1280 = vxpose.xlu0.b32.start.end [1/1] (short) (narrow) %v1278_v16, 8  ;;  %v1467_v16 = vpack.c.b16 %v1451_v9, %v1451_v9 }
 0xa03   :  { %v1313_v17 = vpop.permute.xlu1 %1312 }
 0xa04   :  { %6115 = vmatpush.msk.msra.mxu3 %vm83_vm0, %v1313_v17  ;;  %v1468_v17 = vpack.c.b16 %v1452_v10, %v1452_v10  ;;  %v1386_v10 = vld [vmem:[#allocation7 + $0x60] sm:$0xcc] }
 0xa06   :  { %1570 = vmatpush.bf16.msrb.mxu3 %v1486_v41  ;;  %v1774_v41 = vunpack.c.l.b16 %v1383_v38 }
 0xa08   :  { %v1790_v4 = vpack.c.b16 %v1774_v41, %v1774_v41 }
 0xa0a   :  { %v1806_v3 = vrot.slane %v1790_v4, 2 }
 0xa0b   :  { %v1316_v19 = vpop.permute.xlu1 %1315 }
 0xa96   :  { %v1296_v18 = vpop.trf.xlu0 }
 0xa97   :  { %6116 = vmatmul.msk.f32.vlgmr.msra.gmra.mxu3 %vm79_vm1, %v1296_v18 }
 0xa98   :  { %1622 = vmatpush.bf16.msra.mxu3 %v1498_v57  ;;  %v1792_v57 = vpack.c.b16 %v1776_v55, %v1776_v55 }
 0xb1a   :  { %v1340_v20 = vpop.f32.mrf.mxu3 }
 0xb1b   :  { %v1341_v21 = vadd.f32 %v1340_v20, %v1316_v19  ;;  %v1465_v19 = vpack.c.b16 %v1449_v12, %v1449_v12  ;;  %v1466_v20 = vpack.c.b16 %v1450_v13, %v1450_v13  ;;  %v1781_v12 = vunpack.c.h.b16 %v1386_v10 }
 0xb1d   :  { %v1343_v22 = vadd.f32 %v1341_v21, %v6658_v49  ;;  %v1459_v49 = vpack.c.b16 %v1443_v32, %v1443_v32 }
 0xb1f   :  { %v1344_v23 = vsel %vm79_vm1, %v1343_v22, 0.0  ;;  %v1483_v35 = vsel %vm481_vm7, %v1459_v49, 0 }
 0xb20   :  { %1345 = vadd.xlane.f32.xlu1 %v1344_v23  ;;  %1557 = vmatpush.bf16.msrb.mxu2 %v1483_v35  ;;  %v1510_v23 = vsel %vm481_vm7, %v1468_v17, 0  ;;  %v1387_v17 = vld [vmem:[#allocation7 + $0x68] sm:$0xcc] }
 0xb24   :  { %1609 = vmatpush.bf16.msra.mxu2 %v1495_v56  ;;  %v1777_v56 = vunpack.c.h.b16 %v1384_v54 }
 0xb26   :  { %v1793_v58 = vpack.c.b16 %v1777_v56, %v1777_v56  ;;  %v1389_v56 = vld [vmem:[#allocation7 + $0x78] sm:$0xcc] }
 0xb39   :  { %1370 = vrot.lane.b32.xlu1 %v6665_v50, %s6473_s22 }
 0xb93   :  { %v1346_v24 = vpop.xlane.xlu1 %1345 }
 0xb94   :  { %v1347_v25 = vmul.f32 %v1346_v24, %v6590_v45  ;;  %v1501_v24 = vsel %vm481_vm7, %v1465_v19, 0 }
 0xb96   :  { %v1348_v26 = vsub.f32 %v1343_v22, %v1347_v25  ;;  %v1507_v22 = vsel %vm481_vm7, %v1467_v16, 0  ;;  %v1504_v25 = vsel %vm481_vm7, %v1466_v20, 0  ;;  %v1797_v20 = vpack.c.b16 %v1781_v12, %v1781_v12  ;;  %v1397_v12 = vld [vmem:[#allocation5 + $0x41] ss:$8 sm:$0xf0] }
 0xb98   :  { %v1349_v27 = vmul.f32 %v1348_v26, %v1348_v26 }
 0xb9a   :  { %v1350_v28 = vsel %vm79_vm1, %v1349_v27, 0.0  ;;  %v1380_v27 = vld [vmem:[#allocation7 + $0x70] sm:$0x33] }
 0xb9b   :  { %1351 = vadd.xlane.f32.xlu0 %v1350_v28  ;;  %v1453_v30 = vunpack.c.l.b16 %v1380_v27  ;;  %v1454_v31 = vunpack.c.h.b16 %v1380_v27 }
 0xb9d   :  { %v1469_v49 = vpack.c.b16 %v1453_v30, %v1453_v30  ;;  %v1470_v34 = vpack.c.b16 %v1454_v31, %v1454_v31  ;;  %v1813_v30 = vrot.slane %v1797_v20, 2 }
 0xb9f   :  { %v1513_v36 = vsel %vm481_vm7, %v1469_v49, 0  ;;  %v1516_v37 = vsel %vm481_vm7, %v1470_v34, 0 }
 0xbab   :  { %v1371_v14 = vpop.permute.xlu1 %1370 }
 0xc0e   :  { %v1352_v42 = vpop.xlane.xlu0 %1351 }
 0xc0f   :  { %v1353_v44 = vmul.f32 %v1352_v42, %v6590_v45  ;;  %v1772_v42 = vunpack.c.l.b16 %v1382_v40 }
 0xc11   :  { %v1354_v51 = vadd.f32 1e-05, %v1353_v44  ;;  %v1788_v44 = vpack.c.b16 %v1772_v42, %v1772_v42  ;;  %v1388_v42 = vld [vmem:[#allocation7 + $0x70] sm:$0xcc] }
 0xc13   :  { %6278 = vrsqrt.f32 %v1354_v51  ;;  %vm1361_vm15 = vweird.f32 %v1354_v51  ;;  %v1804_v47 = vrot.slane %v1788_v44, 2 }
 0xc19   :  { %v6279_v60 = vpop.eup %6278 }
 0xc1a   :  { %v1356_v61 = vmul.f32 %v6279_v60, %v1354_v51  ;;  %vm1362_vm14 = vweird.f32 %v6279_v60  ;;  %v1773_v51 = vunpack.c.h.b16 %v1382_v40 }
 0xc1b   :  { %vm1363_vm6 = vmor %vm1361_vm15, %vm1362_vm14 }
 0xc1c   :  { %v1357_v62 = vmul.f32 %v6279_v60, %v1356_v61  ;;  %v1789_v52 = vpack.c.b16 %v1773_v51, %v1773_v51  ;;  %v1808_v61 = vrot.slane %v1792_v57, 2 }
 0xc1e   :  { %v1358_v63 = vmul.f32 0.5, %v1357_v62  ;;  %v1805_v53 = vrot.slane %v1789_v52, 2  ;;  %v1779_v62 = vunpack.c.h.b16 %v1385_v59 }
 0xc20   :  { %v1359_v1 = vsub.f32 1.5, %v1358_v63  ;;  %v1809_v63 = vrot.slane %v1793_v58, 2  ;;  %v1795_v2 = vpack.c.b16 %v1779_v62, %v1779_v62 }
 0xc22   :  { %v1360_v5 = vmul.f32 %v6279_v60, %v1359_v1  ;;  %v1811_v39 = vrot.slane %v1795_v2, 2 }
 0xc24   :  { %v1364_v7 = vsel %vm1363_vm6, %v6279_v60, %v1360_v5  ;;  %v1778_v60 = vunpack.c.l.b16 %v1385_v59 }
 0xc25   :  { %v1365_v11 = vmul.f32 %v1364_v7, %v1348_v26  ;;  %v1381_v26 = vld [vmem:[#allocation7 + $0x78] sm:$0x33] }
 0xc26   :  { %v1455_v28 = vunpack.c.l.b16 %v1381_v26  ;;  %v1456_v29 = vunpack.c.h.b16 %v1381_v26  ;;  %v1794_v1 = vpack.c.b16 %v1778_v60, %v1778_v60  ;;  %v1392_v7 = vld [vmem:[#allocation5 + $0x1] ss:$8 sm:$0xf]  ;;  %v1783_v26 = vunpack.c.h.b16 %v1387_v17 }
 0xc27   :  { %v1369_v15 = vmul.f32 %v1367_v8, %v1365_v11  ;;  %v1393_v8 = vld [vmem:[#allocation5 + $0x1] ss:$8 sm:$0xf0]  ;;  %v1780_v11 = vunpack.c.l.b16 %v1386_v10 }
 0xc28   :  { %v1471_v32 = vpack.c.b16 %v1455_v28, %v1455_v28  ;;  %v1472_v33 = vpack.c.b16 %v1456_v29, %v1456_v29  ;;  %v1810_v5 = vrot.slane %v1794_v1, 2  ;;  %v6740_v9 = vor.u32 %v1393_v8, %v1392_v7 }
 0xc29   :  { %v6712_v18 = vadd.f32 %v1371_v14, %v1369_v15  ;;  %v1796_v19 = vpack.c.b16 %v1780_v11, %v1780_v11  ;;  %v1787_v1 = vunpack.c.h.b16 %v1389_v56  ;;  %v1396_v11 = vld [vmem:[#allocation5 + $0x41] ss:$8 sm:$0xf] }
 0xc2a   :  { %v1519_v35 = vsel %vm481_vm7, %v1471_v32, 0  ;;  %v1522_v6 = vsel %vm481_vm7, %v1472_v33, 0  ;;  %v1401_v13 = vperm.slane %v6740_v9, 0  ;;  %v1402_v14 = vperm.slane %v6740_v9, 1 }
 0xc2b   :  { %v1390_v21 = vpack.c.bf16 %v6712_v18, %v6712_v18  ;;  %v1403_v27 = vperm.slane %v6740_v9, 2  ;;  %v1404_v28 = vperm.slane %v6740_v9, 3  ;;  %v1812_v29 = vrot.slane %v1796_v19, 2 }
 0xc2c   :  { %v1406_v51 = vperm.slane %v6740_v9, 5  ;;  %v1407_v2 = vperm.slane %v6740_v9, 6 }
 0xc2d   :  { %6117 = vmatmul.msk.bf16.vlgmr.msrb.gmra.mxu0 %vm79_vm1, %v1390_v21  ;;  %6118 = vmatmul.msk.bf16.vlgmr.msrb.gmra.mxu1 %vm79_vm1, %v1390_v21 }
 0xc2e   :  { %6119 = vmatmul.msk.bf16.vlgmr.msrb.gmra.mxu2 %vm79_vm1, %v1390_v21  ;;  %6120 = vmatmul.msk.bf16.vlgmr.msrb.gmra.mxu3 %vm79_vm1, %v1390_v21 }
 0xc2f   :  { %1661 = vmatpush.bf16.msrb.mxu2 %v1507_v22  ;;  %1674 = vmatpush.bf16.msrb.mxu3 %v1510_v23 }
 0xc30   :  { %1635 = vmatpush.bf16.msrb.mxu0 %v1501_v24  ;;  %1648 = vmatpush.bf16.msrb.mxu1 %v1504_v25  ;;  %v1782_v25 = vunpack.c.l.b16 %v1387_v17 }
 0xc32   :  { %v1798_v34 = vpack.c.b16 %v1782_v25, %v1782_v25 }
 0xc34   :  { %v1814_v43 = vrot.slane %v1798_v34, 2 }
 0xc3d   :  { %6121 = vmatmul.msk.bf16.vlgmr.msra.gmra.mxu0 %vm79_vm1, %v1390_v21  ;;  %6122 = vmatmul.msk.bf16.vlgmr.msra.gmra.mxu1 %vm79_vm1, %v1390_v21 }
 0xc3e   :  { %6123 = vmatmul.msk.bf16.vlgmr.msra.gmra.mxu2 %vm79_vm1, %v1390_v21  ;;  %6124 = vmatmul.msk.bf16.vlgmr.msra.gmra.mxu3 %vm79_vm1, %v1390_v21 }
 0xc3f   :  { %1713 = vmatpush.bf16.msra.mxu2 %v1519_v35  ;;  %1726 = vmatpush.bf16.msra.mxu3 %v1522_v6  ;;  %v1799_v35 = vpack.c.b16 %v1783_v26, %v1783_v26 }
 0xc40   :  { %1687 = vmatpush.bf16.msra.mxu0 %v1513_v36  ;;  %1700 = vmatpush.bf16.msra.mxu1 %v1516_v37 }
 0xc41   :  { %v1815_v4 = vrot.slane %v1799_v35, 2 }
 0xc4d   :  { %6125 = vmatmul.msk.bf16.vlgmr.msrb.gmra.mxu0 %vm79_vm1, %v1390_v21  ;;  %6126 = vmatmul.msk.bf16.vlgmr.msrb.gmra.mxu1 %vm79_vm1, %v1390_v21 }
 0xc4e   :  { %6127 = vmatmul.msk.bf16.vlgmr.msrb.gmra.mxu2 %vm79_vm1, %v1390_v21  ;;  %6128 = vmatmul.msk.bf16.vlgmr.msrb.gmra.mxu3 %vm79_vm1, %v1390_v21 }
 0xc4f   :  { %1872 = vmatpush.bf16.xpose.msrb.mxu2 %v1806_v3  ;;  %1846 = vmatpush.bf16.xpose.msrb.mxu0 %v1804_v47  ;;  %v1784_v3 = vunpack.c.l.b16 %v1388_v42  ;;  %v1785_v47 = vunpack.c.h.b16 %v1388_v42 }
 0xc50   :  { %1885 = vmatpush.bf16.xpose.msrb.mxu3 %v1807_v48  ;;  %1859 = vmatpush.bf16.xpose.msrb.mxu1 %v1805_v53  ;;  %v1405_v48 = vperm.slane %v6740_v9, 4 }
 0xc51   :  { %v1800_v57 = vpack.c.b16 %v1784_v3, %v1784_v3  ;;  %v1801_v58 = vpack.c.b16 %v1785_v47, %v1785_v47 }
 0xc53   :  { %v1817_v7 = vrot.slane %v1801_v58, 2 }
 0xc5d   :  { %6129 = vmatmul.msk.bf16.vlgmr.msra.gmra.mxu0 %vm79_vm1, %v1390_v21  ;;  %6130 = vmatmul.msk.bf16.vlgmr.msra.gmra.mxu1 %vm79_vm1, %v1390_v21 }
 0xc5e   :  { %6131 = vmatmul.msk.bf16.vlgmr.msra.gmra.mxu2 %vm79_vm1, %v1390_v21  ;;  %6132 = vmatmul.msk.bf16.vlgmr.msra.gmra.mxu3 %vm79_vm1, %v1390_v21 }
 0xc5f   :  { %1898 = vmatpush.bf16.xpose.msra.mxu0 %v1808_v61  ;;  %1911 = vmatpush.bf16.xpose.msra.mxu1 %v1809_v63  ;;  %v1786_v63 = vunpack.c.l.b16 %v1389_v56 }
 0xc60   :  { %1924 = vmatpush.bf16.xpose.msra.mxu2 %v1810_v5  ;;  %1937 = vmatpush.bf16.xpose.msra.mxu3 %v1811_v39  ;;  %v1408_v5 = vperm.slane %v6740_v9, 7  ;;  %v1816_v39 = vrot.slane %v1800_v57, 2 }
 0xcaa   :  { %v1533_v15 = vpop.f32.mrf.mxu0  ;;  %v1546_v16 = vpop.f32.mrf.mxu1 }
 0xcab   :  { %v1534_v21 = vadd.f32 %v1533_v15, %v1401_v13  ;;  %v1547_v22 = vadd.f32 %v1546_v16, %v1402_v14  ;;  %v1802_v15 = vpack.c.b16 %v1786_v63, %v1786_v63  ;;  %v1803_v16 = vpack.c.b16 %v1787_v1, %v1787_v1 }
 0xcad   :  { %v1732_v23 = vmax.f32 %v1534_v21, 0.0  ;;  %v1733_v24 = vmax.f32 %v1547_v22, 0.0  ;;  %v1398_v22 = vor.u32 %v1397_v12, %v1396_v11  ;;  %v1819_v25 = vrot.slane %v1803_v16, 2 }
 0xcaf   :  { %v1748_v31 = vpack.c.bf16 %v1732_v23, %v1732_v23  ;;  %v1749_v32 = vpack.c.bf16 %v1733_v24, %v1733_v24  ;;  %v1818_v24 = vrot.slane %v1802_v15, 2  ;;  %v1416_v63 = vperm.slane %v1398_v22, 7 }
 0xcb1   :  { %v1559_v33 = vpop.f32.mrf.mxu2  ;;  %v1572_v49 = vpop.f32.mrf.mxu3  ;;  %1847 = vmatmul.bf16.vlgmr.msrb.gmra.mxu0 %v1748_v31  ;;  %1860 = vmatmul.bf16.vlgmr.msrb.gmra.mxu1 %v1749_v32 }
 0xcb2   :  { %v1560_v6 = vadd.f32 %v1559_v33, %v1403_v27  ;;  %v1573_v36 = vadd.f32 %v1572_v49, %v1404_v28  ;;  %v1535_v37 = vpop.f32.mrf.mxu0  ;;  %v1548_v38 = vpop.f32.mrf.mxu1  ;;  %1950 = vmatpush.bf16.xpose.msrb.mxu0 %v1812_v29  ;;  %1963 = vmatpush.bf16.xpose.msrb.mxu1 %v1813_v30  ;;  %v1409_v28 = vperm.slane %v1398_v22, 0  ;;  %v1410_v29 = vperm.slane %v1398_v22, 1 }
 0xcb3   :  { %v1412_v37 = vperm.slane %v1398_v22, 3 }
 0xcb4   :  { %v1734_v40 = vmax.f32 %v1560_v6, 0.0  ;;  %v1735_v41 = vmax.f32 %v1573_v36, 0.0  ;;  %v1411_v36 = vperm.slane %v1398_v22, 2 }
 0xcb6   :  { %v1750_v44 = vpack.c.bf16 %v1734_v40, %v1734_v40  ;;  %v1751_v46 = vpack.c.bf16 %v1735_v41, %v1735_v41 }
 0xcb8   :  { %1873 = vmatmul.bf16.vlgmr.msrb.gmra.mxu2 %v1750_v44  ;;  %1886 = vmatmul.bf16.vlgmr.msrb.gmra.mxu3 %v1751_v46 }
 0xcb9   :  { %v1561_v52 = vpop.f32.mrf.mxu2  ;;  %v1574_v53 = vpop.f32.mrf.mxu3  ;;  %1976 = vmatpush.bf16.xpose.msrb.mxu2 %v1814_v43  ;;  %1989 = vmatpush.bf16.xpose.msrb.mxu3 %v1815_v4 }
 0xcba   :  { %v1585_v54 = vpop.f32.mrf.mxu0  ;;  %v1598_v55 = vpop.f32.mrf.mxu1  ;;  %v1413_v52 = vperm.slane %v1398_v22, 4  ;;  %v1414_v53 = vperm.slane %v1398_v22, 5 }
 0xcbb   :  { %v1586_v59 = vadd.f32 %v1585_v54, %v1405_v48  ;;  %v1599_v60 = vadd.f32 %v1598_v55, %v1406_v51 }
 0xcbd   :  { %v1736_v61 = vmax.f32 %v1586_v59, 0.0  ;;  %v1737_v62 = vmax.f32 %v1599_v60, 0.0 }
 0xcbf   :  { %v1752_v8 = vpack.c.bf16 %v1736_v61, %v1736_v61  ;;  %v1753_v10 = vpack.c.bf16 %v1737_v62, %v1737_v62  ;;  %v1415_v62 = vperm.slane %v1398_v22, 6 }
 0xcc1   :  { %v1611_v13 = vpop.f32.mrf.mxu2  ;;  %v1624_v14 = vpop.f32.mrf.mxu3  ;;  %1899 = vmatmul.bf16.vlgmr.msra.gmra.mxu0 %v1752_v8  ;;  %1912 = vmatmul.bf16.vlgmr.msra.gmra.mxu1 %v1753_v10 }
 0xcc2   :  { %v1612_v17 = vadd.f32 %v1611_v13, %v1407_v2  ;;  %v1625_v19 = vadd.f32 %v1624_v14, %v1408_v5  ;;  %v1587_v20 = vpop.f32.mrf.mxu0  ;;  %v1600_v21 = vpop.f32.mrf.mxu1  ;;  %2002 = vmatpush.bf16.xpose.msra.mxu0 %v1816_v39  ;;  %2015 = vmatpush.bf16.xpose.msra.mxu1 %v1817_v7 }
 0xcc4   :  { %v1738_v9 = vmax.f32 %v1612_v17, 0.0  ;;  %v1739_v23 = vmax.f32 %v1625_v19, 0.0 }
 0xcc6   :  { %v1754_v26 = vpack.c.bf16 %v1738_v9, %v1738_v9  ;;  %v1755_v27 = vpack.c.bf16 %v1739_v23, %v1739_v23  ;;  %v1837_v9 = vpop.permute.xlu2 %1836 }
 0xcc8   :  { %1925 = vmatmul.bf16.vlgmr.msra.gmra.mxu2 %v1754_v26  ;;  %1938 = vmatmul.bf16.vlgmr.msra.gmra.mxu3 %v1755_v27 }
 0xcc9   :  { %v1613_v30 = vpop.f32.mrf.mxu2  ;;  %v1626_v31 = vpop.f32.mrf.mxu3  ;;  %2028 = vmatpush.bf16.xpose.msra.mxu2 %v1818_v24  ;;  %2041 = vmatpush.bf16.xpose.msra.mxu3 %v1819_v25 }
 0xcca   :  { %v1637_v32 = vpop.f32.mrf.mxu0  ;;  %v1650_v33 = vpop.f32.mrf.mxu1 }
 0xccb   :  { %v1638_v49 = vadd.f32 %v1637_v32, %v1409_v28  ;;  %v1651_v34 = vadd.f32 %v1650_v33, %v1410_v29 }
 0xccd   :  { %v1740_v35 = vmax.f32 %v1638_v49, 0.0  ;;  %v1741_v6 = vmax.f32 %v1651_v34, 0.0 }
 0xccf   :  { %v1756_v38 = vpack.c.bf16 %v1740_v35, %v1740_v35  ;;  %v1757_v40 = vpack.c.bf16 %v1741_v6, %v1741_v6 }
 0xcd1   :  { %v1663_v41 = vpop.f32.mrf.mxu2  ;;  %v1676_v42 = vpop.f32.mrf.mxu3  ;;  %1951 = vmatmul.bf16.vlgmr.msrb.gmra.mxu0 %v1756_v38  ;;  %1964 = vmatmul.bf16.vlgmr.msrb.gmra.mxu1 %v1757_v40 }
 0xcd2   :  { %v1664_v43 = vadd.f32 %v1663_v41, %v1411_v36  ;;  %v1677_v4 = vadd.f32 %v1676_v42, %v1412_v37  ;;  %v1639_v44 = vpop.f32.mrf.mxu0  ;;  %v1652_v46 = vpop.f32.mrf.mxu1 }
 0xcd4   :  { %v1742_v3 = vmax.f32 %v1664_v43, 0.0  ;;  %v1743_v47 = vmax.f32 %v1677_v4, 0.0 }
 0xcd6   :  { %v1758_v48 = vpack.c.bf16 %v1742_v3, %v1742_v3  ;;  %v1759_v51 = vpack.c.bf16 %v1743_v47, %v1743_v47 }
 0xcd8   :  { %1977 = vmatmul.bf16.vlgmr.msrb.gmra.mxu2 %v1758_v48  ;;  %1990 = vmatmul.bf16.vlgmr.msrb.gmra.mxu3 %v1759_v51 }
 0xcd9   :  { %v1665_v54 = vpop.f32.mrf.mxu2  ;;  %v1678_v55 = vpop.f32.mrf.mxu3 }
 0xcda   :  { %v1689_v56 = vpop.f32.mrf.mxu0  ;;  %v1702_v57 = vpop.f32.mrf.mxu1 }
 0xcdb   :  { %v1690_v58 = vadd.f32 %v1689_v56, %v1413_v52  ;;  %v1703_v59 = vadd.f32 %v1702_v57, %v1414_v53 }
 0xcdd   :  { %v1744_v60 = vmax.f32 %v1690_v58, 0.0  ;;  %v1745_v61 = vmax.f32 %v1703_v59, 0.0 }
 0xcdf   :  { %v1760_v1 = vpack.c.bf16 %v1744_v60, %v1744_v60  ;;  %v1761_v2 = vpack.c.bf16 %v1745_v61, %v1745_v61 }
 0xce1   :  { %v1715_v5 = vpop.f32.mrf.mxu2  ;;  %v1728_v39 = vpop.f32.mrf.mxu3  ;;  %2003 = vmatmul.bf16.vlgmr.msra.gmra.mxu0 %v1760_v1  ;;  %2016 = vmatmul.bf16.vlgmr.msra.gmra.mxu1 %v1761_v2 }
 0xce2   :  { %v1716_v7 = vadd.f32 %v1715_v5, %v1415_v62  ;;  %v1729_v8 = vadd.f32 %v1728_v39, %v1416_v63  ;;  %v1691_v10 = vpop.f32.mrf.mxu0  ;;  %v1704_v11 = vpop.f32.mrf.mxu1 }
 0xce4   :  { %v1746_v12 = vmax.f32 %v1716_v7, 0.0  ;;  %v1747_v13 = vmax.f32 %v1729_v8, 0.0 }
 0xce6   :  { %v1762_v14 = vpack.c.bf16 %v1746_v12, %v1746_v12  ;;  %v1763_v15 = vpack.c.bf16 %v1747_v13, %v1747_v13 }
 0xce8   :  { %2029 = vmatmul.bf16.vlgmr.msra.gmra.mxu2 %v1762_v14  ;;  %2042 = vmatmul.bf16.vlgmr.msra.gmra.mxu3 %v1763_v15 }
 0xce9   :  { %v1717_v16 = vpop.f32.mrf.mxu2  ;;  %v1730_v17 = vpop.f32.mrf.mxu3 }
 0xd2e   :  { %v1848_v19 = vpop.f32.mrf.mxu0  ;;  %v1861_v20 = vpop.f32.mrf.mxu1 }
 0xd2f   :  { %v1849_v25 = vadd.f32 %v1848_v19, %v1837_v9 }
 0xd31   :  { %v1862_v28 = vadd.f32 %v1861_v20, %v1849_v25 }
 0xd36   :  { %v1850_v21 = vpop.f32.mrf.mxu0  ;;  %v1863_v22 = vpop.f32.mrf.mxu1 }
 0xd3b   :  { %v1874_v23 = vpop.f32.mrf.mxu2  ;;  %v1887_v24 = vpop.f32.mrf.mxu3 }
 0xd3c   :  { %v1875_v29 = vadd.f32 %v1874_v23, %v1862_v28  ;;  %v6770_v28 = vld [vmem:[%s7192_s3 + $0x2] ss:$0 sm:$0xff] }
 0xd3e   :  { %v1900_v26 = vpop.f32.mrf.mxu0  ;;  %v1913_v27 = vpop.f32.mrf.mxu1  ;;  %v1888_v32 = vadd.f32 %v1887_v24, %v1875_v29 }
 0xd40   :  { %v1901_v34 = vadd.f32 %v1900_v26, %v1888_v32 }
 0xd42   :  { %v1914_v36 = vadd.f32 %v1913_v27, %v1901_v34 }
 0xd43   :  { %v1876_v30 = vpop.f32.mrf.mxu2  ;;  %v1889_v31 = vpop.f32.mrf.mxu3 }
 0xd46   :  { %v1902_v33 = vpop.f32.mrf.mxu0  ;;  %v1915_v49 = vpop.f32.mrf.mxu1 }
 0xd4b   :  { %v1926_v35 = vpop.f32.mrf.mxu2  ;;  %v1939_v6 = vpop.f32.mrf.mxu3 }
 0xd4c   :  { %v1927_v40 = vadd.f32 %v1926_v35, %v1914_v36 }
 0xd4e   :  { %v1952_v37 = vpop.f32.mrf.mxu0  ;;  %v1965_v38 = vpop.f32.mrf.mxu1  ;;  %v1940_v43 = vadd.f32 %v1939_v6, %v1927_v40 }
 0xd50   :  { %v1953_v46 = vadd.f32 %v1952_v37, %v1940_v43 }
 0xd52   :  { %v1966_v48 = vadd.f32 %v1965_v38, %v1953_v46 }
 0xd53   :  { %v1928_v41 = vpop.f32.mrf.mxu2  ;;  %v1941_v42 = vpop.f32.mrf.mxu3 }
 0xd56   :  { %v1954_v4 = vpop.f32.mrf.mxu0  ;;  %v1967_v44 = vpop.f32.mrf.mxu1 }
 0xd5b   :  { %v1978_v3 = vpop.f32.mrf.mxu2  ;;  %v1991_v47 = vpop.f32.mrf.mxu3 }
 0xd5c   :  { %v1979_v51 = vadd.f32 %v1978_v3, %v1966_v48 }
 0xd5e   :  { %v2004_v52 = vpop.f32.mrf.mxu0  ;;  %v2017_v53 = vpop.f32.mrf.mxu1  ;;  %v1992_v54 = vadd.f32 %v1991_v47, %v1979_v51 }
 0xd60   :  { %v2005_v57 = vadd.f32 %v2004_v52, %v1992_v54 }
 0xd62   :  { %v2018_v60 = vadd.f32 %v2017_v53, %v2005_v57 }
 0xd63   :  { %v1980_v55 = vpop.f32.mrf.mxu2  ;;  %v1993_v56 = vpop.f32.mrf.mxu3 }
 0xd66   :  { %v2006_v58 = vpop.f32.mrf.mxu0  ;;  %v2019_v59 = vpop.f32.mrf.mxu1 }
 0xd6b   :  { %v2030_v61 = vpop.f32.mrf.mxu2  ;;  %v2043_v62 = vpop.f32.mrf.mxu3 }
 0xd6c   :  { %v2031_v63 = vadd.f32 %v2030_v61, %v2018_v60 }
 0xd6e   :  { %v2044_v1 = vadd.f32 %v2043_v62, %v2031_v63 }
 0xd70   :  { %v2047_v2 = vadd.f32 %v2044_v1, %v6712_v18  ;;  %v6758_v18 = vld [vmem:[#allocation2 + $0x8] sm:$0xf] }
 0xd71   :  { %6133 = vmatpush.msk.msrb.mxu0 %vm83_vm0, %v6758_v18 }
 0xd72   :  { %v2048_v5 = vsel %vm79_vm1, %v2047_v2, 0.0 }
 0xd73   :  { %v2032_v39 = vpop.f32.mrf.mxu2  ;;  %v2045_v7 = vpop.f32.mrf.mxu3  ;;  %2049 = vadd.xlane.f32.xlu2 %v2048_v5 }
 0xd8b   :  { %2070 = vrot.lane.b32.xlu2 %v6665_v50, %s6476_s24 }
 0xde6   :  { %v2050_v8 = vpop.xlane.xlu2 %2049 }
 0xde7   :  { %v2051_v10 = vmul.f32 %v2050_v8, %v6590_v45 }
 0xde9   :  { %v2052_v11 = vsub.f32 %v2047_v2, %v2051_v10 }
 0xdeb   :  { %v2053_v12 = vmul.f32 %v2052_v11, %v2052_v11 }
 0xded   :  { %v2054_v13 = vsel %vm79_vm1, %v2053_v12, 0.0 }
 0xdee   :  { %2055 = vadd.xlane.f32.xlu1 %v2054_v13  ;;  %v2071_v23 = vpop.permute.xlu2 %2070 }
 0xe07   :  { %2074 = vrot.lane.b32.xlu1 %v6665_v50, %s6477_s27 }
 0xe61   :  { %v2056_v14 = vpop.xlane.xlu1 %2055 }
 0xe62   :  { %v2057_v15 = vmul.f32 %v2056_v14, %v6590_v45 }
 0xe64   :  { %v2058_v16 = vadd.f32 1e-05, %v2057_v15 }
 0xe66   :  { %6280 = vrsqrt.f32 %v2058_v16  ;;  %vm2065_vm9 = vweird.f32 %v2058_v16 }
 0xe6c   :  { %v6281_v17 = vpop.eup %6280 }
 0xe6d   :  { %v2060_v19 = vmul.f32 %v6281_v17, %v2058_v16  ;;  %vm2066_vm8 = vweird.f32 %v6281_v17 }
 0xe6e   :  { %vm2067_vm10 = vmor %vm2065_vm9, %vm2066_vm8 }
 0xe6f   :  { %v2061_v20 = vmul.f32 %v6281_v17, %v2060_v19 }
 0xe71   :  { %v2062_v21 = vmul.f32 0.5, %v2061_v20 }
 0xe73   :  { %v2063_v22 = vsub.f32 1.5, %v2062_v21 }
 0xe75   :  { %v2064_v9 = vmul.f32 %v6281_v17, %v2063_v22 }
 0xe77   :  { %v2068_v50 = vsel %vm2067_vm10, %v6281_v17, %v2064_v9 }
 0xe78   :  { %v2069_v24 = vmul.f32 %v2068_v50, %v2052_v11 }
 0xe79   :  { %v2075_v25 = vpop.permute.xlu1 %2074 }
 0xe7a   :  { %v2073_v26 = vmul.f32 %v2071_v23, %v2069_v24 }
 0xe7c   :  { %v6763_v27 = vadd.f32 %v2075_v25, %v2073_v26 }
 0xe7e   :  { %6134 = vmatmul.msk.f32.vlgmr.msrb.gmra.mxu0 %vm79_vm1, %v6763_v27 }
 0xefb   :  { %v2105_v29 = vpop.f32.mrf.mxu0 }
 0xefc   :  { %v2106_v30 = vadd.f32 %v6770_v28, %v2105_v29 }
 0xefe   :  { %2108 = vxpose.xlu2.b32.start.end [1/1] (short) (narrow) %v2106_v30, 16 }
 0xf97   :  { %v2124_v31 = vpop.trf.xlu2 }
 0xf98   :  { %2169 = vst [vmem:[#allocation1] sm:$0xff] %v2124_v31  ;;  %v2147_v32 = vperm.slane %v2124_v31, 1  ;;  %v2140_v33 = vperm.slane %v2124_v31, 0  ;;  %v2161_v49 = vperm.slane %v2124_v31, 3  ;;  %v2154_v34 = vperm.slane %v2124_v31, 2 }
 0xf9a   :  { %2152 = vperm.xlu1 %6232, %v2147_v32   ;;  %2145 = vperm.xlu0 %6231, %v2140_v33  }
 0xf9f   :  { %v2173_v35 = vld [vmem:[#allocation1 + $0x5] ss:$9 sm:$0xff]  ;;  %v2177_v44 = vld [vmem:[#allocation1 + $0x7] ss:$9 sm:$0xff]  ;;  %v2125_v56 = vpop.trf.xlu2 }
 0xfa0   :  { %v2171_v6 = vld [vmem:[#allocation1 + $0x4] ss:$9 sm:$0xff]  ;;  %v2179_v36 = vperm.slane %v2173_v35, 0  ;;  %v2175_v46 = vld [vmem:[#allocation1 + $0x6] ss:$9 sm:$0xff]  ;;  %v2181_v3 = vperm.slane %v2177_v44, 0 }
 0xfa1   :  { %v2178_v37 = vperm.slane %v2171_v6, 0  ;;  %v2180_v47 = vperm.slane %v2175_v46, 0  ;;  %v2227_v13 = vrot.slane %v2125_v56, 1  ;;  %v2230_v20 = vperm.slane %v2125_v56, 0 }
 0xfa2   :  { %2166 = vperm.xlu1 %6232, %v2161_v49   ;;  %2159 = vperm.xlu0 %6231, %v2154_v34   ;;  %v2229_v9 = vrot.slane %v2125_v56, 3  ;;  %v2228_v50 = vrot.slane %v2125_v56, 2 }
 0xfa3   :  { %v2231_v19 = vperm.slane %v2227_v13, 0 }
 0xfa4   :  { %v2233_v25 = vperm.slane %v2229_v9, 0  ;;  %v2232_v26 = vperm.slane %v2228_v50, 0  ;;  %v2371_v9 = vld [vmem:[#allocation7 + $0x98] sm:$0x33] }
0x100c   :  { %v2153_v38 = vpop.permute.xlu1 %2152  ;;  %v2146_v40 = vpop.permute.xlu0 %2145 }
0x100d   :  { %v2187_v41 = vmul.f32 %v2179_v36, %v2153_v38  ;;  %v2186_v42 = vmul.f32 %v2178_v37, %v2146_v40 }
0x100f   :  { %v2193_v43 = vsel %vm189_vm2, %v2187_v41, -inf  ;;  %v2190_v4 = vsel %vm189_vm2, %v2186_v42, -inf }
0x1010   :  { %2194 = vmax.xlane.f32.xlu1 %v2193_v43  ;;  %2191 = vmax.xlane.f32.xlu0 %v2190_v4 }
0x1014   :  { %v2167_v48 = vpop.permute.xlu1 %2166  ;;  %v2160_v51 = vpop.permute.xlu0 %2159 }
0x1015   :  { %v2189_v52 = vmul.f32 %v2181_v3, %v2167_v48  ;;  %v2188_v53 = vmul.f32 %v2180_v47, %v2160_v51 }
0x1017   :  { %v2199_v54 = vsel %vm189_vm2, %v2189_v52, -inf  ;;  %v2196_v55 = vsel %vm189_vm2, %v2188_v53, -inf }
0x1018   :  { %2200 = vmax.xlane.f32.xlu0 %v2199_v54  ;;  %2197 = vmax.xlane.f32.xlu2 %v2196_v55 }
0x1030   :  { %2360 = vrot.lane.b32.xlu2 %v6770_v28, %s6472_s21 }
0x1038   :  { %2830 = vrot.lane.b32.xlu2 %v6770_v28, %s6475_s23 }
0x1083   :  { %v2195_v57 = vpop.xlane.xlu1 %2194  ;;  %v2192_v58 = vpop.xlane.xlu0 %2191 }
0x1084   :  { %v2203_v59 = vsub.f32 %v2187_v41, %v2195_v57  ;;  %v2202_v60 = vsub.f32 %v2186_v42, %v2192_v58 }
0x1086   :  { %v2208_v61 = vmul.f32 1.442695, %v2203_v59  ;;  %v2206_v62 = vmul.f32 1.442695, %v2202_v60 }
0x1088   :  { %6282 = vpow2.f32 %v2208_v61 }
0x1089   :  { %6284 = vpow2.f32 %v2206_v62 }
0x108b   :  { %v2201_v63 = vpop.xlane.xlu0 %2200  ;;  %v2198_v1 = vpop.xlane.xlu2 %2197 }
0x108c   :  { %v2205_v2 = vsub.f32 %v2189_v52, %v2201_v63  ;;  %v2204_v5 = vsub.f32 %v2188_v53, %v2198_v1 }
0x108e   :  { %v6283_v39 = vpop.eup %6282  ;;  %v2212_v7 = vmul.f32 1.442695, %v2205_v2  ;;  %v2210_v8 = vmul.f32 1.442695, %v2204_v5 }
0x108f   :  { %v6285_v10 = vpop.eup %6284  ;;  %v2217_v11 = vsel %vm189_vm2, %v6283_v39, 0.0  ;;  %v2239_v21 = vmul.f32 %v6283_v39, %v2231_v19  ;;  %v2368_v39 = vld [vmem:[#allocation7 + $0x80] sm:$0x33] }
0x1090   :  { %6286 = vpow2.f32 %v2212_v7  ;;  %2218 = vadd.xlane.f32.xlu0 %v2217_v11  ;;  %v2214_v12 = vsel %vm189_vm2, %v6285_v10, 0.0  ;;  %v2238_v22 = vmul.f32 %v6285_v10, %v2230_v20  ;;  %v2435_v7 = vunpack.c.l.b16 %v2368_v39 }
0x1091   :  { %6288 = vpow2.f32 %v2210_v8  ;;  %2215 = vadd.xlane.f32.xlu1 %v2214_v12  ;;  %v2245_v23 = vsel %vm189_vm2, %v2239_v21, 0.0  ;;  %v2436_v8 = vunpack.c.h.b16 %v2368_v39 }
0x1092   :  { %v2242_v24 = vsel %vm189_vm2, %v2238_v22, 0.0  ;;  %v2451_v10 = vpack.c.b16 %v2435_v7, %v2435_v7  ;;  %v2370_v22 = vld [vmem:[#allocation7 + $0x90] sm:$0x33] }
0x1093   :  { %v2452_v11 = vpack.c.b16 %v2436_v8, %v2436_v8 }
0x1094   :  { %v2471_v12 = vsel %vm481_vm7, %v2451_v10, 0 }
0x1095   :  { %v2474_v13 = vsel %vm481_vm7, %v2452_v11, 0  ;;  %2525 = vmatpush.bf16.msrb.mxu2 %v2471_v12 }
0x1096   :  { %v6287_v14 = vpop.eup %6286  ;;  %2538 = vmatpush.bf16.msrb.mxu3 %v2474_v13 }
0x1097   :  { %v6289_v15 = vpop.eup %6288  ;;  %v2223_v16 = vsel %vm189_vm2, %v6287_v14, 0.0  ;;  %v2241_v29 = vmul.f32 %v6287_v14, %v2233_v25  ;;  %v2441_v25 = vunpack.c.l.b16 %v2371_v9 }
0x1098   :  { %2224 = vadd.xlane.f32.xlu0 %v2223_v16  ;;  %v2220_v17 = vsel %vm189_vm2, %v6289_v15, 0.0  ;;  %v2240_v30 = vmul.f32 %v6289_v15, %v2232_v26  ;;  %v2442_v26 = vunpack.c.h.b16 %v2371_v9 }
0x1099   :  { %2221 = vadd.xlane.f32.xlu1 %v2220_v17  ;;  %v2251_v31 = vsel %vm189_vm2, %v2241_v29, 0.0 }
0x109a   :  { %v2248_v32 = vsel %vm189_vm2, %v2240_v30, 0.0 }
0x10a0   :  { %2246 = vadd.xlane.f32.xlu0 %v2245_v23  ;;  %v2439_v23 = vunpack.c.l.b16 %v2370_v22 }
0x10a1   :  { %2243 = vadd.xlane.f32.xlu1 %v2242_v24  ;;  %v2440_v24 = vunpack.c.h.b16 %v2370_v22 }
0x10a2   :  { %v2455_v30 = vpack.c.b16 %v2439_v23, %v2439_v23  ;;  %v2377_v23 = vld [vmem:[#allocation7 + $0x88] sm:$0xcc] }
0x10a8   :  { %2252 = vadd.xlane.f32.xlu0 %v2251_v31  ;;  %v2456_v31 = vpack.c.b16 %v2440_v24, %v2440_v24  ;;  %v2768_v24 = vunpack.c.l.b16 %v2377_v23 }
0x10a9   :  { %2249 = vadd.xlane.f32.xlu1 %v2248_v32  ;;  %v2457_v32 = vpack.c.b16 %v2441_v25, %v2441_v25  ;;  %v2769_v25 = vunpack.c.h.b16 %v2377_v23 }
0x10c2   :  { %2306 = vrot.lane.b32.xlu1 %v6758_v18, %s6471_s1 }
0x10ca   :  { %2309 = vrot.lane.b32.xlu1 %v6770_v28, %s6471_s1 }
0x1103   :  { %v2219_v33 = vpop.xlane.xlu0 %2218 }
0x1104   :  { %v2216_v49 = vpop.xlane.xlu1 %2215  ;;  %6290 = vrcp.f32 %v2219_v33  ;;  %v2458_v33 = vpack.c.b16 %v2442_v26, %v2442_v26  ;;  %v2784_v26 = vpack.c.b16 %v2768_v24, %v2768_v24 }
0x1105   :  { %6292 = vrcp.f32 %v2216_v49  ;;  %v2483_v49 = vsel %vm481_vm7, %v2455_v30, 0 }
0x1106   :  { %2577 = vmatpush.bf16.msra.mxu2 %v2483_v49  ;;  %v2800_v30 = vrot.slane %v2784_v26, 2 }
0x110a   :  { %v6291_v37 = vpop.eup %6290 }
0x110b   :  { %v2225_v34 = vpop.xlane.xlu0 %2224  ;;  %v6293_v38 = vpop.eup %6292 }
0x110c   :  { %v2222_v35 = vpop.xlane.xlu1 %2221  ;;  %6294 = vrcp.f32 %v2225_v34  ;;  %v2486_v34 = vsel %vm481_vm7, %v2456_v31, 0 }
0x110d   :  { %6296 = vrcp.f32 %v2222_v35  ;;  %2590 = vmatpush.bf16.msra.mxu3 %v2486_v34  ;;  %v2489_v35 = vsel %vm481_vm7, %v2457_v32, 0  ;;  %v2379_v32 = vld [vmem:[#allocation7 + $0x98] sm:$0xcc]  ;;  %v2378_v34 = vld [vmem:[#allocation7 + $0x90] sm:$0xcc] }
0x110e   :  { %v2773_v49 = vunpack.c.h.b16 %v2379_v32 }
0x1112   :  { %v6295_v42 = vpop.eup %6294 }
0x1113   :  { %v2247_v6 = vpop.xlane.xlu0 %2246  ;;  %v6297_v18 = vpop.eup %6296 }
0x1114   :  { %v2244_v36 = vpop.xlane.xlu1 %2243  ;;  %v2259_v40 = vmul.f32 %v6291_v37, %v2247_v6  ;;  %v2492_v6 = vsel %vm481_vm7, %v2458_v33, 0  ;;  %v2772_v33 = vunpack.c.l.b16 %v2379_v32  ;;  %v2382_v32 = vld [vmem:[#allocation7 + $0xb0] sm:$0xcc] }
0x1115   :  { %v2258_v41 = vmul.f32 %v6293_v38, %v2244_v36 }
0x1116   :  { %v2267_v4 = vperm.slane %v2259_v40, %v6573_v0 }
0x1117   :  { %v2266_v44 = vperm.slane %v2258_v41, %v6573_v0 }
0x1119   :  { %v2270_v52 = vsel %vm272_vm3, %v2267_v4, %v2266_v44  ;;  %v2361_v44 = vpop.permute.xlu2 %2360 }
0x111b   :  { %v2253_v43 = vpop.xlane.xlu0 %2252 }
0x111c   :  { %v2261_v46 = vmul.f32 %v6295_v42, %v2253_v43  ;;  %v2250_v3 = vpop.xlane.xlu1 %2249  ;;  %v2372_v42 = vld [vmem:[#allocation7 + $0xa0] sm:$0x33] }
0x111d   :  { %v2260_v47 = vmul.f32 %v6297_v18, %v2250_v3  ;;  %v2373_v18 = vld [vmem:[#allocation7 + $0xa8] sm:$0x33]  ;;  %v2444_v3 = vunpack.c.h.b16 %v2372_v42 }
0x111e   :  { %v2269_v48 = vperm.slane %v2261_v46, %v6573_v0  ;;  %v2443_v46 = vunpack.c.l.b16 %v2372_v42 }
0x111f   :  { %v2268_v51 = vperm.slane %v2260_v47, %v6573_v0 }
0x1121   :  { %v2271_v53 = vsel %vm274_vm4, %v2268_v51, %v2270_v52  ;;  %v2446_v51 = vunpack.c.h.b16 %v2373_v18 }
0x1122   :  { %v2272_v54 = vsel %vm276_vm5, %v2269_v48, %v2271_v53  ;;  %v2445_v48 = vunpack.c.l.b16 %v2373_v18 }
0x1123   :  { %2274 = vxpose.xlu0.b32.start.end [1/1] (short) (narrow) %v2272_v54, 8  ;;  %v2459_v54 = vpack.c.b16 %v2443_v46, %v2443_v46 }
0x1134   :  { %v2307_v55 = vpop.permute.xlu1 %2306 }
0x1135   :  { %6135 = vmatpush.msk.msrb.mxu1 %vm83_vm0, %v2307_v55  ;;  %v2460_v55 = vpack.c.b16 %v2444_v3, %v2444_v3  ;;  %v2381_v3 = vld [vmem:[#allocation7 + $0xa8] sm:$0xcc] }
0x113c   :  { %v2310_v57 = vpop.permute.xlu1 %2309 }
0x11c7   :  { %v2290_v56 = vpop.trf.xlu0 }
0x11c8   :  { %6136 = vmatmul.msk.f32.vlgmr.msrb.gmra.mxu1 %vm79_vm1, %v2290_v56 }
0x1245   :  { %v2334_v58 = vpop.f32.mrf.mxu1 }
0x1246   :  { %v2335_v59 = vadd.f32 %v2334_v58, %v2310_v57  ;;  %v2461_v57 = vpack.c.b16 %v2445_v48, %v2445_v48  ;;  %v2462_v58 = vpack.c.b16 %v2446_v51, %v2446_v51  ;;  %v2777_v48 = vunpack.c.h.b16 %v2381_v3 }
0x1248   :  { %v2337_v60 = vadd.f32 %v2335_v59, %v6763_v27  ;;  %v2369_v27 = vld [vmem:[#allocation7 + $0x88] sm:$0x33] }
0x1249   :  { %v2437_v14 = vunpack.c.l.b16 %v2369_v27  ;;  %v2438_v15 = vunpack.c.h.b16 %v2369_v27 }
0x124a   :  { %v2338_v61 = vsel %vm79_vm1, %v2337_v60, 0.0 }
0x124b   :  { %2339 = vadd.xlane.f32.xlu1 %v2338_v61  ;;  %v2453_v16 = vpack.c.b16 %v2437_v14, %v2437_v14  ;;  %v2454_v17 = vpack.c.b16 %v2438_v15, %v2438_v15  ;;  %v2498_v61 = vsel %vm481_vm7, %v2460_v55, 0 }
0x124d   :  { %v2477_v19 = vsel %vm481_vm7, %v2453_v16, 0  ;;  %v2480_v20 = vsel %vm481_vm7, %v2454_v17, 0  ;;  %v2376_v17 = vld [vmem:[#allocation7 + $0x80] sm:$0xcc] }
0x124e   :  { %2551 = vmatpush.bf16.msra.mxu0 %v2477_v19  ;;  %2564 = vmatpush.bf16.msra.mxu1 %v2480_v20  ;;  %v2766_v19 = vunpack.c.l.b16 %v2376_v17  ;;  %v2767_v20 = vunpack.c.h.b16 %v2376_v17 }
0x1250   :  { %v2783_v22 = vpack.c.b16 %v2767_v20, %v2767_v20 }
0x1252   :  { %2603 = vmatpush.bf16.msrb.mxu0 %v2489_v35  ;;  %2616 = vmatpush.bf16.msrb.mxu1 %v2492_v6  ;;  %v2788_v35 = vpack.c.b16 %v2772_v33, %v2772_v33  ;;  %v2789_v6 = vpack.c.b16 %v2773_v49, %v2773_v49 }
0x1264   :  { %2364 = vrot.lane.b32.xlu1 %v6770_v28, %s6473_s22 }
0x12be   :  { %v2340_v62 = vpop.xlane.xlu1 %2339 }
0x12bf   :  { %v2341_v63 = vmul.f32 %v2340_v62, %v6590_v45  ;;  %v2501_v62 = vsel %vm481_vm7, %v2461_v57, 0 }
0x12c1   :  { %v2342_v1 = vsub.f32 %v2337_v60, %v2341_v63  ;;  %v2495_v60 = vsel %vm481_vm7, %v2459_v54, 0  ;;  %v2504_v63 = vsel %vm481_vm7, %v2462_v58, 0  ;;  %v2793_v58 = vpack.c.b16 %v2777_v48, %v2777_v48 }
0x12c3   :  { %v2343_v2 = vmul.f32 %v2342_v1, %v2342_v1 }
0x12c5   :  { %v2344_v5 = vsel %vm79_vm1, %v2343_v2, 0.0  ;;  %v2375_v2 = vld [vmem:[#allocation7 + $0xb8] sm:$0x33] }
0x12c6   :  { %2345 = vadd.xlane.f32.xlu0 %v2344_v5  ;;  %v2449_v7 = vunpack.c.l.b16 %v2375_v2  ;;  %v2450_v8 = vunpack.c.h.b16 %v2375_v2 }
0x12c8   :  { %v2465_v27 = vpack.c.b16 %v2449_v7, %v2449_v7  ;;  %v2466_v12 = vpack.c.b16 %v2450_v8, %v2450_v8  ;;  %v2809_v7 = vrot.slane %v2793_v58, 2 }
0x12ca   :  { %v2513_v15 = vsel %vm481_vm7, %v2465_v27, 0  ;;  %v2516_v16 = vsel %vm481_vm7, %v2466_v12, 0 }
0x12d6   :  { %v2365_v52 = vpop.permute.xlu1 %2364 }
0x1339   :  { %v2346_v21 = vpop.xlane.xlu0 %2345 }
0x133a   :  { %v2347_v50 = vmul.f32 %v2346_v21, %v6590_v45  ;;  %v2782_v21 = vpack.c.b16 %v2766_v19, %v2766_v19 }
0x133c   :  { %v2348_v29 = vadd.f32 1e-05, %v2347_v50  ;;  %v2798_v9 = vrot.slane %v2782_v21, 2  ;;  %v2799_v50 = vrot.slane %v2783_v22, 2 }
0x133e   :  { %6298 = vrsqrt.f32 %v2348_v29  ;;  %vm2355_vm12 = vweird.f32 %v2348_v29 }
0x1344   :  { %v6299_v36 = vpop.eup %6298 }
0x1345   :  { %v2350_v37 = vmul.f32 %v6299_v36, %v2348_v29  ;;  %vm2356_vm11 = vweird.f32 %v6299_v36  ;;  %v2785_v29 = vpack.c.b16 %v2769_v25, %v2769_v25 }
0x1346   :  { %vm2357_vm13 = vmor %vm2355_vm12, %vm2356_vm11 }
0x1347   :  { %v2351_v38 = vmul.f32 %v6299_v36, %v2350_v37  ;;  %v2801_v31 = vrot.slane %v2785_v29, 2  ;;  %v2771_v37 = vunpack.c.h.b16 %v2378_v34 }
0x1349   :  { %v2352_v40 = vmul.f32 0.5, %v2351_v38  ;;  %v2804_v38 = vrot.slane %v2788_v35, 2  ;;  %v2787_v42 = vpack.c.b16 %v2771_v37, %v2771_v37  ;;  %v2778_v37 = vunpack.c.l.b16 %v2382_v32 }
0x134b   :  { %v2353_v41 = vsub.f32 1.5, %v2352_v40  ;;  %v2805_v40 = vrot.slane %v2789_v6, 2  ;;  %v2803_v18 = vrot.slane %v2787_v42, 2 }
0x134d   :  { %v2354_v43 = vmul.f32 %v6299_v36, %v2353_v41 }
0x134f   :  { %v2358_v4 = vsel %vm2357_vm13, %v6299_v36, %v2354_v43  ;;  %v2770_v36 = vunpack.c.l.b16 %v2378_v34 }
0x1350   :  { %v2359_v47 = vmul.f32 %v2358_v4, %v2342_v1  ;;  %v2374_v1 = vld [vmem:[#allocation7 + $0xb0] sm:$0x33]  ;;  %v2386_v4 = vld [vmem:[#allocation5 + $0x2] ss:$8 sm:$0xf] }
0x1351   :  { %v2447_v5 = vunpack.c.l.b16 %v2374_v1  ;;  %v2448_v39 = vunpack.c.h.b16 %v2374_v1  ;;  %v2786_v41 = vpack.c.b16 %v2770_v36, %v2770_v36 }
0x1352   :  { %v2363_v53 = vmul.f32 %v2361_v44, %v2359_v47  ;;  %v2387_v44 = vld [vmem:[#allocation5 + $0x2] ss:$8 sm:$0xf0]  ;;  %v2776_v47 = vunpack.c.l.b16 %v2381_v3 }
0x1353   :  { %v2463_v10 = vpack.c.b16 %v2447_v5, %v2447_v5  ;;  %v2464_v11 = vpack.c.b16 %v2448_v39, %v2448_v39  ;;  %v2802_v43 = vrot.slane %v2786_v41, 2  ;;  %v6845_v46 = vor.u32 %v2387_v44, %v2386_v4 }
0x1354   :  { %v6817_v56 = vadd.f32 %v2365_v52, %v2363_v53  ;;  %v2380_v53 = vld [vmem:[#allocation7 + $0xa0] sm:$0xcc]  ;;  %v2792_v57 = vpack.c.b16 %v2776_v47, %v2776_v47 }
0x1355   :  { %v2507_v13 = vsel %vm481_vm7, %v2463_v10, 0  ;;  %v2510_v14 = vsel %vm481_vm7, %v2464_v11, 0  ;;  %v2397_v51 = vperm.slane %v6845_v46, 2  ;;  %v2398_v52 = vperm.slane %v6845_v46, 3 }
0x1356   :  { %v2384_v59 = vpack.c.bf16 %v6817_v56, %v6817_v56  ;;  %v2396_v1 = vperm.slane %v6845_v46, 1  ;;  %v2808_v39 = vrot.slane %v2792_v57, 2  ;;  %v2400_v41 = vperm.slane %v6845_v46, 5  ;;  %v2391_v57 = vld [vmem:[#allocation5 + $0x42] ss:$8 sm:$0xf0] }
0x1358   :  { %6137 = vmatmul.msk.bf16.vlgmr.msrb.gmra.mxu2 %vm79_vm1, %v2384_v59  ;;  %6138 = vmatmul.msk.bf16.vlgmr.msrb.gmra.mxu3 %vm79_vm1, %v2384_v59 }
0x1359   :  { %6139 = vmatmul.msk.bf16.vlgmr.msra.gmra.mxu0 %vm79_vm1, %v2384_v59  ;;  %6140 = vmatmul.msk.bf16.vlgmr.msra.gmra.mxu1 %vm79_vm1, %v2384_v59 }
0x135a   :  { %2629 = vmatpush.bf16.msrb.mxu2 %v2495_v60  ;;  %2642 = vmatpush.bf16.msrb.mxu3 %v2498_v61  ;;  %v2774_v61 = vunpack.c.l.b16 %v2380_v53 }
0x135b   :  { %2655 = vmatpush.bf16.msra.mxu0 %v2501_v62  ;;  %2668 = vmatpush.bf16.msra.mxu1 %v2504_v63  ;;  %v2775_v62 = vunpack.c.h.b16 %v2380_v53  ;;  %v2395_v63 = vperm.slane %v6845_v46, 0 }
0x135c   :  { %v2790_v12 = vpack.c.b16 %v2774_v61, %v2774_v61 }
0x135e   :  { %v2806_v21 = vrot.slane %v2790_v12, 2 }
0x1368   :  { %6141 = vmatmul.msk.bf16.vlgmr.msra.gmra.mxu2 %vm79_vm1, %v2384_v59  ;;  %6142 = vmatmul.msk.bf16.vlgmr.msra.gmra.mxu3 %vm79_vm1, %v2384_v59 }
0x1369   :  { %6143 = vmatmul.msk.bf16.vlgmr.msrb.gmra.mxu0 %vm79_vm1, %v2384_v59  ;;  %6144 = vmatmul.msk.bf16.vlgmr.msrb.gmra.mxu1 %vm79_vm1, %v2384_v59 }
0x136a   :  { %2681 = vmatpush.bf16.msra.mxu2 %v2507_v13  ;;  %2694 = vmatpush.bf16.msra.mxu3 %v2510_v14  ;;  %v2791_v13 = vpack.c.b16 %v2775_v62, %v2775_v62 }
0x136b   :  { %2707 = vmatpush.bf16.msrb.mxu0 %v2513_v15  ;;  %2720 = vmatpush.bf16.msrb.mxu1 %v2516_v16 }
0x136c   :  { %v2807_v22 = vrot.slane %v2791_v13, 2 }
0x1378   :  { %6145 = vmatmul.msk.bf16.vlgmr.msrb.gmra.mxu2 %vm79_vm1, %v2384_v59  ;;  %6146 = vmatmul.msk.bf16.vlgmr.msrb.gmra.mxu3 %vm79_vm1, %v2384_v59 }
0x1379   :  { %6147 = vmatmul.msk.bf16.vlgmr.msra.gmra.mxu0 %vm79_vm1, %v2384_v59  ;;  %6148 = vmatmul.msk.bf16.vlgmr.msra.gmra.mxu1 %vm79_vm1, %v2384_v59 }
0x137a   :  { %2840 = vmatpush.bf16.xpose.msrb.mxu2 %v2798_v9  ;;  %2853 = vmatpush.bf16.xpose.msrb.mxu3 %v2799_v50  ;;  %v2383_v9 = vld [vmem:[#allocation7 + $0xb8] sm:$0xcc] }
0x137b   :  { %2866 = vmatpush.bf16.xpose.msra.mxu0 %v2800_v30  ;;  %2879 = vmatpush.bf16.xpose.msra.mxu1 %v2801_v31  ;;  %v2780_v24 = vunpack.c.l.b16 %v2383_v9  ;;  %v2781_v25 = vunpack.c.h.b16 %v2383_v9  ;;  %v2401_v30 = vperm.slane %v6845_v46, 6  ;;  %v2402_v31 = vperm.slane %v6845_v46, 7 }
0x137d   :  { %v2796_v34 = vpack.c.b16 %v2780_v24, %v2780_v24  ;;  %v2797_v35 = vpack.c.b16 %v2781_v25, %v2781_v25 }
0x137f   :  { %v2813_v4 = vrot.slane %v2797_v35, 2 }
0x1388   :  { %6149 = vmatmul.msk.bf16.vlgmr.msra.gmra.mxu2 %vm79_vm1, %v2384_v59  ;;  %6150 = vmatmul.msk.bf16.vlgmr.msra.gmra.mxu3 %vm79_vm1, %v2384_v59 }
0x1389   :  { %6151 = vmatmul.msk.bf16.vlgmr.msrb.gmra.mxu0 %vm79_vm1, %v2384_v59  ;;  %6152 = vmatmul.msk.bf16.vlgmr.msrb.gmra.mxu1 %vm79_vm1, %v2384_v59 }
0x138a   :  { %2918 = vmatpush.bf16.xpose.msrb.mxu0 %v2804_v38  ;;  %2931 = vmatpush.bf16.xpose.msrb.mxu1 %v2805_v40  ;;  %v2779_v38 = vunpack.c.h.b16 %v2382_v32  ;;  %v2399_v40 = vperm.slane %v6845_v46, 4 }
0x138b   :  { %2892 = vmatpush.bf16.xpose.msra.mxu2 %v2802_v43  ;;  %2905 = vmatpush.bf16.xpose.msra.mxu3 %v2803_v18  ;;  %v2812_v18 = vrot.slane %v2796_v34, 2 }
0x13d6   :  { %v2553_v54 = vpop.f32.mrf.mxu0  ;;  %v2566_v55 = vpop.f32.mrf.mxu1 }
0x13d7   :  { %v2554_v59 = vadd.f32 %v2553_v54, %v2397_v51  ;;  %v2567_v60 = vadd.f32 %v2566_v55, %v2398_v52  ;;  %v2794_v51 = vpack.c.b16 %v2778_v37, %v2778_v37  ;;  %v2795_v52 = vpack.c.b16 %v2779_v38, %v2779_v38  ;;  %v2390_v55 = vld [vmem:[#allocation5 + $0x42] ss:$8 sm:$0xf] }
0x13d8   :  { %v2392_v61 = vor.u32 %v2391_v57, %v2390_v55 }
0x13d9   :  { %v2728_v2 = vmax.f32 %v2554_v59, 0.0  ;;  %v2729_v5 = vmax.f32 %v2567_v60, 0.0  ;;  %v2810_v62 = vrot.slane %v2794_v51, 2 }
0x13da   :  { %v2403_v13 = vperm.slane %v2392_v61, 0  ;;  %v2409_v32 = vperm.slane %v2392_v61, 6  ;;  %v2408_v37 = vperm.slane %v2392_v61, 5 }
0x13db   :  { %v2744_v8 = vpack.c.bf16 %v2728_v2, %v2728_v2  ;;  %v2745_v10 = vpack.c.bf16 %v2729_v5, %v2729_v5  ;;  %v2527_v11 = vpop.f32.mrf.mxu2  ;;  %v2540_v27 = vpop.f32.mrf.mxu3 }
0x13dc   :  { %v2528_v14 = vadd.f32 %v2527_v11, %v2395_v63  ;;  %v2541_v15 = vadd.f32 %v2540_v27, %v2396_v1  ;;  %v2811_v63 = vrot.slane %v2795_v52, 2 }
0x13dd   :  { %2867 = vmatmul.bf16.vlgmr.msra.gmra.mxu0 %v2744_v8  ;;  %2880 = vmatmul.bf16.vlgmr.msra.gmra.mxu1 %v2745_v10  ;;  %v2406_v8 = vperm.slane %v2392_v61, 3 }
0x13de   :  { %v2726_v16 = vmax.f32 %v2528_v14, 0.0  ;;  %v2727_v17 = vmax.f32 %v2541_v15, 0.0  ;;  %v2555_v19 = vpop.f32.mrf.mxu0  ;;  %v2568_v20 = vpop.f32.mrf.mxu1  ;;  %2970 = vmatpush.bf16.xpose.msra.mxu0 %v2808_v39  ;;  %2983 = vmatpush.bf16.xpose.msra.mxu1 %v2809_v7  ;;  %v2405_v7 = vperm.slane %v2392_v61, 2  ;;  %v2404_v14 = vperm.slane %v2392_v61, 1 }
0x13e0   :  { %v2742_v50 = vpack.c.bf16 %v2726_v16, %v2726_v16  ;;  %v2743_v23 = vpack.c.bf16 %v2727_v17, %v2727_v17 }
0x13e2   :  { %2841 = vmatmul.bf16.vlgmr.msrb.gmra.mxu2 %v2742_v50  ;;  %2854 = vmatmul.bf16.vlgmr.msrb.gmra.mxu3 %v2743_v23 }
0x13e3   :  { %v2529_v26 = vpop.f32.mrf.mxu2  ;;  %v2542_v29 = vpop.f32.mrf.mxu3  ;;  %2944 = vmatpush.bf16.xpose.msrb.mxu2 %v2806_v21  ;;  %2957 = vmatpush.bf16.xpose.msrb.mxu3 %v2807_v22 }
0x13e6   :  { %v2605_v33 = vpop.f32.mrf.mxu0  ;;  %v2618_v49 = vpop.f32.mrf.mxu1 }
0x13e7   :  { %v2606_v6 = vadd.f32 %v2605_v33, %v2401_v30  ;;  %v2619_v36 = vadd.f32 %v2618_v49, %v2402_v31  ;;  %v2410_v33 = vperm.slane %v2392_v61, 7 }
0x13e9   :  { %v2732_v42 = vmax.f32 %v2606_v6, 0.0  ;;  %v2733_v43 = vmax.f32 %v2619_v36, 0.0  ;;  %v2407_v36 = vperm.slane %v2392_v61, 4 }
0x13eb   :  { %v2748_v44 = vpack.c.bf16 %v2732_v42, %v2732_v42  ;;  %v2749_v3 = vpack.c.bf16 %v2733_v43, %v2733_v43  ;;  %v2579_v47 = vpop.f32.mrf.mxu2  ;;  %v2592_v48 = vpop.f32.mrf.mxu3 }
0x13ec   :  { %v2580_v53 = vadd.f32 %v2579_v47, %v2399_v40  ;;  %v2593_v54 = vadd.f32 %v2592_v48, %v2400_v41 }
0x13ed   :  { %2919 = vmatmul.bf16.vlgmr.msrb.gmra.mxu0 %v2748_v44  ;;  %2932 = vmatmul.bf16.vlgmr.msrb.gmra.mxu1 %v2749_v3 }
0x13ee   :  { %v2730_v58 = vmax.f32 %v2580_v53, 0.0  ;;  %v2731_v59 = vmax.f32 %v2593_v54, 0.0  ;;  %v2607_v60 = vpop.f32.mrf.mxu0  ;;  %v2620_v46 = vpop.f32.mrf.mxu1  ;;  %3022 = vmatpush.bf16.xpose.msrb.mxu0 %v2812_v18  ;;  %3035 = vmatpush.bf16.xpose.msrb.mxu1 %v2813_v4 }
0x13f0   :  { %v2746_v1 = vpack.c.bf16 %v2730_v58, %v2730_v58  ;;  %v2747_v2 = vpack.c.bf16 %v2731_v59, %v2731_v59 }
0x13f2   :  { %2893 = vmatmul.bf16.vlgmr.msra.gmra.mxu2 %v2746_v1  ;;  %2906 = vmatmul.bf16.vlgmr.msra.gmra.mxu3 %v2747_v2 }
0x13f3   :  { %v2581_v5 = vpop.f32.mrf.mxu2  ;;  %v2594_v39 = vpop.f32.mrf.mxu3  ;;  %2996 = vmatpush.bf16.xpose.msra.mxu2 %v2810_v62  ;;  %3009 = vmatpush.bf16.xpose.msra.mxu3 %v2811_v63 }
0x13f4   :  { %v2831_v62 = vpop.permute.xlu2 %2830 }
0x13f6   :  { %v2657_v10 = vpop.f32.mrf.mxu0  ;;  %v2670_v11 = vpop.f32.mrf.mxu1 }
0x13f7   :  { %v2658_v27 = vadd.f32 %v2657_v10, %v2405_v7  ;;  %v2671_v12 = vadd.f32 %v2670_v11, %v2406_v8 }
0x13f9   :  { %v2736_v15 = vmax.f32 %v2658_v27, 0.0  ;;  %v2737_v16 = vmax.f32 %v2671_v12, 0.0 }
0x13fb   :  { %v2752_v17 = vpack.c.bf16 %v2736_v15, %v2736_v15  ;;  %v2753_v19 = vpack.c.bf16 %v2737_v16, %v2737_v16  ;;  %v2631_v20 = vpop.f32.mrf.mxu2  ;;  %v2644_v21 = vpop.f32.mrf.mxu3 }
0x13fc   :  { %v2632_v22 = vadd.f32 %v2631_v20, %v2403_v13  ;;  %v2645_v9 = vadd.f32 %v2644_v21, %v2404_v14 }
0x13fd   :  { %2971 = vmatmul.bf16.vlgmr.msra.gmra.mxu0 %v2752_v17  ;;  %2984 = vmatmul.bf16.vlgmr.msra.gmra.mxu1 %v2753_v19 }
0x13fe   :  { %v2734_v50 = vmax.f32 %v2632_v22, 0.0  ;;  %v2735_v23 = vmax.f32 %v2645_v9, 0.0  ;;  %v2659_v24 = vpop.f32.mrf.mxu0  ;;  %v2672_v25 = vpop.f32.mrf.mxu1 }
0x1400   :  { %v2750_v26 = vpack.c.bf16 %v2734_v50, %v2734_v50  ;;  %v2751_v29 = vpack.c.bf16 %v2735_v23, %v2735_v23 }
0x1402   :  { %2945 = vmatmul.bf16.vlgmr.msrb.gmra.mxu2 %v2750_v26  ;;  %2958 = vmatmul.bf16.vlgmr.msrb.gmra.mxu3 %v2751_v29 }
0x1403   :  { %v2633_v30 = vpop.f32.mrf.mxu2  ;;  %v2646_v31 = vpop.f32.mrf.mxu3 }
0x1406   :  { %v2709_v49 = vpop.f32.mrf.mxu0  ;;  %v2722_v34 = vpop.f32.mrf.mxu1 }
0x1407   :  { %v2710_v35 = vadd.f32 %v2709_v49, %v2409_v32  ;;  %v2723_v6 = vadd.f32 %v2722_v34, %v2410_v33 }
0x1409   :  { %v2740_v38 = vmax.f32 %v2710_v35, 0.0  ;;  %v2741_v40 = vmax.f32 %v2723_v6, 0.0 }
0x140b   :  { %v2756_v41 = vpack.c.bf16 %v2740_v38, %v2740_v38  ;;  %v2757_v42 = vpack.c.bf16 %v2741_v40, %v2741_v40  ;;  %v2683_v43 = vpop.f32.mrf.mxu2  ;;  %v2696_v18 = vpop.f32.mrf.mxu3 }
0x140c   :  { %v2684_v4 = vadd.f32 %v2683_v43, %v2407_v36  ;;  %v2697_v44 = vadd.f32 %v2696_v18, %v2408_v37 }
0x140d   :  { %3023 = vmatmul.bf16.vlgmr.msrb.gmra.mxu0 %v2756_v41  ;;  %3036 = vmatmul.bf16.vlgmr.msrb.gmra.mxu1 %v2757_v42 }
0x140e   :  { %v2738_v3 = vmax.f32 %v2684_v4, 0.0  ;;  %v2739_v47 = vmax.f32 %v2697_v44, 0.0  ;;  %v2711_v48 = vpop.f32.mrf.mxu0  ;;  %v2724_v51 = vpop.f32.mrf.mxu1 }
0x1410   :  { %v2754_v52 = vpack.c.bf16 %v2738_v3, %v2738_v3  ;;  %v2755_v53 = vpack.c.bf16 %v2739_v47, %v2739_v47 }
0x1412   :  { %2997 = vmatmul.bf16.vlgmr.msra.gmra.mxu2 %v2754_v52  ;;  %3010 = vmatmul.bf16.vlgmr.msra.gmra.mxu3 %v2755_v53  ;;  %v6863_v52 = vld [vmem:[#allocation2 + $0xc] sm:$0xf] }
0x1413   :  { %v2685_v54 = vpop.f32.mrf.mxu2  ;;  %v2698_v55 = vpop.f32.mrf.mxu3  ;;  %6153 = vmatpush.msk.msrb.mxu2 %vm83_vm0, %v6863_v52 }
0x145a   :  { %v2868_v57 = vpop.f32.mrf.mxu0  ;;  %v2881_v58 = vpop.f32.mrf.mxu1 }
0x1462   :  { %v2870_v59 = vpop.f32.mrf.mxu0  ;;  %v2883_v60 = vpop.f32.mrf.mxu1 }
0x1465   :  { %v2842_v46 = vpop.f32.mrf.mxu2  ;;  %v2855_v61 = vpop.f32.mrf.mxu3 }
0x1466   :  { %v2843_v2 = vadd.f32 %v2842_v46, %v2831_v62 }
0x1468   :  { %v2856_v7 = vadd.f32 %v2855_v61, %v2843_v2 }
0x146a   :  { %v2920_v63 = vpop.f32.mrf.mxu0  ;;  %v2933_v1 = vpop.f32.mrf.mxu1  ;;  %v2869_v11 = vadd.f32 %v2868_v57, %v2856_v7 }
0x146c   :  { %v2882_v13 = vadd.f32 %v2881_v58, %v2869_v11 }
0x146d   :  { %v2844_v5 = vpop.f32.mrf.mxu2  ;;  %v2857_v39 = vpop.f32.mrf.mxu3 }
0x146e   :  { %v6875_v5 = vld [vmem:[%s7192_s3 + $0x3] ss:$0 sm:$0xff] }
0x1472   :  { %v2922_v8 = vpop.f32.mrf.mxu0  ;;  %v2935_v10 = vpop.f32.mrf.mxu1 }
0x1475   :  { %v2894_v27 = vpop.f32.mrf.mxu2  ;;  %v2907_v12 = vpop.f32.mrf.mxu3 }
0x1476   :  { %v2895_v14 = vadd.f32 %v2894_v27, %v2882_v13 }
0x1478   :  { %v2908_v20 = vadd.f32 %v2907_v12, %v2895_v14 }
0x147a   :  { %v2972_v15 = vpop.f32.mrf.mxu0  ;;  %v2985_v16 = vpop.f32.mrf.mxu1  ;;  %v2921_v21 = vadd.f32 %v2920_v63, %v2908_v20 }
0x147c   :  { %v2934_v24 = vadd.f32 %v2933_v1, %v2921_v21 }
0x147d   :  { %v2896_v17 = vpop.f32.mrf.mxu2  ;;  %v2909_v19 = vpop.f32.mrf.mxu3 }
0x1482   :  { %v2974_v22 = vpop.f32.mrf.mxu0  ;;  %v2987_v9 = vpop.f32.mrf.mxu1 }
0x1485   :  { %v2946_v50 = vpop.f32.mrf.mxu2  ;;  %v2959_v23 = vpop.f32.mrf.mxu3 }
0x1486   :  { %v2947_v25 = vadd.f32 %v2946_v50, %v2934_v24 }
0x1488   :  { %v2960_v30 = vadd.f32 %v2959_v23, %v2947_v25 }
0x148a   :  { %v3024_v26 = vpop.f32.mrf.mxu0  ;;  %v3037_v29 = vpop.f32.mrf.mxu1  ;;  %v2973_v33 = vadd.f32 %v2972_v15, %v2960_v30 }
0x148c   :  { %v2986_v35 = vadd.f32 %v2985_v16, %v2973_v33 }
0x148d   :  { %v2948_v31 = vpop.f32.mrf.mxu2  ;;  %v2961_v32 = vpop.f32.mrf.mxu3 }
0x1492   :  { %v3026_v49 = vpop.f32.mrf.mxu0  ;;  %v3039_v34 = vpop.f32.mrf.mxu1 }
0x1495   :  { %v2998_v6 = vpop.f32.mrf.mxu2  ;;  %v3011_v36 = vpop.f32.mrf.mxu3 }
0x1496   :  { %v2999_v37 = vadd.f32 %v2998_v6, %v2986_v35 }
0x1498   :  { %v3012_v38 = vadd.f32 %v3011_v36, %v2999_v37 }
0x149a   :  { %v3025_v40 = vadd.f32 %v3024_v26, %v3012_v38 }
0x149c   :  { %v3038_v41 = vadd.f32 %v3037_v29, %v3025_v40 }
0x149d   :  { %v3000_v42 = vpop.f32.mrf.mxu2  ;;  %v3013_v43 = vpop.f32.mrf.mxu3 }
0x149e   :  { %v3041_v18 = vadd.f32 %v3038_v41, %v6817_v56 }
0x14a0   :  { %v3042_v4 = vsel %vm79_vm1, %v3041_v18, 0.0 }
0x14a1   :  { %3043 = vadd.xlane.f32.xlu2 %v3042_v4 }
0x14b9   :  { %3064 = vrot.lane.b32.xlu2 %v6770_v28, %s6476_s24 }
0x1514   :  { %v3044_v44 = vpop.xlane.xlu2 %3043 }
0x1515   :  { %v3045_v3 = vmul.f32 %v3044_v44, %v6590_v45 }
0x1517   :  { %v3046_v47 = vsub.f32 %v3041_v18, %v3045_v3 }
0x1519   :  { %v3047_v48 = vmul.f32 %v3046_v47, %v3046_v47 }
0x151b   :  { %v3048_v51 = vsel %vm79_vm1, %v3047_v48, 0.0 }
0x151c   :  { %3049 = vadd.xlane.f32.xlu1 %v3048_v51  ;;  %v3065_v61 = vpop.permute.xlu2 %3064 }
0x1535   :  { %3068 = vrot.lane.b32.xlu1 %v6770_v28, %s6477_s27 }
0x158f   :  { %v3050_v56 = vpop.xlane.xlu1 %3049 }
0x1590   :  { %v3051_v53 = vmul.f32 %v3050_v56, %v6590_v45 }
0x1592   :  { %v3052_v54 = vadd.f32 1e-05, %v3051_v53 }
0x1594   :  { %6300 = vrsqrt.f32 %v3052_v54  ;;  %vm3059_vm15 = vweird.f32 %v3052_v54 }
0x159a   :  { %v6301_v55 = vpop.eup %6300 }
0x159b   :  { %v3054_v57 = vmul.f32 %v6301_v55, %v3052_v54  ;;  %vm3060_vm14 = vweird.f32 %v6301_v55 }
0x159c   :  { %vm3061_vm6 = vmor %vm3059_vm15, %vm3060_vm14 }
0x159d   :  { %v3055_v58 = vmul.f32 %v6301_v55, %v3054_v57 }
0x159f   :  { %v3056_v59 = vmul.f32 0.5, %v3055_v58 }
0x15a1   :  { %v3057_v60 = vsub.f32 1.5, %v3056_v59 }
0x15a3   :  { %v3058_v46 = vmul.f32 %v6301_v55, %v3057_v60 }
0x15a5   :  { %v3062_v28 = vsel %vm3061_vm6, %v6301_v55, %v3058_v46 }
0x15a6   :  { %v3063_v62 = vmul.f32 %v3062_v28, %v3046_v47 }
0x15a7   :  { %v3069_v63 = vpop.permute.xlu1 %3068 }
0x15a8   :  { %v3067_v1 = vmul.f32 %v3065_v61, %v3063_v62 }
0x15aa   :  { %v6868_v2 = vadd.f32 %v3069_v63, %v3067_v1 }
0x15ac   :  { %6154 = vmatmul.msk.f32.vlgmr.msrb.gmra.mxu2 %vm79_vm1, %v6868_v2 }
0x162f   :  { %v3099_v39 = vpop.f32.mrf.mxu2 }
0x1630   :  { %v3100_v7 = vadd.f32 %v6875_v5, %v3099_v39 }
0x1632   :  { %3102 = vxpose.xlu2.b32.start.end [1/1] (short) (narrow) %v3100_v7, 16 }
0x16cb   :  { %v3118_v8 = vpop.trf.xlu2 }
0x16cc   :  { %3163 = vst [vmem:[#allocation1] sm:$0xff] %v3118_v8  ;;  %v3141_v10 = vperm.slane %v3118_v8, 1  ;;  %v3134_v11 = vperm.slane %v3118_v8, 0  ;;  %v3148_v27 = vperm.slane %v3118_v8, 2  ;;  %v3155_v12 = vperm.slane %v3118_v8, 3 }
0x16ce   :  { %3146 = vperm.xlu1 %6232, %v3141_v10   ;;  %3139 = vperm.xlu0 %6231, %v3134_v11  }
0x16d3   :  { %v3167_v13 = vld [vmem:[#allocation1 + $0x5] ss:$9 sm:$0xff]  ;;  %v3171_v23 = vld [vmem:[#allocation1 + $0x7] ss:$9 sm:$0xff]  ;;  %v3119_v49 = vpop.trf.xlu2 }
0x16d4   :  { %v3165_v14 = vld [vmem:[#allocation1 + $0x4] ss:$9 sm:$0xff]  ;;  %v3173_v15 = vperm.slane %v3167_v13, 0  ;;  %v3169_v50 = vld [vmem:[#allocation1 + $0x6] ss:$9 sm:$0xff]  ;;  %v3175_v25 = vperm.slane %v3171_v23, 0 }
0x16d5   :  { %v3172_v16 = vperm.slane %v3165_v14, 0  ;;  %v3174_v24 = vperm.slane %v3169_v50, 0  ;;  %v3221_v56 = vrot.slane %v3119_v49, 1  ;;  %v3224_v57 = vperm.slane %v3119_v49, 0 }
0x16d6   :  { %3153 = vperm.xlu1 %6232, %v3148_v27   ;;  %3160 = vperm.xlu0 %6231, %v3155_v12   ;;  %v3222_v46 = vrot.slane %v3119_v49, 2  ;;  %v3223_v28 = vrot.slane %v3119_v49, 3 }
0x16d7   :  { %v3225_v58 = vperm.slane %v3221_v56, 0 }
0x16d8   :  { %v3226_v63 = vperm.slane %v3222_v46, 0  ;;  %v3227_v1 = vperm.slane %v3223_v28, 0  ;;  %v3364_v46 = vld [vmem:[#allocation7 + $0xd0] sm:$0x33] }
0x1740   :  { %v3147_v17 = vpop.permute.xlu1 %3146  ;;  %v3140_v19 = vpop.permute.xlu0 %3139 }
0x1741   :  { %v3181_v20 = vmul.f32 %v3173_v15, %v3147_v17  ;;  %v3180_v21 = vmul.f32 %v3172_v16, %v3140_v19 }
0x1743   :  { %v3187_v22 = vsel %vm189_vm2, %v3181_v20, -inf  ;;  %v3184_v9 = vsel %vm189_vm2, %v3180_v21, -inf }
0x1744   :  { %3188 = vmax.xlane.f32.xlu2 %v3187_v22  ;;  %3185 = vmax.xlane.f32.xlu1 %v3184_v9 }
0x1748   :  { %v3154_v26 = vpop.permute.xlu1 %3153  ;;  %v3161_v29 = vpop.permute.xlu0 %3160 }
0x1749   :  { %v3182_v30 = vmul.f32 %v3174_v24, %v3154_v26  ;;  %v3183_v31 = vmul.f32 %v3175_v25, %v3161_v29 }
0x174b   :  { %v3190_v32 = vsel %vm189_vm2, %v3182_v30, -inf  ;;  %v3193_v33 = vsel %vm189_vm2, %v3183_v31, -inf }
0x174c   :  { %3191 = vmax.xlane.f32.xlu0 %v3190_v32  ;;  %3194 = vmax.xlane.f32.xlu1 %v3193_v33 }
0x17b7   :  { %v3186_v34 = vpop.xlane.xlu1 %3185  ;;  %v3189_v35 = vpop.xlane.xlu2 %3188 }
0x17b8   :  { %v3196_v6 = vsub.f32 %v3180_v21, %v3186_v34  ;;  %v3197_v36 = vsub.f32 %v3181_v20, %v3189_v35 }
0x17ba   :  { %v3200_v37 = vmul.f32 1.442695, %v3196_v6  ;;  %v3202_v38 = vmul.f32 1.442695, %v3197_v36 }
0x17bc   :  { %6302 = vpow2.f32 %v3200_v37 }
0x17bd   :  { %6304 = vpow2.f32 %v3202_v38 }
0x17bf   :  { %v3195_v40 = vpop.xlane.xlu1 %3194  ;;  %v3192_v41 = vpop.xlane.xlu0 %3191 }
0x17c0   :  { %v3199_v42 = vsub.f32 %v3183_v31, %v3195_v40  ;;  %v3198_v43 = vsub.f32 %v3182_v30, %v3192_v41 }
0x17c2   :  { %v6303_v18 = vpop.eup %6302  ;;  %v3206_v4 = vmul.f32 1.442695, %v3199_v42  ;;  %v3204_v44 = vmul.f32 1.442695, %v3198_v43 }
0x17c3   :  { %v6305_v3 = vpop.eup %6304  ;;  %v3208_v47 = vsel %vm189_vm2, %v6303_v18, 0.0  ;;  %v3232_v59 = vmul.f32 %v6303_v18, %v3224_v57  ;;  %v3362_v18 = vld [vmem:[#allocation7 + $0xc0] sm:$0x33] }
0x17c4   :  { %6306 = vpow2.f32 %v3206_v4  ;;  %3209 = vadd.xlane.f32.xlu0 %v3208_v47  ;;  %v3211_v48 = vsel %vm189_vm2, %v6305_v3, 0.0  ;;  %v3233_v60 = vmul.f32 %v6305_v3, %v3225_v58  ;;  %v3363_v4 = vld [vmem:[#allocation7 + $0xc8] sm:$0x33]  ;;  %v3430_v56 = vunpack.c.h.b16 %v3362_v18 }
0x17c5   :  { %6308 = vpow2.f32 %v3204_v44  ;;  %3212 = vadd.xlane.f32.xlu1 %v3211_v48  ;;  %v3236_v61 = vsel %vm189_vm2, %v3232_v59, 0.0  ;;  %v3431_v44 = vunpack.c.l.b16 %v3363_v4 }
0x17c6   :  { %v3239_v62 = vsel %vm189_vm2, %v3233_v60, 0.0  ;;  %v3365_v60 = vld [vmem:[#allocation7 + $0xd8] sm:$0x33] }
0x17c7   :  { %v3447_v47 = vpack.c.b16 %v3431_v44, %v3431_v44 }
0x17ca   :  { %v6307_v51 = vpop.eup %6306 }
0x17cb   :  { %v6309_v53 = vpop.eup %6308  ;;  %v3217_v54 = vsel %vm189_vm2, %v6307_v51, 0.0  ;;  %v3235_v7 = vmul.f32 %v6307_v51, %v3227_v1  ;;  %v3471_v51 = vsel %vm481_vm7, %v3447_v47, 0  ;;  %v3434_v1 = vunpack.c.h.b16 %v3364_v46 }
0x17cc   :  { %v3214_v55 = vsel %vm189_vm2, %v6309_v53, 0.0  ;;  %v3234_v39 = vmul.f32 %v6309_v53, %v3226_v63  ;;  %3545 = vmatpush.bf16.msra.mxu2 %v3471_v51  ;;  %v3432_v53 = vunpack.c.h.b16 %v3363_v4  ;;  %v3433_v63 = vunpack.c.l.b16 %v3364_v46 }
0x17cd   :  { %3215 = vadd.xlane.f32.xlu0 %v3214_v55  ;;  %3218 = vadd.xlane.f32.xlu1 %v3217_v54  ;;  %v3245_v10 = vsel %vm189_vm2, %v3235_v7, 0.0  ;;  %v3446_v54 = vpack.c.b16 %v3430_v56, %v3430_v56 }
0x17ce   :  { %v3242_v8 = vsel %vm189_vm2, %v3234_v39, 0.0  ;;  %v3448_v55 = vpack.c.b16 %v3432_v53, %v3432_v53 }
0x17cf   :  { %v3468_v57 = vsel %vm481_vm7, %v3446_v54, 0 }
0x17d0   :  { %v3474_v58 = vsel %vm481_vm7, %v3448_v55, 0  ;;  %3532 = vmatpush.bf16.msra.mxu1 %v3468_v57  ;;  %v3371_v55 = vld [vmem:[#allocation7 + $0xc8] sm:$0xcc]  ;;  %v3370_v57 = vld [vmem:[#allocation7 + $0xc0] sm:$0xcc] }
0x17d5   :  { %3237 = vadd.xlane.f32.xlu0 %v3236_v61  ;;  %3240 = vadd.xlane.f32.xlu1 %v3239_v62  ;;  %v3435_v61 = vunpack.c.l.b16 %v3365_v60  ;;  %v3436_v62 = vunpack.c.h.b16 %v3365_v60  ;;  %v3763_v60 = vunpack.c.h.b16 %v3371_v55 }
0x17d7   :  { %v3451_v7 = vpack.c.b16 %v3435_v61, %v3435_v61  ;;  %v3779_v61 = vpack.c.b16 %v3763_v60, %v3763_v60 }
0x17dd   :  { %3243 = vadd.xlane.f32.xlu0 %v3242_v8  ;;  %3246 = vadd.xlane.f32.xlu1 %v3245_v10  ;;  %v3452_v8 = vpack.c.b16 %v3436_v62, %v3436_v62  ;;  %v3449_v10 = vpack.c.b16 %v3433_v63, %v3433_v63 }
0x17f1   :  { %3300 = vrot.lane.b32.xlu0 %v6863_v52, %s6471_s1 }
0x17f9   :  { %3303 = vrot.lane.b32.xlu0 %v6875_v5, %s6471_s1 }
0x1837   :  { %v3210_v11 = vpop.xlane.xlu0 %3209 }
0x1838   :  { %v3213_v27 = vpop.xlane.xlu1 %3212  ;;  %6310 = vrcp.f32 %v3210_v11  ;;  %v3450_v11 = vpack.c.b16 %v3434_v1, %v3434_v1  ;;  %v3795_v1 = vrot.slane %v3779_v61, 2 }
0x1839   :  { %6312 = vrcp.f32 %v3213_v27  ;;  %v3483_v27 = vsel %vm481_vm7, %v3451_v7, 0 }
0x183a   :  { %3597 = vmatpush.bf16.msrb.mxu2 %v3483_v27 }
0x183e   :  { %v6311_v16 = vpop.eup %6310 }
0x183f   :  { %v6313_v17 = vpop.eup %6312 }
0x1840   :  { %v3216_v12 = vpop.xlane.xlu0 %3215  ;;  %v3219_v13 = vpop.xlane.xlu1 %3218 }
0x1841   :  { %6314 = vrcp.f32 %v3216_v12  ;;  %v3486_v12 = vsel %vm481_vm7, %v3452_v8, 0 }
0x1842   :  { %6316 = vrcp.f32 %v3219_v13  ;;  %v3477_v13 = vsel %vm481_vm7, %v3449_v10, 0  ;;  %v3372_v10 = vld [vmem:[#allocation7 + $0xd0] sm:$0xcc] }
0x1843   :  { %v3765_v27 = vunpack.c.h.b16 %v3372_v10 }
0x1847   :  { %v6315_v21 = vpop.eup %6314 }
0x1848   :  { %v3238_v14 = vpop.xlane.xlu0 %3237  ;;  %v3241_v15 = vpop.xlane.xlu1 %3240 }
0x1849   :  { %v3252_v19 = vmul.f32 %v6311_v16, %v3238_v14  ;;  %v3253_v20 = vmul.f32 %v6313_v17, %v3241_v15  ;;  %v6317_v22 = vpop.eup %6316  ;;  %v3480_v14 = vsel %vm481_vm7, %v3450_v11, 0  ;;  %v3764_v11 = vunpack.c.l.b16 %v3372_v10 }
0x184a   :  { %3584 = vmatpush.bf16.msrb.mxu1 %v3480_v14  ;;  %v3373_v14 = vld [vmem:[#allocation7 + $0xd8] sm:$0xcc] }
0x184b   :  { %v3260_v52 = vperm.slane %v3252_v19, %v6573_v0  ;;  %v3261_v9 = vperm.slane %v3253_v20, %v6573_v0 }
0x184d   :  { %v3264_v30 = vsel %vm272_vm3, %v3261_v9, %v3260_v52  ;;  %v3366_v52 = vld [vmem:[#allocation7 + $0xe0] sm:$0x33] }
0x1850   :  { %v3244_v50 = vpop.xlane.xlu0 %3243  ;;  %v3247_v23 = vpop.xlane.xlu1 %3246 }
0x1851   :  { %v3254_v24 = vmul.f32 %v6315_v21, %v3244_v50  ;;  %v3255_v25 = vmul.f32 %v6317_v22, %v3247_v23  ;;  %v3367_v21 = vld [vmem:[#allocation7 + $0xe8] sm:$0x33] }
0x1852   :  { %v3439_v23 = vunpack.c.l.b16 %v3367_v21 }
0x1853   :  { %v3262_v26 = vperm.slane %v3254_v24, %v6573_v0  ;;  %v3263_v29 = vperm.slane %v3255_v25, %v6573_v0  ;;  %v3440_v24 = vunpack.c.h.b16 %v3367_v21 }
0x1855   :  { %v3265_v31 = vsel %vm274_vm4, %v3262_v26, %v3264_v30  ;;  %v3437_v26 = vunpack.c.l.b16 %v3366_v52 }
0x1856   :  { %v3266_v32 = vsel %vm276_vm5, %v3263_v29, %v3265_v31  ;;  %v3438_v29 = vunpack.c.h.b16 %v3366_v52 }
0x1857   :  { %3268 = vxpose.xlu1.b32.start.end [1/1] (short) (narrow) %v3266_v32, 8  ;;  %v3455_v32 = vpack.c.b16 %v3439_v23, %v3439_v23 }
0x1863   :  { %v3301_v33 = vpop.permute.xlu0 %3300 }
0x1864   :  { %6155 = vmatpush.msk.msrb.mxu3 %vm83_vm0, %v3301_v33  ;;  %v3456_v33 = vpack.c.b16 %v3440_v24, %v3440_v24  ;;  %v3374_v24 = vld [vmem:[#allocation7 + $0xe0] sm:$0xcc] }
0x1866   :  { %3558 = vmatpush.bf16.msra.mxu3 %v3474_v58  ;;  %v3762_v58 = vunpack.c.l.b16 %v3371_v55 }
0x1868   :  { %v3778_v46 = vpack.c.b16 %v3762_v58, %v3762_v58 }
0x186a   :  { %v3794_v62 = vrot.slane %v3778_v46, 2 }
0x186b   :  { %v3304_v34 = vpop.permute.xlu0 %3303 }
0x18b1   :  { %3358 = vrot.lane.b32.xlu1 %v6875_v5, %s6473_s22 }
0x18fb   :  { %v3284_v49 = vpop.trf.xlu1 }
0x18fc   :  { %6156 = vmatmul.msk.f32.vlgmr.msrb.gmra.mxu3 %vm79_vm1, %v3284_v49 }
0x18fd   :  { %3610 = vmatpush.bf16.msrb.mxu3 %v3486_v12  ;;  %v3780_v12 = vpack.c.b16 %v3764_v11, %v3764_v11 }
0x1923   :  { %v3359_v30 = vpop.permute.xlu1 %3358 }
0x197f   :  { %v3328_v35 = vpop.f32.mrf.mxu3 }
0x1980   :  { %v3329_v6 = vadd.f32 %v3328_v35, %v3304_v34  ;;  %v3453_v34 = vpack.c.b16 %v3437_v26, %v3437_v26  ;;  %v3454_v35 = vpack.c.b16 %v3438_v29, %v3438_v29  ;;  %v3769_v26 = vunpack.c.h.b16 %v3374_v24 }
0x1982   :  { %v3331_v36 = vadd.f32 %v3329_v6, %v6868_v2  ;;  %v3429_v2 = vunpack.c.l.b16 %v3362_v18 }
0x1984   :  { %v3332_v37 = vsel %vm79_vm1, %v3331_v36, 0.0  ;;  %v3445_v3 = vpack.c.b16 %v3429_v2, %v3429_v2 }
0x1985   :  { %3333 = vadd.xlane.f32.xlu0 %v3332_v37  ;;  %v3498_v37 = vsel %vm481_vm7, %v3456_v33, 0  ;;  %v3375_v33 = vld [vmem:[#allocation7 + $0xe8] sm:$0xcc] }
0x1986   :  { %v3465_v48 = vsel %vm481_vm7, %v3445_v3, 0 }
0x1987   :  { %3519 = vmatpush.bf16.msra.mxu0 %v3465_v48 }
0x198b   :  { %3571 = vmatpush.bf16.msrb.mxu0 %v3477_v13  ;;  %v3781_v13 = vpack.c.b16 %v3765_v27, %v3765_v27  ;;  %v3377_v27 = vld [vmem:[#allocation7 + $0xf8] sm:$0xcc] }
0x1999   :  { %3824 = vrot.lane.b32.xlu0 %v6875_v5, %s6475_s23 }
0x19f8   :  { %v3334_v38 = vpop.xlane.xlu0 %3333 }
0x19f9   :  { %v3335_v40 = vmul.f32 %v3334_v38, %v6590_v45  ;;  %v3489_v38 = vsel %vm481_vm7, %v3453_v34, 0 }
0x19fb   :  { %v3336_v41 = vsub.f32 %v3331_v36, %v3335_v40  ;;  %v3495_v36 = vsel %vm481_vm7, %v3455_v32, 0  ;;  %v3492_v40 = vsel %vm481_vm7, %v3454_v35, 0  ;;  %v3785_v35 = vpack.c.b16 %v3769_v26, %v3769_v26  ;;  %v3385_v26 = vld [vmem:[#allocation5 + $0x43] ss:$8 sm:$0xf0] }
0x19fd   :  { %v3337_v42 = vmul.f32 %v3336_v41, %v3336_v41 }
0x19ff   :  { %v3338_v43 = vsel %vm79_vm1, %v3337_v42, 0.0  ;;  %v3368_v42 = vld [vmem:[#allocation7 + $0xf0] sm:$0x33] }
0x1a00   :  { %3339 = vadd.xlane.f32.xlu2 %v3338_v43  ;;  %v3441_v4 = vunpack.c.l.b16 %v3368_v42  ;;  %v3442_v2 = vunpack.c.h.b16 %v3368_v42 }
0x1a02   :  { %v3457_v47 = vpack.c.b16 %v3441_v4, %v3441_v4  ;;  %v3458_v48 = vpack.c.b16 %v3442_v2, %v3442_v2  ;;  %v3801_v4 = vrot.slane %v3785_v35, 2 }
0x1a04   :  { %v3501_v53 = vsel %vm481_vm7, %v3457_v47, 0  ;;  %v3504_v54 = vsel %vm481_vm7, %v3458_v48, 0 }
0x1a18   :  { %3354 = vrot.lane.b32.xlu2 %v6875_v5, %s6472_s21 }
0x1a73   :  { %v3340_v59 = vpop.xlane.xlu2 %3339 }
0x1a74   :  { %v3341_v28 = vmul.f32 %v3340_v59, %v6590_v45  ;;  %v3760_v59 = vunpack.c.l.b16 %v3370_v57 }
0x1a76   :  { %v3342_v39 = vadd.f32 1e-05, %v3341_v28  ;;  %v3776_v28 = vpack.c.b16 %v3760_v59, %v3760_v59  ;;  %v3376_v59 = vld [vmem:[#allocation7 + $0xf0] sm:$0xcc] }
0x1a78   :  { %6318 = vrsqrt.f32 %v3342_v39  ;;  %vm3349_vm9 = vweird.f32 %v3342_v39  ;;  %v3792_v63 = vrot.slane %v3776_v28, 2 }
0x1a7b   :  { %v3355_v50 = vpop.permute.xlu2 %3354 }
0x1a7e   :  { %v6319_v15 = vpop.eup %6318 }
0x1a7f   :  { %v3344_v16 = vmul.f32 %v6319_v15, %v3342_v39  ;;  %vm3350_vm8 = vweird.f32 %v6319_v15  ;;  %v3761_v39 = vunpack.c.h.b16 %v3370_v57 }
0x1a80   :  { %vm3351_vm10 = vmor %vm3349_vm9, %vm3350_vm8 }
0x1a81   :  { %v3345_v17 = vmul.f32 %v6319_v15, %v3344_v16  ;;  %v3777_v7 = vpack.c.b16 %v3761_v39, %v3761_v39  ;;  %v3796_v16 = vrot.slane %v3780_v12, 2 }
0x1a83   :  { %v3346_v19 = vmul.f32 0.5, %v3345_v17  ;;  %v3793_v8 = vrot.slane %v3777_v7, 2  ;;  %v3767_v17 = vunpack.c.h.b16 %v3373_v14 }
0x1a85   :  { %v3347_v20 = vsub.f32 1.5, %v3346_v19  ;;  %v3797_v19 = vrot.slane %v3781_v13, 2  ;;  %v3783_v21 = vpack.c.b16 %v3767_v17, %v3767_v17 }
0x1a87   :  { %v3348_v22 = vmul.f32 %v6319_v15, %v3347_v20  ;;  %v3799_v52 = vrot.slane %v3783_v21, 2 }
0x1a89   :  { %v3352_v9 = vsel %vm3351_vm10, %v6319_v15, %v3348_v22  ;;  %v3766_v15 = vunpack.c.l.b16 %v3373_v14 }
0x1a8a   :  { %v3353_v25 = vmul.f32 %v3352_v9, %v3336_v41  ;;  %v3369_v41 = vld [vmem:[#allocation7 + $0xf8] sm:$0x33]  ;;  %v3380_v9 = vld [vmem:[#allocation5 + $0x3] ss:$8 sm:$0xf] }
0x1a8b   :  { %v3443_v43 = vunpack.c.l.b16 %v3369_v41  ;;  %v3444_v18 = vunpack.c.h.b16 %v3369_v41  ;;  %v3782_v20 = vpack.c.b16 %v3766_v15, %v3766_v15  ;;  %v3771_v41 = vunpack.c.h.b16 %v3375_v33 }
0x1a8c   :  { %v3357_v31 = vmul.f32 %v3355_v50, %v3353_v25  ;;  %v3381_v50 = vld [vmem:[#allocation5 + $0x3] ss:$8 sm:$0xf0]  ;;  %v3768_v25 = vunpack.c.l.b16 %v3374_v24 }
0x1a8d   :  { %v3459_v44 = vpack.c.b16 %v3443_v43, %v3443_v43  ;;  %v3460_v3 = vpack.c.b16 %v3444_v18, %v3444_v18  ;;  %v3798_v22 = vrot.slane %v3782_v20, 2  ;;  %v6950_v23 = vor.u32 %v3381_v50, %v3380_v9 }
0x1a8e   :  { %v6922_v49 = vadd.f32 %v3359_v30, %v3357_v31  ;;  %v3784_v34 = vpack.c.b16 %v3768_v25, %v3768_v25  ;;  %v3775_v20 = vunpack.c.h.b16 %v3377_v27  ;;  %v3384_v25 = vld [vmem:[#allocation5 + $0x43] ss:$8 sm:$0xf] }
0x1a8f   :  { %v3507_v51 = vsel %vm481_vm7, %v3459_v44, 0  ;;  %v3510_v56 = vsel %vm481_vm7, %v3460_v3, 0  ;;  %v3389_v29 = vperm.slane %v6950_v23, 0  ;;  %v3390_v30 = vperm.slane %v6950_v23, 1 }
0x1a90   :  { %v3378_v6 = vpack.c.bf16 %v6922_v49, %v6922_v49  ;;  %v3391_v42 = vperm.slane %v6950_v23, 2  ;;  %v3392_v43 = vperm.slane %v6950_v23, 3  ;;  %v3800_v18 = vrot.slane %v3784_v34, 2 }
0x1a91   :  { %v3394_v39 = vperm.slane %v6950_v23, 5  ;;  %v3395_v21 = vperm.slane %v6950_v23, 6 }
0x1a92   :  { %6157 = vmatmul.msk.bf16.vlgmr.msra.gmra.mxu0 %vm79_vm1, %v3378_v6  ;;  %6158 = vmatmul.msk.bf16.vlgmr.msra.gmra.mxu1 %vm79_vm1, %v3378_v6 }
0x1a93   :  { %6159 = vmatmul.msk.bf16.vlgmr.msra.gmra.mxu2 %vm79_vm1, %v3378_v6  ;;  %6160 = vmatmul.msk.bf16.vlgmr.msra.gmra.mxu3 %vm79_vm1, %v3378_v6 }
0x1a94   :  { %3649 = vmatpush.bf16.msra.mxu2 %v3495_v36  ;;  %3662 = vmatpush.bf16.msra.mxu3 %v3498_v37 }
0x1a95   :  { %3623 = vmatpush.bf16.msra.mxu0 %v3489_v38  ;;  %3636 = vmatpush.bf16.msra.mxu1 %v3492_v40  ;;  %v3770_v40 = vunpack.c.l.b16 %v3375_v33 }
0x1a97   :  { %v3786_v48 = vpack.c.b16 %v3770_v40, %v3770_v40 }
0x1a99   :  { %v3802_v60 = vrot.slane %v3786_v48, 2 }
0x1aa2   :  { %6161 = vmatmul.msk.bf16.vlgmr.msrb.gmra.mxu0 %vm79_vm1, %v3378_v6  ;;  %6162 = vmatmul.msk.bf16.vlgmr.msrb.gmra.mxu1 %vm79_vm1, %v3378_v6 }
0x1aa3   :  { %6163 = vmatmul.msk.bf16.vlgmr.msrb.gmra.mxu2 %vm79_vm1, %v3378_v6  ;;  %6164 = vmatmul.msk.bf16.vlgmr.msrb.gmra.mxu3 %vm79_vm1, %v3378_v6 }
0x1aa4   :  { %3701 = vmatpush.bf16.msrb.mxu2 %v3507_v51  ;;  %3714 = vmatpush.bf16.msrb.mxu3 %v3510_v56  ;;  %v3787_v51 = vpack.c.b16 %v3771_v41, %v3771_v41 }
0x1aa5   :  { %3675 = vmatpush.bf16.msrb.mxu0 %v3501_v53  ;;  %3688 = vmatpush.bf16.msrb.mxu1 %v3504_v54 }
0x1aa6   :  { %v3803_v46 = vrot.slane %v3787_v51, 2 }
0x1ab2   :  { %6165 = vmatmul.msk.bf16.vlgmr.msra.gmra.mxu0 %vm79_vm1, %v3378_v6  ;;  %6166 = vmatmul.msk.bf16.vlgmr.msra.gmra.mxu1 %vm79_vm1, %v3378_v6 }
0x1ab3   :  { %6167 = vmatmul.msk.bf16.vlgmr.msra.gmra.mxu2 %vm79_vm1, %v3378_v6  ;;  %6168 = vmatmul.msk.bf16.vlgmr.msra.gmra.mxu3 %vm79_vm1, %v3378_v6 }
0x1ab4   :  { %3860 = vmatpush.bf16.xpose.msra.mxu2 %v3794_v62  ;;  %3834 = vmatpush.bf16.xpose.msra.mxu0 %v3792_v63  ;;  %v3772_v62 = vunpack.c.l.b16 %v3376_v59  ;;  %v3773_v63 = vunpack.c.h.b16 %v3376_v59 }
0x1ab5   :  { %3873 = vmatpush.bf16.xpose.msra.mxu3 %v3795_v1  ;;  %3847 = vmatpush.bf16.xpose.msra.mxu1 %v3793_v8  ;;  %v3393_v1 = vperm.slane %v6950_v23, 4 }
0x1ab6   :  { %v3788_v12 = vpack.c.b16 %v3772_v62, %v3772_v62  ;;  %v3789_v13 = vpack.c.b16 %v3773_v63, %v3773_v63 }
0x1ab8   :  { %v3805_v9 = vrot.slane %v3789_v13, 2 }
0x1ac2   :  { %6169 = vmatmul.msk.bf16.vlgmr.msrb.gmra.mxu0 %vm79_vm1, %v3378_v6  ;;  %6170 = vmatmul.msk.bf16.vlgmr.msrb.gmra.mxu1 %vm79_vm1, %v3378_v6 }
0x1ac3   :  { %6171 = vmatmul.msk.bf16.vlgmr.msrb.gmra.mxu2 %vm79_vm1, %v3378_v6  ;;  %6172 = vmatmul.msk.bf16.vlgmr.msrb.gmra.mxu3 %vm79_vm1, %v3378_v6 }
0x1ac4   :  { %3886 = vmatpush.bf16.xpose.msrb.mxu0 %v3796_v16  ;;  %3899 = vmatpush.bf16.xpose.msrb.mxu1 %v3797_v19  ;;  %v3774_v19 = vunpack.c.l.b16 %v3377_v27 }
0x1ac5   :  { %3912 = vmatpush.bf16.xpose.msrb.mxu2 %v3798_v22  ;;  %3925 = vmatpush.bf16.xpose.msrb.mxu3 %v3799_v52  ;;  %v3396_v22 = vperm.slane %v6950_v23, 7  ;;  %v3804_v52 = vrot.slane %v3788_v12, 2 }
0x1b0f   :  { %v3521_v31 = vpop.f32.mrf.mxu0  ;;  %v3534_v32 = vpop.f32.mrf.mxu1 }
0x1b10   :  { %v3522_v6 = vadd.f32 %v3521_v31, %v3389_v29  ;;  %v3535_v36 = vadd.f32 %v3534_v32, %v3390_v30  ;;  %v3790_v31 = vpack.c.b16 %v3774_v19, %v3774_v19  ;;  %v3791_v32 = vpack.c.b16 %v3775_v20, %v3775_v20 }
0x1b12   :  { %v3720_v37 = vmax.f32 %v3522_v6, 0.0  ;;  %v3721_v38 = vmax.f32 %v3535_v36, 0.0  ;;  %v3386_v36 = vor.u32 %v3385_v26, %v3384_v25  ;;  %v3807_v40 = vrot.slane %v3791_v32, 2 }
0x1b14   :  { %v3736_v2 = vpack.c.bf16 %v3720_v37, %v3720_v37  ;;  %v3737_v44 = vpack.c.bf16 %v3721_v38, %v3721_v38  ;;  %v3806_v38 = vrot.slane %v3790_v31, 2  ;;  %v3404_v19 = vperm.slane %v3386_v36, 7 }
0x1b16   :  { %v3547_v3 = vpop.f32.mrf.mxu2  ;;  %v3560_v47 = vpop.f32.mrf.mxu3  ;;  %3835 = vmatmul.bf16.vlgmr.msra.gmra.mxu0 %v3736_v2  ;;  %3848 = vmatmul.bf16.vlgmr.msra.gmra.mxu1 %v3737_v44 }
0x1b17   :  { %v3548_v56 = vadd.f32 %v3547_v3, %v3391_v42  ;;  %v3561_v53 = vadd.f32 %v3560_v47, %v3392_v43  ;;  %v3523_v54 = vpop.f32.mrf.mxu0  ;;  %v3536_v55 = vpop.f32.mrf.mxu1  ;;  %3938 = vmatpush.bf16.xpose.msra.mxu0 %v3800_v18  ;;  %3951 = vmatpush.bf16.xpose.msra.mxu1 %v3801_v4  ;;  %v3397_v43 = vperm.slane %v3386_v36, 0  ;;  %v3398_v18 = vperm.slane %v3386_v36, 1 }
0x1b18   :  { %v3400_v54 = vperm.slane %v3386_v36, 3 }
0x1b19   :  { %v3722_v57 = vmax.f32 %v3548_v56, 0.0  ;;  %v3723_v58 = vmax.f32 %v3561_v53, 0.0  ;;  %v3399_v53 = vperm.slane %v3386_v36, 2 }
0x1b1b   :  { %v3738_v28 = vpack.c.bf16 %v3722_v57, %v3722_v57  ;;  %v3739_v61 = vpack.c.bf16 %v3723_v58, %v3723_v58 }
0x1b1d   :  { %3861 = vmatmul.bf16.vlgmr.msra.gmra.mxu2 %v3738_v28  ;;  %3874 = vmatmul.bf16.vlgmr.msra.gmra.mxu3 %v3739_v61 }
0x1b1e   :  { %v3549_v7 = vpop.f32.mrf.mxu2  ;;  %v3562_v8 = vpop.f32.mrf.mxu3  ;;  %3964 = vmatpush.bf16.xpose.msra.mxu2 %v3802_v60  ;;  %3977 = vmatpush.bf16.xpose.msra.mxu3 %v3803_v46 }
0x1b1f   :  { %v3573_v10 = vpop.f32.mrf.mxu0  ;;  %v3586_v11 = vpop.f32.mrf.mxu1  ;;  %v3401_v7 = vperm.slane %v3386_v36, 4  ;;  %v3402_v8 = vperm.slane %v3386_v36, 5 }
0x1b20   :  { %v3574_v14 = vadd.f32 %v3573_v10, %v3393_v1  ;;  %v3587_v15 = vadd.f32 %v3586_v11, %v3394_v39 }
0x1b22   :  { %v3724_v16 = vmax.f32 %v3574_v14, 0.0  ;;  %v3725_v17 = vmax.f32 %v3587_v15, 0.0 }
0x1b24   :  { %v3740_v50 = vpack.c.bf16 %v3724_v16, %v3724_v16  ;;  %v3741_v24 = vpack.c.bf16 %v3725_v17, %v3725_v17  ;;  %v3403_v17 = vperm.slane %v3386_v36, 6 }
0x1b26   :  { %v3599_v29 = vpop.f32.mrf.mxu2  ;;  %v3612_v30 = vpop.f32.mrf.mxu3  ;;  %3887 = vmatmul.bf16.vlgmr.msrb.gmra.mxu0 %v3740_v50  ;;  %3900 = vmatmul.bf16.vlgmr.msrb.gmra.mxu1 %v3741_v24 }
0x1b27   :  { %v3600_v33 = vadd.f32 %v3599_v29, %v3395_v21  ;;  %v3613_v34 = vadd.f32 %v3612_v30, %v3396_v22  ;;  %v3575_v35 = vpop.f32.mrf.mxu0  ;;  %v3588_v6 = vpop.f32.mrf.mxu1  ;;  %3990 = vmatpush.bf16.xpose.msrb.mxu0 %v3804_v52  ;;  %4003 = vmatpush.bf16.xpose.msrb.mxu1 %v3805_v9 }
0x1b29   :  { %v3726_v23 = vmax.f32 %v3600_v33, 0.0  ;;  %v3727_v37 = vmax.f32 %v3613_v34, 0.0 }
0x1b2b   :  { %v3742_v41 = vpack.c.bf16 %v3726_v23, %v3726_v23  ;;  %v3743_v42 = vpack.c.bf16 %v3727_v37, %v3727_v37  ;;  %v3825_v23 = vpop.permute.xlu0 %3824 }
0x1b2d   :  { %3913 = vmatmul.bf16.vlgmr.msrb.gmra.mxu2 %v3742_v41  ;;  %3926 = vmatmul.bf16.vlgmr.msrb.gmra.mxu3 %v3743_v42 }
0x1b2e   :  { %v3601_v4 = vpop.f32.mrf.mxu2  ;;  %v3614_v2 = vpop.f32.mrf.mxu3  ;;  %4016 = vmatpush.bf16.xpose.msrb.mxu2 %v3806_v38  ;;  %4029 = vmatpush.bf16.xpose.msrb.mxu3 %v3807_v40 }
0x1b2f   :  { %v3625_v44 = vpop.f32.mrf.mxu0  ;;  %v3638_v3 = vpop.f32.mrf.mxu1 }
0x1b30   :  { %v3626_v47 = vadd.f32 %v3625_v44, %v3397_v43  ;;  %v3639_v48 = vadd.f32 %v3638_v3, %v3398_v18 }
0x1b32   :  { %v3728_v51 = vmax.f32 %v3626_v47, 0.0  ;;  %v3729_v56 = vmax.f32 %v3639_v48, 0.0 }
0x1b34   :  { %v3744_v55 = vpack.c.bf16 %v3728_v51, %v3728_v51  ;;  %v3745_v57 = vpack.c.bf16 %v3729_v56, %v3729_v56 }
0x1b36   :  { %v3651_v58 = vpop.f32.mrf.mxu2  ;;  %v3664_v59 = vpop.f32.mrf.mxu3  ;;  %3939 = vmatmul.bf16.vlgmr.msra.gmra.mxu0 %v3744_v55  ;;  %3952 = vmatmul.bf16.vlgmr.msra.gmra.mxu1 %v3745_v57 }
0x1b37   :  { %v3652_v60 = vadd.f32 %v3651_v58, %v3399_v53  ;;  %v3665_v46 = vadd.f32 %v3664_v59, %v3400_v54  ;;  %v3627_v28 = vpop.f32.mrf.mxu0  ;;  %v3640_v61 = vpop.f32.mrf.mxu1 }
0x1b39   :  { %v3730_v62 = vmax.f32 %v3652_v60, 0.0  ;;  %v3731_v63 = vmax.f32 %v3665_v46, 0.0 }
0x1b3b   :  { %v3746_v1 = vpack.c.bf16 %v3730_v62, %v3730_v62  ;;  %v3747_v39 = vpack.c.bf16 %v3731_v63, %v3731_v63 }
0x1b3d   :  { %3965 = vmatmul.bf16.vlgmr.msra.gmra.mxu2 %v3746_v1  ;;  %3978 = vmatmul.bf16.vlgmr.msra.gmra.mxu3 %v3747_v39 }
0x1b3e   :  { %v3653_v10 = vpop.f32.mrf.mxu2  ;;  %v3666_v11 = vpop.f32.mrf.mxu3 }
0x1b3f   :  { %v3677_v27 = vpop.f32.mrf.mxu0  ;;  %v3690_v12 = vpop.f32.mrf.mxu1 }
0x1b40   :  { %v3678_v13 = vadd.f32 %v3677_v27, %v3401_v7  ;;  %v3691_v14 = vadd.f32 %v3690_v12, %v3402_v8 }
0x1b42   :  { %v3732_v15 = vmax.f32 %v3678_v13, 0.0  ;;  %v3733_v16 = vmax.f32 %v3691_v14, 0.0 }
0x1b44   :  { %v3748_v20 = vpack.c.bf16 %v3732_v15, %v3732_v15  ;;  %v3749_v21 = vpack.c.bf16 %v3733_v16, %v3733_v16 }
0x1b46   :  { %v3703_v22 = vpop.f32.mrf.mxu2  ;;  %v3716_v52 = vpop.f32.mrf.mxu3  ;;  %3991 = vmatmul.bf16.vlgmr.msrb.gmra.mxu0 %v3748_v20  ;;  %4004 = vmatmul.bf16.vlgmr.msrb.gmra.mxu1 %v3749_v21 }
0x1b47   :  { %v3704_v9 = vadd.f32 %v3703_v22, %v3403_v17  ;;  %v3717_v50 = vadd.f32 %v3716_v52, %v3404_v19  ;;  %v3679_v24 = vpop.f32.mrf.mxu0  ;;  %v3692_v25 = vpop.f32.mrf.mxu1 }
0x1b49   :  { %v3734_v26 = vmax.f32 %v3704_v9, 0.0  ;;  %v3735_v29 = vmax.f32 %v3717_v50, 0.0 }
0x1b4b   :  { %v3750_v30 = vpack.c.bf16 %v3734_v26, %v3734_v26  ;;  %v3751_v31 = vpack.c.bf16 %v3735_v29, %v3735_v29 }
0x1b4d   :  { %4017 = vmatmul.bf16.vlgmr.msrb.gmra.mxu2 %v3750_v30  ;;  %4030 = vmatmul.bf16.vlgmr.msrb.gmra.mxu3 %v3751_v31 }
0x1b4e   :  { %v3705_v32 = vpop.f32.mrf.mxu2  ;;  %v3718_v33 = vpop.f32.mrf.mxu3 }
0x1b93   :  { %v3836_v34 = vpop.f32.mrf.mxu0  ;;  %v3849_v35 = vpop.f32.mrf.mxu1 }
0x1b94   :  { %v3837_v40 = vadd.f32 %v3836_v34, %v3825_v23 }
0x1b96   :  { %v3850_v43 = vadd.f32 %v3849_v35, %v3837_v40 }
0x1b9b   :  { %v3838_v6 = vpop.f32.mrf.mxu0  ;;  %v3851_v36 = vpop.f32.mrf.mxu1 }
0x1ba0   :  { %v3862_v37 = vpop.f32.mrf.mxu2  ;;  %v3875_v38 = vpop.f32.mrf.mxu3 }
0x1ba1   :  { %v3863_v18 = vadd.f32 %v3862_v37, %v3850_v43  ;;  %v6980_v43 = vld [vmem:[%s7192_s3 + $0x4] ss:$0 sm:$0xff] }
0x1ba3   :  { %v3888_v41 = vpop.f32.mrf.mxu0  ;;  %v3901_v42 = vpop.f32.mrf.mxu1  ;;  %v3876_v44 = vadd.f32 %v3875_v38, %v3863_v18 }
0x1ba5   :  { %v3889_v48 = vadd.f32 %v3888_v41, %v3876_v44 }
0x1ba7   :  { %v3902_v53 = vadd.f32 %v3901_v42, %v3889_v48 }
0x1ba8   :  { %v3864_v4 = vpop.f32.mrf.mxu2  ;;  %v3877_v2 = vpop.f32.mrf.mxu3 }
0x1bab   :  { %v3890_v3 = vpop.f32.mrf.mxu0  ;;  %v3903_v47 = vpop.f32.mrf.mxu1 }
0x1bb0   :  { %v3914_v51 = vpop.f32.mrf.mxu2  ;;  %v3927_v56 = vpop.f32.mrf.mxu3 }
0x1bb1   :  { %v3915_v57 = vadd.f32 %v3914_v51, %v3902_v53 }
0x1bb3   :  { %v3940_v54 = vpop.f32.mrf.mxu0  ;;  %v3953_v55 = vpop.f32.mrf.mxu1  ;;  %v3928_v60 = vadd.f32 %v3927_v56, %v3915_v57 }
0x1bb5   :  { %v3941_v61 = vadd.f32 %v3940_v54, %v3928_v60 }
0x1bb7   :  { %v3954_v1 = vadd.f32 %v3953_v55, %v3941_v61 }
0x1bb8   :  { %v3916_v58 = vpop.f32.mrf.mxu2  ;;  %v3929_v59 = vpop.f32.mrf.mxu3 }
0x1bbb   :  { %v3942_v46 = vpop.f32.mrf.mxu0  ;;  %v3955_v28 = vpop.f32.mrf.mxu1 }
0x1bc0   :  { %v3966_v62 = vpop.f32.mrf.mxu2  ;;  %v3979_v63 = vpop.f32.mrf.mxu3 }
0x1bc1   :  { %v3967_v39 = vadd.f32 %v3966_v62, %v3954_v1 }
0x1bc3   :  { %v3992_v7 = vpop.f32.mrf.mxu0  ;;  %v4005_v8 = vpop.f32.mrf.mxu1  ;;  %v3980_v10 = vadd.f32 %v3979_v63, %v3967_v39 }
0x1bc5   :  { %v3993_v12 = vadd.f32 %v3992_v7, %v3980_v10 }
0x1bc7   :  { %v4006_v15 = vadd.f32 %v4005_v8, %v3993_v12 }
0x1bc8   :  { %v3968_v11 = vpop.f32.mrf.mxu2  ;;  %v3981_v27 = vpop.f32.mrf.mxu3 }
0x1bcb   :  { %v3994_v13 = vpop.f32.mrf.mxu0  ;;  %v4007_v14 = vpop.f32.mrf.mxu1 }
0x1bd0   :  { %v4018_v16 = vpop.f32.mrf.mxu2  ;;  %v4031_v17 = vpop.f32.mrf.mxu3 }
0x1bd1   :  { %v4019_v19 = vadd.f32 %v4018_v16, %v4006_v15 }
0x1bd3   :  { %v4032_v20 = vadd.f32 %v4031_v17, %v4019_v19 }
0x1bd5   :  { %v4035_v21 = vadd.f32 %v4032_v20, %v6922_v49  ;;  %v6968_v49 = vld [vmem:[#allocation2 + $0x10] sm:$0xf] }
0x1bd6   :  { %6173 = vmatpush.msk.msra.mxu0 %vm83_vm0, %v6968_v49 }
0x1bd7   :  { %v4036_v22 = vsel %vm79_vm1, %v4035_v21, 0.0 }
0x1bd8   :  { %v4020_v52 = vpop.f32.mrf.mxu2  ;;  %v4033_v9 = vpop.f32.mrf.mxu3  ;;  %4037 = vadd.xlane.f32.xlu2 %v4036_v22 }
0x1bf0   :  { %4058 = vrot.lane.b32.xlu2 %v6875_v5, %s6476_s24 }
0x1c4b   :  { %v4038_v50 = vpop.xlane.xlu2 %4037 }
0x1c4c   :  { %v4039_v24 = vmul.f32 %v4038_v50, %v6590_v45 }
0x1c4e   :  { %v4040_v25 = vsub.f32 %v4035_v21, %v4039_v24 }
0x1c50   :  { %v4041_v26 = vmul.f32 %v4040_v25, %v4040_v25 }
0x1c52   :  { %v4042_v29 = vsel %vm79_vm1, %v4041_v26, 0.0 }
0x1c53   :  { %4043 = vadd.xlane.f32.xlu0 %v4042_v29  ;;  %v4059_v37 = vpop.permute.xlu2 %4058 }
0x1c67   :  { %4062 = vrot.lane.b32.xlu0 %v6875_v5, %s6477_s27 }
0x1cc6   :  { %v4044_v30 = vpop.xlane.xlu0 %4043 }
0x1cc7   :  { %v4045_v31 = vmul.f32 %v4044_v30, %v6590_v45 }
0x1cc9   :  { %v4046_v32 = vadd.f32 1e-05, %v4045_v31 }
0x1ccb   :  { %6320 = vrsqrt.f32 %v4046_v32  ;;  %vm4053_vm12 = vweird.f32 %v4046_v32 }
0x1cd1   :  { %v6321_v33 = vpop.eup %6320 }
0x1cd2   :  { %v4048_v34 = vmul.f32 %v6321_v33, %v4046_v32  ;;  %vm4054_vm11 = vweird.f32 %v6321_v33 }
0x1cd3   :  { %vm4055_vm13 = vmor %vm4053_vm12, %vm4054_vm11 }
0x1cd4   :  { %v4049_v35 = vmul.f32 %v6321_v33, %v4048_v34 }
0x1cd6   :  { %v4050_v6 = vmul.f32 0.5, %v4049_v35 }
0x1cd8   :  { %v4051_v36 = vsub.f32 1.5, %v4050_v6 }
0x1cd9   :  { %v4063_v40 = vpop.permute.xlu0 %4062 }
0x1cda   :  { %v4052_v23 = vmul.f32 %v6321_v33, %v4051_v36 }
0x1cdc   :  { %v4056_v5 = vsel %vm4055_vm13, %v6321_v33, %v4052_v23 }
0x1cdd   :  { %v4057_v38 = vmul.f32 %v4056_v5, %v4040_v25 }
0x1cdf   :  { %v4061_v41 = vmul.f32 %v4059_v37, %v4057_v38 }
0x1ce1   :  { %v6973_v42 = vadd.f32 %v4063_v40, %v4061_v41 }
0x1ce3   :  { %6174 = vmatmul.msk.f32.vlgmr.msra.gmra.mxu0 %vm79_vm1, %v6973_v42 }
0x1d60   :  { %v4093_v18 = vpop.f32.mrf.mxu0 }
0x1d61   :  { %v4094_v4 = vadd.f32 %v6980_v43, %v4093_v18 }
0x1d63   :  { %4096 = vxpose.xlu2.b32.start.end [1/1] (short) (narrow) %v4094_v4, 16 }
0x1dfc   :  { %v4112_v2 = vpop.trf.xlu2 }
0x1dfd   :  { %4157 = vst [vmem:[#allocation1] sm:$0xff] %v4112_v2  ;;  %v4135_v44 = vperm.slane %v4112_v2, 1  ;;  %v4128_v3 = vperm.slane %v4112_v2, 0  ;;  %v4149_v47 = vperm.slane %v4112_v2, 3  ;;  %v4142_v48 = vperm.slane %v4112_v2, 2 }
0x1dff   :  { %4140 = vperm.xlu0 %6231, %v4135_v44   ;;  %4133 = vperm.xlu1 %6232, %v4128_v3  }
0x1e04   :  { %v4161_v51 = vld [vmem:[#allocation1 + $0x5] ss:$9 sm:$0xff]  ;;  %v4165_v28 = vld [vmem:[#allocation1 + $0x7] ss:$9 sm:$0xff]  ;;  %v4113_v27 = vpop.trf.xlu2 }
0x1e05   :  { %v4159_v56 = vld [vmem:[#allocation1 + $0x4] ss:$9 sm:$0xff]  ;;  %v4167_v53 = vperm.slane %v4161_v51, 0  ;;  %v4163_v61 = vld [vmem:[#allocation1 + $0x6] ss:$9 sm:$0xff]  ;;  %v4169_v62 = vperm.slane %v4165_v28, 0 }
0x1e06   :  { %v4166_v54 = vperm.slane %v4159_v56, 0  ;;  %v4168_v63 = vperm.slane %v4163_v61, 0  ;;  %v4215_v29 = vrot.slane %v4113_v27, 1  ;;  %v4218_v35 = vperm.slane %v4113_v27, 0 }
0x1e07   :  { %4154 = vperm.xlu0 %6231, %v4149_v47   ;;  %4147 = vperm.xlu1 %6232, %v4142_v48   ;;  %v4217_v23 = vrot.slane %v4113_v27, 3  ;;  %v4216_v5 = vrot.slane %v4113_v27, 2 }
0x1e08   :  { %v4219_v34 = vperm.slane %v4215_v29, 0 }
0x1e09   :  { %v4221_v40 = vperm.slane %v4217_v23, 0  ;;  %v4220_v41 = vperm.slane %v4216_v5, 0  ;;  %v4359_v23 = vld [vmem:[#allocation7 + $0x118] sm:$0x33] }
0x1e71   :  { %v4141_v55 = vpop.permute.xlu0 %4140  ;;  %v4134_v57 = vpop.permute.xlu1 %4133 }
0x1e72   :  { %v4175_v58 = vmul.f32 %v4167_v53, %v4141_v55  ;;  %v4174_v59 = vmul.f32 %v4166_v54, %v4134_v57 }
0x1e74   :  { %v4181_v60 = vsel %vm189_vm2, %v4175_v58, -inf  ;;  %v4178_v46 = vsel %vm189_vm2, %v4174_v59, -inf }
0x1e75   :  { %4182 = vmax.xlane.f32.xlu0 %v4181_v60  ;;  %4179 = vmax.xlane.f32.xlu1 %v4178_v46 }
0x1e79   :  { %v4155_v1 = vpop.permute.xlu0 %4154  ;;  %v4148_v39 = vpop.permute.xlu1 %4147 }
0x1e7a   :  { %v4177_v7 = vmul.f32 %v4169_v62, %v4155_v1  ;;  %v4176_v8 = vmul.f32 %v4168_v63, %v4148_v39 }
0x1e7c   :  { %v4187_v10 = vsel %vm189_vm2, %v4177_v7, -inf  ;;  %v4184_v11 = vsel %vm189_vm2, %v4176_v8, -inf }
0x1e7d   :  { %4188 = vmax.xlane.f32.xlu1 %v4187_v10  ;;  %4185 = vmax.xlane.f32.xlu2 %v4184_v11 }
0x1ee8   :  { %v4183_v12 = vpop.xlane.xlu0 %4182  ;;  %v4180_v13 = vpop.xlane.xlu1 %4179 }
0x1ee9   :  { %v4191_v14 = vsub.f32 %v4175_v58, %v4183_v12  ;;  %v4190_v15 = vsub.f32 %v4174_v59, %v4180_v13 }
0x1eeb   :  { %v4196_v16 = vmul.f32 1.442695, %v4191_v14  ;;  %v4194_v17 = vmul.f32 1.442695, %v4190_v15 }
0x1eed   :  { %6322 = vpow2.f32 %v4196_v16 }
0x1eee   :  { %6324 = vpow2.f32 %v4194_v17 }
0x1ef0   :  { %v4189_v19 = vpop.xlane.xlu1 %4188  ;;  %v4186_v20 = vpop.xlane.xlu2 %4185 }
0x1ef1   :  { %v4193_v21 = vsub.f32 %v4177_v7, %v4189_v19  ;;  %v4192_v22 = vsub.f32 %v4176_v8, %v4186_v20 }
0x1ef3   :  { %v6323_v52 = vpop.eup %6322  ;;  %v4200_v9 = vmul.f32 1.442695, %v4193_v21  ;;  %v4198_v50 = vmul.f32 1.442695, %v4192_v22 }
0x1ef4   :  { %v6325_v24 = vpop.eup %6324  ;;  %v4205_v25 = vsel %vm189_vm2, %v6323_v52, 0.0  ;;  %v4227_v6 = vmul.f32 %v6323_v52, %v4219_v34  ;;  %v4356_v52 = vld [vmem:[#allocation7 + $0x100] sm:$0x33] }
0x1ef5   :  { %6326 = vpow2.f32 %v4200_v9  ;;  %4206 = vadd.xlane.f32.xlu1 %v4205_v25  ;;  %v4202_v26 = vsel %vm189_vm2, %v6325_v24, 0.0  ;;  %v4226_v36 = vmul.f32 %v6325_v24, %v4218_v35  ;;  %v4423_v9 = vunpack.c.l.b16 %v4356_v52  ;;  %v4357_v25 = vld [vmem:[#allocation7 + $0x108] sm:$0x33] }
0x1ef6   :  { %6328 = vpow2.f32 %v4198_v50  ;;  %4203 = vadd.xlane.f32.xlu0 %v4202_v26  ;;  %v4233_v37 = vsel %vm189_vm2, %v4227_v6, 0.0 }
0x1ef7   :  { %v4230_v38 = vsel %vm189_vm2, %v4226_v36, 0.0  ;;  %v4439_v50 = vpack.c.b16 %v4423_v9, %v4423_v9  ;;  %v4358_v36 = vld [vmem:[#allocation7 + $0x110] sm:$0x33] }
0x1ef9   :  { %v4459_v26 = vsel %vm481_vm7, %v4439_v50, 0 }
0x1efa   :  { %4513 = vmatpush.bf16.msra.mxu2 %v4459_v26 }
0x1efb   :  { %v6327_v30 = vpop.eup %6326 }
0x1efc   :  { %v6329_v31 = vpop.eup %6328  ;;  %v4211_v32 = vsel %vm189_vm2, %v6327_v30, 0.0  ;;  %v4229_v18 = vmul.f32 %v6327_v30, %v4221_v40  ;;  %v4425_v30 = vunpack.c.l.b16 %v4357_v25  ;;  %v4429_v40 = vunpack.c.l.b16 %v4359_v23 }
0x1efd   :  { %4212 = vadd.xlane.f32.xlu1 %v4211_v32  ;;  %v4208_v33 = vsel %vm189_vm2, %v6329_v31, 0.0  ;;  %v4228_v4 = vmul.f32 %v6329_v31, %v4220_v41  ;;  %v4426_v31 = vunpack.c.h.b16 %v4357_v25  ;;  %v4430_v41 = vunpack.c.h.b16 %v4359_v23 }
0x1efe   :  { %4209 = vadd.xlane.f32.xlu0 %v4208_v33  ;;  %v4239_v2 = vsel %vm189_vm2, %v4229_v18, 0.0  ;;  %v4441_v32 = vpack.c.b16 %v4425_v30, %v4425_v30 }
0x1eff   :  { %v4236_v44 = vsel %vm189_vm2, %v4228_v4, 0.0  ;;  %v4442_v33 = vpack.c.b16 %v4426_v31, %v4426_v31 }
0x1f00   :  { %v4465_v34 = vsel %vm481_vm7, %v4441_v32, 0 }
0x1f01   :  { %v4468_v35 = vsel %vm481_vm7, %v4442_v33, 0  ;;  %4539 = vmatpush.bf16.msrb.mxu0 %v4465_v34  ;;  %v4364_v33 = vld [vmem:[#allocation7 + $0x100] sm:$0xcc] }
0x1f02   :  { %v4754_v34 = vunpack.c.l.b16 %v4364_v33 }
0x1f05   :  { %4234 = vadd.xlane.f32.xlu1 %v4233_v37  ;;  %v4427_v37 = vunpack.c.l.b16 %v4358_v36 }
0x1f06   :  { %4231 = vadd.xlane.f32.xlu0 %v4230_v38  ;;  %v4428_v38 = vunpack.c.h.b16 %v4358_v36 }
0x1f07   :  { %v4443_v4 = vpack.c.b16 %v4427_v37, %v4427_v37  ;;  %v4365_v37 = vld [vmem:[#allocation7 + $0x108] sm:$0xcc] }
0x1f0d   :  { %4240 = vadd.xlane.f32.xlu1 %v4239_v2  ;;  %v4444_v2 = vpack.c.b16 %v4428_v38, %v4428_v38  ;;  %v4756_v38 = vunpack.c.l.b16 %v4365_v37 }
0x1f0e   :  { %4237 = vadd.xlane.f32.xlu0 %v4236_v44  ;;  %v4445_v44 = vpack.c.b16 %v4429_v40, %v4429_v40  ;;  %v4757_v40 = vunpack.c.h.b16 %v4365_v37 }
0x1f22   :  { %4294 = vrot.lane.b32.xlu0 %v6968_v49, %s6471_s1 }
0x1f2a   :  { %4297 = vrot.lane.b32.xlu0 %v6980_v43, %s6471_s1 }
0x1f68   :  { %v4207_v3 = vpop.xlane.xlu1 %4206 }
0x1f69   :  { %v4204_v47 = vpop.xlane.xlu0 %4203  ;;  %6330 = vrcp.f32 %v4207_v3  ;;  %v4446_v3 = vpack.c.b16 %v4430_v41, %v4430_v41  ;;  %v4772_v41 = vpack.c.b16 %v4756_v38, %v4756_v38 }
0x1f6a   :  { %6332 = vrcp.f32 %v4204_v47  ;;  %v4471_v47 = vsel %vm481_vm7, %v4443_v4, 0 }
0x1f6b   :  { %4565 = vmatpush.bf16.msrb.mxu2 %v4471_v47  ;;  %v4788_v4 = vrot.slane %v4772_v41, 2 }
0x1f6f   :  { %v6331_v54 = vpop.eup %6330 }
0x1f70   :  { %v4213_v48 = vpop.xlane.xlu1 %4212  ;;  %v6333_v55 = vpop.eup %6332 }
0x1f71   :  { %v4210_v51 = vpop.xlane.xlu0 %4209  ;;  %6334 = vrcp.f32 %v4213_v48  ;;  %v4474_v48 = vsel %vm481_vm7, %v4444_v2, 0 }
0x1f72   :  { %6336 = vrcp.f32 %v4210_v51  ;;  %v4477_v51 = vsel %vm481_vm7, %v4445_v44, 0  ;;  %v4367_v44 = vld [vmem:[#allocation7 + $0x118] sm:$0xcc] }
0x1f73   :  { %4591 = vmatpush.bf16.msra.mxu0 %v4477_v51  ;;  %v4761_v47 = vunpack.c.h.b16 %v4367_v44 }
0x1f77   :  { %v6335_v59 = vpop.eup %6334 }
0x1f78   :  { %v4235_v56 = vpop.xlane.xlu1 %4234  ;;  %v6337_v49 = vpop.eup %6336 }
0x1f79   :  { %v4232_v53 = vpop.xlane.xlu0 %4231  ;;  %v4247_v57 = vmul.f32 %v6331_v54, %v4235_v56  ;;  %v4480_v56 = vsel %vm481_vm7, %v4446_v3, 0  ;;  %v4760_v3 = vunpack.c.l.b16 %v4367_v44  ;;  %v4370_v44 = vld [vmem:[#allocation7 + $0x130] sm:$0xcc] }
0x1f7a   :  { %v4246_v58 = vmul.f32 %v6333_v55, %v4232_v53 }
0x1f7b   :  { %v4255_v46 = vperm.slane %v4247_v57, %v6573_v0  ;;  %v4776_v51 = vpack.c.b16 %v4760_v3, %v4760_v3 }
0x1f7c   :  { %v4254_v28 = vperm.slane %v4246_v58, %v6573_v0 }
0x1f7e   :  { %v4258_v7 = vsel %vm272_vm3, %v4255_v46, %v4254_v28 }
0x1f80   :  { %v4241_v60 = vpop.xlane.xlu1 %4240 }
0x1f81   :  { %v4249_v61 = vmul.f32 %v6335_v59, %v4241_v60  ;;  %v4238_v62 = vpop.xlane.xlu0 %4237  ;;  %v4360_v59 = vld [vmem:[#allocation7 + $0x120] sm:$0x33] }
0x1f82   :  { %v4248_v63 = vmul.f32 %v6337_v49, %v4238_v62  ;;  %v4361_v49 = vld [vmem:[#allocation7 + $0x128] sm:$0x33]  ;;  %v4432_v62 = vunpack.c.h.b16 %v4360_v59 }
0x1f83   :  { %v4257_v1 = vperm.slane %v4249_v61, %v6573_v0  ;;  %v4431_v61 = vunpack.c.l.b16 %v4360_v59 }
0x1f84   :  { %v4256_v39 = vperm.slane %v4248_v63, %v6573_v0 }
0x1f86   :  { %v4259_v8 = vsel %vm274_vm4, %v4256_v39, %v4258_v7  ;;  %v4434_v39 = vunpack.c.h.b16 %v4361_v49 }
0x1f87   :  { %v4260_v10 = vsel %vm276_vm5, %v4257_v1, %v4259_v8  ;;  %v4433_v1 = vunpack.c.l.b16 %v4361_v49 }
0x1f88   :  { %4262 = vxpose.xlu1.b32.start.end [1/1] (short) (narrow) %v4260_v10, 8  ;;  %v4447_v10 = vpack.c.b16 %v4431_v61, %v4431_v61 }
0x1f94   :  { %v4295_v11 = vpop.permute.xlu0 %4294 }
0x1f95   :  { %6175 = vmatpush.msk.msra.mxu1 %vm83_vm0, %v4295_v11  ;;  %v4448_v11 = vpack.c.b16 %v4432_v62, %v4432_v62  ;;  %v4369_v62 = vld [vmem:[#allocation7 + $0x128] sm:$0xcc] }
0x1f97   :  { %4552 = vmatpush.bf16.msrb.mxu1 %v4468_v35  ;;  %v4755_v35 = vunpack.c.h.b16 %v4364_v33 }
0x1f99   :  { %v4771_v36 = vpack.c.b16 %v4755_v35, %v4755_v35 }
0x1f9c   :  { %v4298_v12 = vpop.permute.xlu0 %4297 }
0x1fe2   :  { %4348 = vrot.lane.b32.xlu1 %v6980_v43, %s6472_s21 }
0x202c   :  { %v4278_v27 = vpop.trf.xlu1 }
0x202d   :  { %6176 = vmatmul.msk.f32.vlgmr.msra.gmra.mxu1 %vm79_vm1, %v4278_v27 }
0x202e   :  { %4604 = vmatpush.bf16.msra.mxu1 %v4480_v56  ;;  %v4777_v56 = vpack.c.b16 %v4761_v47, %v4761_v47 }
0x2054   :  { %v4349_v46 = vpop.permute.xlu1 %4348 }
0x20aa   :  { %v4322_v13 = vpop.f32.mrf.mxu1 }
0x20ab   :  { %v4323_v14 = vadd.f32 %v4322_v13, %v4298_v12  ;;  %v4449_v12 = vpack.c.b16 %v4433_v1, %v4433_v1  ;;  %v4450_v13 = vpack.c.b16 %v4434_v39, %v4434_v39  ;;  %v4765_v1 = vunpack.c.h.b16 %v4369_v62 }
0x20ad   :  { %v4325_v15 = vadd.f32 %v4323_v14, %v6973_v42  ;;  %v4424_v42 = vunpack.c.h.b16 %v4356_v52 }
0x20af   :  { %v4326_v16 = vsel %vm79_vm1, %v4325_v15, 0.0  ;;  %v4440_v24 = vpack.c.b16 %v4424_v42, %v4424_v42 }
0x20b0   :  { %4327 = vadd.xlane.f32.xlu0 %v4326_v16  ;;  %v4486_v16 = vsel %vm481_vm7, %v4448_v11, 0 }
0x20b1   :  { %v4462_v29 = vsel %vm481_vm7, %v4440_v24, 0 }
0x20b2   :  { %4526 = vmatpush.bf16.msra.mxu3 %v4462_v29 }
0x20b6   :  { %4578 = vmatpush.bf16.msrb.mxu3 %v4474_v48  ;;  %v4366_v48 = vld [vmem:[#allocation7 + $0x110] sm:$0xcc] }
0x20c4   :  { %4818 = vrot.lane.b32.xlu0 %v6980_v43, %s6475_s23 }
0x2123   :  { %v4328_v17 = vpop.xlane.xlu0 %4327 }
0x2124   :  { %v4329_v19 = vmul.f32 %v4328_v17, %v6590_v45  ;;  %v4489_v17 = vsel %vm481_vm7, %v4449_v12, 0 }
0x2126   :  { %v4330_v20 = vsub.f32 %v4325_v15, %v4329_v19  ;;  %v4483_v15 = vsel %vm481_vm7, %v4447_v10, 0  ;;  %v4492_v19 = vsel %vm481_vm7, %v4450_v13, 0  ;;  %v4781_v13 = vpack.c.b16 %v4765_v1, %v4765_v1 }
0x2128   :  { %v4331_v21 = vmul.f32 %v4330_v20, %v4330_v20 }
0x212a   :  { %v4332_v22 = vsel %vm79_vm1, %v4331_v21, 0.0  ;;  %v4363_v21 = vld [vmem:[#allocation7 + $0x138] sm:$0x33] }
0x212b   :  { %4333 = vadd.xlane.f32.xlu2 %v4332_v22  ;;  %v4437_v9 = vunpack.c.l.b16 %v4363_v21  ;;  %v4438_v42 = vunpack.c.h.b16 %v4363_v21 }
0x212d   :  { %v4453_v25 = vpack.c.b16 %v4437_v9, %v4437_v9  ;;  %v4454_v26 = vpack.c.b16 %v4438_v42, %v4438_v42  ;;  %v4797_v9 = vrot.slane %v4781_v13, 2 }
0x212f   :  { %v4501_v31 = vsel %vm481_vm7, %v4453_v25, 0  ;;  %v4504_v32 = vsel %vm481_vm7, %v4454_v26, 0 }
0x2143   :  { %4352 = vrot.lane.b32.xlu2 %v6980_v43, %s6473_s22 }
0x219e   :  { %v4334_v6 = vpop.xlane.xlu2 %4333 }
0x219f   :  { %v4335_v5 = vmul.f32 %v4334_v6, %v6590_v45  ;;  %v4770_v6 = vpack.c.b16 %v4754_v34, %v4754_v34 }
0x21a1   :  { %v4336_v18 = vadd.f32 1e-05, %v4335_v5  ;;  %v4786_v23 = vrot.slane %v4770_v6, 2  ;;  %v4787_v5 = vrot.slane %v4771_v36, 2 }
0x21a3   :  { %6338 = vrsqrt.f32 %v4336_v18  ;;  %vm4343_vm15 = vweird.f32 %v4336_v18 }
0x21a6   :  { %v4353_v7 = vpop.permute.xlu2 %4352 }
0x21a9   :  { %v6339_v53 = vpop.eup %6338 }
0x21aa   :  { %v4338_v54 = vmul.f32 %v6339_v53, %v4336_v18  ;;  %vm4344_vm14 = vweird.f32 %v6339_v53  ;;  %v4773_v18 = vpack.c.b16 %v4757_v40, %v4757_v40 }
0x21ab   :  { %vm4345_vm6 = vmor %vm4343_vm15, %vm4344_vm14 }
0x21ac   :  { %v4339_v55 = vmul.f32 %v6339_v53, %v4338_v54  ;;  %v4789_v2 = vrot.slane %v4773_v18, 2  ;;  %v4759_v54 = vunpack.c.h.b16 %v4366_v48 }
0x21ae   :  { %v4340_v57 = vmul.f32 0.5, %v4339_v55  ;;  %v4792_v55 = vrot.slane %v4776_v51, 2  ;;  %v4775_v59 = vpack.c.b16 %v4759_v54, %v4759_v54  ;;  %v4766_v54 = vunpack.c.l.b16 %v4370_v44 }
0x21b0   :  { %v4341_v58 = vsub.f32 1.5, %v4340_v57  ;;  %v4793_v57 = vrot.slane %v4777_v56, 2  ;;  %v4791_v49 = vrot.slane %v4775_v59, 2 }
0x21b2   :  { %v4342_v60 = vmul.f32 %v6339_v53, %v4341_v58 }
0x21b4   :  { %v4346_v28 = vsel %vm4345_vm6, %v6339_v53, %v4342_v60  ;;  %v4758_v53 = vunpack.c.l.b16 %v4366_v48 }
0x21b5   :  { %v4347_v63 = vmul.f32 %v4346_v28, %v4330_v20  ;;  %v4362_v20 = vld [vmem:[#allocation7 + $0x130] sm:$0x33] }
0x21b6   :  { %v4435_v22 = vunpack.c.l.b16 %v4362_v20  ;;  %v4436_v52 = vunpack.c.h.b16 %v4362_v20  ;;  %v4774_v58 = vpack.c.b16 %v4758_v53, %v4758_v53  ;;  %v4375_v28 = vld [vmem:[#allocation5 + $0x4] ss:$8 sm:$0xf0] }
0x21b7   :  { %v4351_v8 = vmul.f32 %v4349_v46, %v4347_v63  ;;  %v4374_v46 = vld [vmem:[#allocation5 + $0x4] ss:$8 sm:$0xf]  ;;  %v4764_v63 = vunpack.c.l.b16 %v4369_v62 }
0x21b8   :  { %v4451_v50 = vpack.c.b16 %v4435_v22, %v4435_v22  ;;  %v4452_v24 = vpack.c.b16 %v4436_v52, %v4436_v52  ;;  %v4790_v60 = vrot.slane %v4774_v58, 2  ;;  %v7055_v61 = vor.u32 %v4375_v28, %v4374_v46 }
0x21b9   :  { %v7027_v27 = vadd.f32 %v4353_v7, %v4351_v8  ;;  %v4368_v8 = vld [vmem:[#allocation7 + $0x120] sm:$0xcc]  ;;  %v4780_v12 = vpack.c.b16 %v4764_v63, %v4764_v63 }
0x21ba   :  { %v4495_v29 = vsel %vm481_vm7, %v4451_v50, 0  ;;  %v4498_v30 = vsel %vm481_vm7, %v4452_v24, 0  ;;  %v4385_v39 = vperm.slane %v7055_v61, 2  ;;  %v4386_v7 = vperm.slane %v7055_v61, 3 }
0x21bb   :  { %v4372_v14 = vpack.c.bf16 %v7027_v27, %v7027_v27  ;;  %v4384_v20 = vperm.slane %v7055_v61, 1  ;;  %v4796_v52 = vrot.slane %v4780_v12, 2  ;;  %v4388_v58 = vperm.slane %v7055_v61, 5  ;;  %v4379_v12 = vld [vmem:[#allocation5 + $0x44] ss:$8 sm:$0xf0] }
0x21bd   :  { %6177 = vmatmul.msk.bf16.vlgmr.msra.gmra.mxu2 %vm79_vm1, %v4372_v14  ;;  %6178 = vmatmul.msk.bf16.vlgmr.msra.gmra.mxu3 %vm79_vm1, %v4372_v14 }
0x21be   :  { %6179 = vmatmul.msk.bf16.vlgmr.msrb.gmra.mxu0 %vm79_vm1, %v4372_v14  ;;  %6180 = vmatmul.msk.bf16.vlgmr.msrb.gmra.mxu1 %vm79_vm1, %v4372_v14 }
0x21bf   :  { %4617 = vmatpush.bf16.msra.mxu2 %v4483_v15  ;;  %4630 = vmatpush.bf16.msra.mxu3 %v4486_v16  ;;  %v4762_v16 = vunpack.c.l.b16 %v4368_v8 }
0x21c0   :  { %4643 = vmatpush.bf16.msrb.mxu0 %v4489_v17  ;;  %4656 = vmatpush.bf16.msrb.mxu1 %v4492_v19  ;;  %v4763_v17 = vunpack.c.h.b16 %v4368_v8  ;;  %v4383_v19 = vperm.slane %v7055_v61, 0 }
0x21c1   :  { %v4778_v26 = vpack.c.b16 %v4762_v16, %v4762_v16 }
0x21c3   :  { %v4794_v6 = vrot.slane %v4778_v26, 2 }
0x21cd   :  { %6181 = vmatmul.msk.bf16.vlgmr.msrb.gmra.mxu2 %vm79_vm1, %v4372_v14  ;;  %6182 = vmatmul.msk.bf16.vlgmr.msrb.gmra.mxu3 %vm79_vm1, %v4372_v14 }
0x21ce   :  { %6183 = vmatmul.msk.bf16.vlgmr.msra.gmra.mxu0 %vm79_vm1, %v4372_v14  ;;  %6184 = vmatmul.msk.bf16.vlgmr.msra.gmra.mxu1 %vm79_vm1, %v4372_v14 }
0x21cf   :  { %4669 = vmatpush.bf16.msrb.mxu2 %v4495_v29  ;;  %4682 = vmatpush.bf16.msrb.mxu3 %v4498_v30  ;;  %v4779_v29 = vpack.c.b16 %v4763_v17, %v4763_v17 }
0x21d0   :  { %4695 = vmatpush.bf16.msra.mxu0 %v4501_v31  ;;  %4708 = vmatpush.bf16.msra.mxu1 %v4504_v32 }
0x21d1   :  { %v4795_v36 = vrot.slane %v4779_v29, 2 }
0x21dd   :  { %6185 = vmatmul.msk.bf16.vlgmr.msra.gmra.mxu2 %vm79_vm1, %v4372_v14  ;;  %6186 = vmatmul.msk.bf16.vlgmr.msra.gmra.mxu3 %vm79_vm1, %v4372_v14 }
0x21de   :  { %6187 = vmatmul.msk.bf16.vlgmr.msrb.gmra.mxu0 %vm79_vm1, %v4372_v14  ;;  %6188 = vmatmul.msk.bf16.vlgmr.msrb.gmra.mxu1 %vm79_vm1, %v4372_v14 }
0x21df   :  { %4828 = vmatpush.bf16.xpose.msra.mxu2 %v4786_v23  ;;  %4841 = vmatpush.bf16.xpose.msra.mxu3 %v4787_v5  ;;  %v4371_v23 = vld [vmem:[#allocation7 + $0x138] sm:$0xcc] }
0x21e0   :  { %4854 = vmatpush.bf16.xpose.msrb.mxu0 %v4788_v4  ;;  %4867 = vmatpush.bf16.xpose.msrb.mxu1 %v4789_v2  ;;  %v4768_v38 = vunpack.c.l.b16 %v4371_v23  ;;  %v4769_v40 = vunpack.c.h.b16 %v4371_v23  ;;  %v4389_v4 = vperm.slane %v7055_v61, 6  ;;  %v4390_v2 = vperm.slane %v7055_v61, 7 }
0x21e2   :  { %v4784_v48 = vpack.c.b16 %v4768_v38, %v4768_v38  ;;  %v4785_v51 = vpack.c.b16 %v4769_v40, %v4769_v40 }
0x21e4   :  { %v4801_v46 = vrot.slane %v4785_v51, 2 }
0x21ed   :  { %6189 = vmatmul.msk.bf16.vlgmr.msrb.gmra.mxu2 %vm79_vm1, %v4372_v14  ;;  %6190 = vmatmul.msk.bf16.vlgmr.msrb.gmra.mxu3 %vm79_vm1, %v4372_v14 }
0x21ee   :  { %6191 = vmatmul.msk.bf16.vlgmr.msra.gmra.mxu0 %vm79_vm1, %v4372_v14  ;;  %6192 = vmatmul.msk.bf16.vlgmr.msra.gmra.mxu1 %vm79_vm1, %v4372_v14 }
0x21ef   :  { %4906 = vmatpush.bf16.xpose.msra.mxu0 %v4792_v55  ;;  %4919 = vmatpush.bf16.xpose.msra.mxu1 %v4793_v57  ;;  %v4767_v55 = vunpack.c.h.b16 %v4370_v44  ;;  %v4387_v57 = vperm.slane %v7055_v61, 4 }
0x21f0   :  { %4880 = vmatpush.bf16.xpose.msrb.mxu2 %v4790_v60  ;;  %4893 = vmatpush.bf16.xpose.msrb.mxu3 %v4791_v49  ;;  %v4800_v49 = vrot.slane %v4784_v48, 2 }
0x223b   :  { %v4541_v10 = vpop.f32.mrf.mxu0  ;;  %v4554_v11 = vpop.f32.mrf.mxu1 }
0x223c   :  { %v4542_v14 = vadd.f32 %v4541_v10, %v4385_v39  ;;  %v4555_v15 = vadd.f32 %v4554_v11, %v4386_v7  ;;  %v4782_v39 = vpack.c.b16 %v4766_v54, %v4766_v54  ;;  %v4783_v7 = vpack.c.b16 %v4767_v55, %v4767_v55  ;;  %v4378_v11 = vld [vmem:[#allocation5 + $0x44] ss:$8 sm:$0xf] }
0x223d   :  { %v4380_v16 = vor.u32 %v4379_v12, %v4378_v11 }
0x223e   :  { %v4716_v21 = vmax.f32 %v4542_v14, 0.0  ;;  %v4717_v22 = vmax.f32 %v4555_v15, 0.0  ;;  %v4798_v17 = vrot.slane %v4782_v39, 2 }
0x223f   :  { %v4391_v29 = vperm.slane %v4380_v16, 0  ;;  %v4397_v44 = vperm.slane %v4380_v16, 6  ;;  %v4396_v54 = vperm.slane %v4380_v16, 5 }
0x2240   :  { %v4732_v42 = vpack.c.bf16 %v4716_v21, %v4716_v21  ;;  %v4733_v50 = vpack.c.bf16 %v4717_v22, %v4717_v22  ;;  %v4515_v24 = vpop.f32.mrf.mxu2  ;;  %v4528_v25 = vpop.f32.mrf.mxu3 }
0x2241   :  { %v4516_v30 = vadd.f32 %v4515_v24, %v4383_v19  ;;  %v4529_v31 = vadd.f32 %v4528_v25, %v4384_v20  ;;  %v4799_v19 = vrot.slane %v4783_v7, 2 }
0x2242   :  { %4855 = vmatmul.bf16.vlgmr.msrb.gmra.mxu0 %v4732_v42  ;;  %4868 = vmatmul.bf16.vlgmr.msrb.gmra.mxu1 %v4733_v50  ;;  %v4394_v42 = vperm.slane %v4380_v16, 3 }
0x2243   :  { %v4714_v32 = vmax.f32 %v4516_v30, 0.0  ;;  %v4715_v33 = vmax.f32 %v4529_v31, 0.0  ;;  %v4543_v34 = vpop.f32.mrf.mxu0  ;;  %v4556_v35 = vpop.f32.mrf.mxu1  ;;  %4958 = vmatpush.bf16.xpose.msrb.mxu0 %v4796_v52  ;;  %4971 = vmatpush.bf16.xpose.msrb.mxu1 %v4797_v9  ;;  %v4393_v9 = vperm.slane %v4380_v16, 2  ;;  %v4392_v30 = vperm.slane %v4380_v16, 1 }
0x2245   :  { %v4730_v5 = vpack.c.bf16 %v4714_v32, %v4714_v32  ;;  %v4731_v37 = vpack.c.bf16 %v4715_v33, %v4715_v33 }
0x2247   :  { %4829 = vmatmul.bf16.vlgmr.msra.gmra.mxu2 %v4730_v5  ;;  %4842 = vmatmul.bf16.vlgmr.msra.gmra.mxu3 %v4731_v37 }
0x2248   :  { %v4517_v41 = vpop.f32.mrf.mxu2  ;;  %v4530_v18 = vpop.f32.mrf.mxu3  ;;  %4932 = vmatpush.bf16.xpose.msra.mxu2 %v4794_v6  ;;  %4945 = vmatpush.bf16.xpose.msra.mxu3 %v4795_v36 }
0x224b   :  { %v4593_v3 = vpop.f32.mrf.mxu0  ;;  %v4606_v47 = vpop.f32.mrf.mxu1 }
0x224c   :  { %v4594_v56 = vadd.f32 %v4593_v3, %v4389_v4  ;;  %v4607_v53 = vadd.f32 %v4606_v47, %v4390_v2  ;;  %v4398_v3 = vperm.slane %v4380_v16, 7 }
0x224e   :  { %v4720_v59 = vmax.f32 %v4594_v56, 0.0  ;;  %v4721_v60 = vmax.f32 %v4607_v53, 0.0  ;;  %v4395_v53 = vperm.slane %v4380_v16, 4 }
0x2250   :  { %v4736_v28 = vpack.c.bf16 %v4720_v59, %v4720_v59  ;;  %v4737_v62 = vpack.c.bf16 %v4721_v60, %v4721_v60  ;;  %v4567_v63 = vpop.f32.mrf.mxu2  ;;  %v4580_v1 = vpop.f32.mrf.mxu3 }
0x2251   :  { %v4568_v8 = vadd.f32 %v4567_v63, %v4387_v57  ;;  %v4581_v10 = vadd.f32 %v4580_v1, %v4388_v58 }
0x2252   :  { %4907 = vmatmul.bf16.vlgmr.msra.gmra.mxu0 %v4736_v28  ;;  %4920 = vmatmul.bf16.vlgmr.msra.gmra.mxu1 %v4737_v62 }
0x2253   :  { %v4718_v13 = vmax.f32 %v4568_v8, 0.0  ;;  %v4719_v14 = vmax.f32 %v4581_v10, 0.0  ;;  %v4595_v15 = vpop.f32.mrf.mxu0  ;;  %v4608_v61 = vpop.f32.mrf.mxu1  ;;  %5010 = vmatpush.bf16.xpose.msra.mxu0 %v4800_v49  ;;  %5023 = vmatpush.bf16.xpose.msra.mxu1 %v4801_v46 }
0x2255   :  { %v4734_v20 = vpack.c.bf16 %v4718_v13, %v4718_v13  ;;  %v4735_v21 = vpack.c.bf16 %v4719_v14, %v4719_v14 }
0x2257   :  { %4881 = vmatmul.bf16.vlgmr.msrb.gmra.mxu2 %v4734_v20  ;;  %4894 = vmatmul.bf16.vlgmr.msrb.gmra.mxu3 %v4735_v21 }
0x2258   :  { %v4569_v22 = vpop.f32.mrf.mxu2  ;;  %v4582_v52 = vpop.f32.mrf.mxu3  ;;  %4984 = vmatpush.bf16.xpose.msrb.mxu2 %v4798_v17  ;;  %4997 = vmatpush.bf16.xpose.msrb.mxu3 %v4799_v19 }
0x2259   :  { %v4819_v17 = vpop.permute.xlu0 %4818 }
0x225b   :  { %v4645_v50 = vpop.f32.mrf.mxu0  ;;  %v4658_v24 = vpop.f32.mrf.mxu1 }
0x225c   :  { %v4646_v25 = vadd.f32 %v4645_v50, %v4393_v9  ;;  %v4659_v26 = vadd.f32 %v4658_v24, %v4394_v42 }
0x225e   :  { %v4724_v31 = vmax.f32 %v4646_v25, 0.0  ;;  %v4725_v32 = vmax.f32 %v4659_v26, 0.0 }
0x2260   :  { %v4740_v33 = vpack.c.bf16 %v4724_v31, %v4724_v31  ;;  %v4741_v34 = vpack.c.bf16 %v4725_v32, %v4725_v32  ;;  %v4619_v35 = vpop.f32.mrf.mxu2  ;;  %v4632_v6 = vpop.f32.mrf.mxu3 }
0x2261   :  { %v4620_v36 = vadd.f32 %v4619_v35, %v4391_v29  ;;  %v4633_v23 = vadd.f32 %v4632_v6, %v4392_v30 }
0x2262   :  { %4959 = vmatmul.bf16.vlgmr.msrb.gmra.mxu0 %v4740_v33  ;;  %4972 = vmatmul.bf16.vlgmr.msrb.gmra.mxu1 %v4741_v34 }
0x2263   :  { %v4722_v5 = vmax.f32 %v4620_v36, 0.0  ;;  %v4723_v37 = vmax.f32 %v4633_v23, 0.0  ;;  %v4647_v38 = vpop.f32.mrf.mxu0  ;;  %v4660_v40 = vpop.f32.mrf.mxu1 }
0x2265   :  { %v4738_v41 = vpack.c.bf16 %v4722_v5, %v4722_v5  ;;  %v4739_v18 = vpack.c.bf16 %v4723_v37, %v4723_v37 }
0x2267   :  { %4933 = vmatmul.bf16.vlgmr.msra.gmra.mxu2 %v4738_v41  ;;  %4946 = vmatmul.bf16.vlgmr.msra.gmra.mxu3 %v4739_v18 }
0x2268   :  { %v4621_v4 = vpop.f32.mrf.mxu2  ;;  %v4634_v2 = vpop.f32.mrf.mxu3 }
0x226b   :  { %v4697_v47 = vpop.f32.mrf.mxu0  ;;  %v4710_v48 = vpop.f32.mrf.mxu1 }
0x226c   :  { %v4698_v51 = vadd.f32 %v4697_v47, %v4397_v44  ;;  %v4711_v56 = vadd.f32 %v4710_v48, %v4398_v3 }
0x226e   :  { %v4728_v55 = vmax.f32 %v4698_v51, 0.0  ;;  %v4729_v57 = vmax.f32 %v4711_v56, 0.0 }
0x2270   :  { %v4744_v58 = vpack.c.bf16 %v4728_v55, %v4728_v55  ;;  %v4745_v59 = vpack.c.bf16 %v4729_v57, %v4729_v57  ;;  %v4671_v60 = vpop.f32.mrf.mxu2  ;;  %v4684_v49 = vpop.f32.mrf.mxu3 }
0x2271   :  { %v4672_v46 = vadd.f32 %v4671_v60, %v4395_v53  ;;  %v4685_v28 = vadd.f32 %v4684_v49, %v4396_v54 }
0x2272   :  { %5011 = vmatmul.bf16.vlgmr.msra.gmra.mxu0 %v4744_v58  ;;  %5024 = vmatmul.bf16.vlgmr.msra.gmra.mxu1 %v4745_v59 }
0x2273   :  { %v4726_v62 = vmax.f32 %v4672_v46, 0.0  ;;  %v4727_v63 = vmax.f32 %v4685_v28, 0.0  ;;  %v4699_v1 = vpop.f32.mrf.mxu0  ;;  %v4712_v39 = vpop.f32.mrf.mxu1 }
0x2275   :  { %v4742_v7 = vpack.c.bf16 %v4726_v62, %v4726_v62  ;;  %v4743_v8 = vpack.c.bf16 %v4727_v63, %v4727_v63 }
0x2277   :  { %4985 = vmatmul.bf16.vlgmr.msrb.gmra.mxu2 %v4742_v7  ;;  %4998 = vmatmul.bf16.vlgmr.msrb.gmra.mxu3 %v4743_v8  ;;  %v7073_v7 = vld [vmem:[#allocation2 + $0x14] sm:$0xf] }
0x2278   :  { %v4673_v10 = vpop.f32.mrf.mxu2  ;;  %v4686_v11 = vpop.f32.mrf.mxu3  ;;  %6193 = vmatpush.msk.msra.mxu2 %vm83_vm0, %v7073_v7 }
0x22bf   :  { %v4856_v12 = vpop.f32.mrf.mxu0  ;;  %v4869_v13 = vpop.f32.mrf.mxu1 }
0x22c7   :  { %v4858_v14 = vpop.f32.mrf.mxu0  ;;  %v4871_v15 = vpop.f32.mrf.mxu1 }
0x22ca   :  { %v4830_v61 = vpop.f32.mrf.mxu2  ;;  %v4843_v16 = vpop.f32.mrf.mxu3 }
0x22cb   :  { %v4831_v21 = vadd.f32 %v4830_v61, %v4819_v17 }
0x22cd   :  { %v4844_v9 = vadd.f32 %v4843_v16, %v4831_v21 }
0x22cf   :  { %v4908_v19 = vpop.f32.mrf.mxu0  ;;  %v4921_v20 = vpop.f32.mrf.mxu1  ;;  %v4857_v24 = vadd.f32 %v4856_v12, %v4844_v9 }
0x22d1   :  { %v4870_v29 = vadd.f32 %v4869_v13, %v4857_v24 }
0x22d2   :  { %v4832_v22 = vpop.f32.mrf.mxu2  ;;  %v4845_v52 = vpop.f32.mrf.mxu3 }
0x22d3   :  { %v7085_v22 = vld [vmem:[%s7192_s3 + $0x5] ss:$0 sm:$0xff] }
0x22d7   :  { %v4910_v42 = vpop.f32.mrf.mxu0  ;;  %v4923_v50 = vpop.f32.mrf.mxu1 }
0x22da   :  { %v4882_v25 = vpop.f32.mrf.mxu2  ;;  %v4895_v26 = vpop.f32.mrf.mxu3 }
0x22db   :  { %v4883_v30 = vadd.f32 %v4882_v25, %v4870_v29 }
0x22dd   :  { %v4896_v35 = vadd.f32 %v4895_v26, %v4883_v30 }
0x22df   :  { %v4960_v31 = vpop.f32.mrf.mxu0  ;;  %v4973_v32 = vpop.f32.mrf.mxu1  ;;  %v4909_v6 = vadd.f32 %v4908_v19, %v4896_v35 }
0x22e1   :  { %v4922_v38 = vadd.f32 %v4921_v20, %v4909_v6 }
0x22e2   :  { %v4884_v33 = vpop.f32.mrf.mxu2  ;;  %v4897_v34 = vpop.f32.mrf.mxu3 }
0x22e7   :  { %v4962_v36 = vpop.f32.mrf.mxu0  ;;  %v4975_v23 = vpop.f32.mrf.mxu1 }
0x22ea   :  { %v4934_v5 = vpop.f32.mrf.mxu2  ;;  %v4947_v37 = vpop.f32.mrf.mxu3 }
0x22eb   :  { %v4935_v40 = vadd.f32 %v4934_v5, %v4922_v38 }
0x22ed   :  { %v4948_v4 = vadd.f32 %v4947_v37, %v4935_v40 }
0x22ef   :  { %v5012_v41 = vpop.f32.mrf.mxu0  ;;  %v5025_v18 = vpop.f32.mrf.mxu1  ;;  %v4961_v3 = vadd.f32 %v4960_v31, %v4948_v4 }
0x22f1   :  { %v4974_v51 = vadd.f32 %v4973_v32, %v4961_v3 }
0x22f2   :  { %v4936_v2 = vpop.f32.mrf.mxu2  ;;  %v4949_v44 = vpop.f32.mrf.mxu3 }
0x22f7   :  { %v5014_v47 = vpop.f32.mrf.mxu0  ;;  %v5027_v48 = vpop.f32.mrf.mxu1 }
0x22fa   :  { %v4986_v56 = vpop.f32.mrf.mxu2  ;;  %v4999_v53 = vpop.f32.mrf.mxu3 }
0x22fb   :  { %v4987_v54 = vadd.f32 %v4986_v56, %v4974_v51 }
0x22fd   :  { %v5000_v55 = vadd.f32 %v4999_v53, %v4987_v54 }
0x22ff   :  { %v5013_v57 = vadd.f32 %v5012_v41, %v5000_v55 }
0x2301   :  { %v5026_v58 = vadd.f32 %v5025_v18, %v5013_v57 }
0x2302   :  { %v4988_v59 = vpop.f32.mrf.mxu2  ;;  %v5001_v60 = vpop.f32.mrf.mxu3 }
0x2303   :  { %v5029_v49 = vadd.f32 %v5026_v58, %v7027_v27 }
0x2305   :  { %v5030_v46 = vsel %vm79_vm1, %v5029_v49, 0.0 }
0x2306   :  { %5031 = vadd.xlane.f32.xlu0 %v5030_v46 }
0x231a   :  { %5052 = vrot.lane.b32.xlu0 %v6980_v43, %s6476_s24 }
0x2379   :  { %v5032_v28 = vpop.xlane.xlu0 %5031 }
0x237a   :  { %v5033_v62 = vmul.f32 %v5032_v28, %v6590_v45 }
0x237c   :  { %v5034_v63 = vsub.f32 %v5029_v49, %v5033_v62 }
0x237e   :  { %v5035_v1 = vmul.f32 %v5034_v63, %v5034_v63 }
0x2380   :  { %v5036_v39 = vsel %vm79_vm1, %v5035_v1, 0.0 }
0x2381   :  { %5037 = vadd.xlane.f32.xlu2 %v5036_v39 }
0x238c   :  { %v5053_v16 = vpop.permute.xlu0 %5052 }
0x2399   :  { %5056 = vrot.lane.b32.xlu2 %v6980_v43, %s6477_s27 }
0x23f4   :  { %v5038_v27 = vpop.xlane.xlu2 %5037 }
0x23f5   :  { %v5039_v8 = vmul.f32 %v5038_v27, %v6590_v45 }
0x23f7   :  { %v5040_v10 = vadd.f32 1e-05, %v5039_v8 }
0x23f9   :  { %6340 = vrsqrt.f32 %v5040_v10  ;;  %vm5047_vm9 = vweird.f32 %v5040_v10 }
0x23fc   :  { %v5057_v19 = vpop.permute.xlu2 %5056 }
0x23ff   :  { %v6341_v11 = vpop.eup %6340 }
0x2400   :  { %v5042_v12 = vmul.f32 %v6341_v11, %v5040_v10  ;;  %vm5048_vm8 = vweird.f32 %v6341_v11 }
0x2401   :  { %vm5049_vm10 = vmor %vm5047_vm9, %vm5048_vm8 }
0x2402   :  { %v5043_v13 = vmul.f32 %v6341_v11, %v5042_v12 }
0x2404   :  { %v5044_v14 = vmul.f32 0.5, %v5043_v13 }
0x2406   :  { %v5045_v15 = vsub.f32 1.5, %v5044_v14 }
0x2408   :  { %v5046_v61 = vmul.f32 %v6341_v11, %v5045_v15 }
0x240a   :  { %v5050_v43 = vsel %vm5049_vm10, %v6341_v11, %v5046_v61 }
0x240b   :  { %v5051_v17 = vmul.f32 %v5050_v43, %v5034_v63 }
0x240d   :  { %v5055_v20 = vmul.f32 %v5053_v16, %v5051_v17 }
0x240f   :  { %v7078_v21 = vadd.f32 %v5057_v19, %v5055_v20 }
0x2411   :  { %6194 = vmatmul.msk.f32.vlgmr.msra.gmra.mxu2 %vm79_vm1, %v7078_v21 }
0x2494   :  { %v5087_v52 = vpop.f32.mrf.mxu2 }
0x2495   :  { %v5088_v9 = vadd.f32 %v7085_v22, %v5087_v52 }
0x2497   :  { %5090 = vxpose.xlu0.b32.start.end [1/1] (short) (narrow) %v5088_v9, 16 }
0x253b   :  { %v5106_v42 = vpop.trf.xlu0 }
0x253c   :  { %5151 = vst [vmem:[#allocation1] sm:$0xff] %v5106_v42  ;;  %v5129_v50 = vperm.slane %v5106_v42, 1  ;;  %v5122_v24 = vperm.slane %v5106_v42, 0  ;;  %v5143_v25 = vperm.slane %v5106_v42, 3  ;;  %v5136_v26 = vperm.slane %v5106_v42, 2 }
0x253e   :  { %5134 = vperm.xlu2 %6233, %v5129_v50   ;;  %5127 = vperm.xlu1 %6232, %v5122_v24  }
0x2543   :  { %v5155_v29 = vld [vmem:[#allocation1 + $0x5] ss:$9 sm:$0xff]  ;;  %v5159_v23 = vld [vmem:[#allocation1 + $0x7] ss:$9 sm:$0xff]  ;;  %v5107_v54 = vpop.trf.xlu0 }
0x2544   :  { %v5161_v30 = vperm.slane %v5155_v29, 0  ;;  %v5153_v34 = vld [vmem:[#allocation1 + $0x4] ss:$9 sm:$0xff]  ;;  %v5157_v38 = vld [vmem:[#allocation1 + $0x6] ss:$9 sm:$0xff]  ;;  %v5163_v40 = vperm.slane %v5159_v23, 0 }
0x2545   :  { %v5160_v35 = vperm.slane %v5153_v34, 0  ;;  %v5162_v18 = vperm.slane %v5157_v38, 0  ;;  %v5209_v39 = vrot.slane %v5107_v54, 1  ;;  %v5212_v13 = vperm.slane %v5107_v54, 0 }
0x2546   :  { %5148 = vperm.xlu2 %6233, %v5143_v25   ;;  %5141 = vperm.xlu1 %6232, %v5136_v26   ;;  %v5211_v61 = vrot.slane %v5107_v54, 3  ;;  %v5210_v43 = vrot.slane %v5107_v54, 2 }
0x2547   :  { %v5213_v11 = vperm.slane %v5209_v39, 0 }
0x2548   :  { %v5215_v19 = vperm.slane %v5211_v61, 0  ;;  %v5214_v20 = vperm.slane %v5210_v43, 0 }
0x2598   :  { %v5135_v31 = vpop.permute.xlu2 %5134 }
0x2599   :  { %v5169_v32 = vmul.f32 %v5161_v30, %v5135_v31 }
0x259b   :  { %v5175_v33 = vsel %vm189_vm2, %v5169_v32, -inf }
0x259c   :  { %5176 = vmax.xlane.f32.xlu2 %v5175_v33 }
0x25a0   :  { %v5149_v37 = vpop.permute.xlu2 %5148 }
0x25a1   :  { %v5171_v41 = vmul.f32 %v5163_v40, %v5149_v37 }
0x25a3   :  { %v5181_v44 = vsel %vm189_vm2, %v5171_v41, -inf }
0x25b0   :  { %v5128_v6 = vpop.permute.xlu1 %5127 }
0x25b1   :  { %v5168_v36 = vmul.f32 %v5160_v35, %v5128_v6 }
0x25b3   :  { %v5172_v5 = vsel %vm189_vm2, %v5168_v36, -inf }
0x25b4   :  { %5173 = vmax.xlane.f32.xlu1 %v5172_v5 }
0x25b8   :  { %v5142_v4 = vpop.permute.xlu1 %5141 }
0x25b9   :  { %v5170_v2 = vmul.f32 %v5162_v18, %v5142_v4 }
0x25bb   :  { %v5178_v3 = vsel %vm189_vm2, %v5170_v2, -inf }
0x25bc   :  { %5182 = vmax.xlane.f32.xlu1 %v5181_v44  ;;  %5179 = vmax.xlane.f32.xlu0 %v5178_v3 }
0x260f   :  { %v5177_v47 = vpop.xlane.xlu2 %5176 }
0x2610   :  { %v5185_v48 = vsub.f32 %v5169_v32, %v5177_v47 }
0x2612   :  { %v5190_v51 = vmul.f32 1.442695, %v5185_v48 }
0x2614   :  { %6342 = vpow2.f32 %v5190_v51 }
0x261a   :  { %v6343_v56 = vpop.eup %6342 }
0x261b   :  { %v5199_v53 = vsel %vm189_vm2, %v6343_v56, 0.0  ;;  %v5221_v14 = vmul.f32 %v6343_v56, %v5213_v11 }
0x261c   :  { %5200 = vadd.xlane.f32.xlu1 %v5199_v53 }
0x261d   :  { %v5227_v16 = vsel %vm189_vm2, %v5221_v14, 0.0  ;;  %v5353_v14 = vld [vmem:[#allocation7 + $0x158] sm:$0x33] }
0x261e   :  { %v5423_v43 = vunpack.c.l.b16 %v5353_v14 }
0x2627   :  { %v5174_v55 = vpop.xlane.xlu1 %5173 }
0x2628   :  { %v5184_v57 = vsub.f32 %v5168_v36, %v5174_v55 }
0x262a   :  { %v5188_v58 = vmul.f32 1.442695, %v5184_v57 }
0x262c   :  { %6344 = vpow2.f32 %v5188_v58 }
0x262f   :  { %v5183_v59 = vpop.xlane.xlu1 %5182  ;;  %v5180_v60 = vpop.xlane.xlu0 %5179 }
0x2630   :  { %v5187_v49 = vsub.f32 %v5171_v41, %v5183_v59  ;;  %v5186_v46 = vsub.f32 %v5170_v2, %v5180_v60  ;;  %v5350_v60 = vld [vmem:[#allocation7 + $0x140] sm:$0x33] }
0x2631   :  { %v5418_v39 = vunpack.c.h.b16 %v5350_v60 }
0x2632   :  { %v6345_v28 = vpop.eup %6344  ;;  %v5194_v62 = vmul.f32 1.442695, %v5187_v49  ;;  %v5192_v63 = vmul.f32 1.442695, %v5186_v46  ;;  %v5351_v49 = vld [vmem:[#allocation7 + $0x148] sm:$0x33] }
0x2633   :  { %v5196_v1 = vsel %vm189_vm2, %v6345_v28, 0.0  ;;  %v5220_v15 = vmul.f32 %v6345_v28, %v5212_v13  ;;  %v5419_v46 = vunpack.c.l.b16 %v5351_v49 }
0x2634   :  { %6346 = vpow2.f32 %v5194_v62  ;;  %5197 = vadd.xlane.f32.xlu2 %v5196_v1 }
0x2635   :  { %6348 = vpow2.f32 %v5192_v63  ;;  %v5224_v17 = vsel %vm189_vm2, %v5220_v15, 0.0  ;;  %v5435_v62 = vpack.c.b16 %v5419_v46, %v5419_v46  ;;  %v5352_v15 = vld [vmem:[#allocation7 + $0x150] sm:$0x33] }
0x2637   :  { %v5459_v1 = vsel %vm481_vm7, %v5435_v62, 0 }
0x2638   :  { %5533 = vmatpush.bf16.msrb.mxu2 %v5459_v1 }
0x263a   :  { %v6347_v27 = vpop.eup %6346 }
0x263b   :  { %v6349_v8 = vpop.eup %6348  ;;  %v5205_v10 = vsel %vm189_vm2, %v6347_v27, 0.0  ;;  %v5223_v52 = vmul.f32 %v6347_v27, %v5215_v19  ;;  %v5420_v27 = vunpack.c.h.b16 %v5351_v49  ;;  %v5422_v19 = vunpack.c.h.b16 %v5352_v15 }
0x263c   :  { %5206 = vadd.xlane.f32.xlu1 %v5205_v10  ;;  %v5202_v12 = vsel %vm189_vm2, %v6349_v8, 0.0  ;;  %v5222_v9 = vmul.f32 %v6349_v8, %v5214_v20  ;;  %v5434_v8 = vpack.c.b16 %v5418_v39, %v5418_v39 }
0x263d   :  { %5203 = vadd.xlane.f32.xlu2 %v5202_v12  ;;  %v5233_v42 = vsel %vm189_vm2, %v5223_v52, 0.0  ;;  %v5436_v10 = vpack.c.b16 %v5420_v27, %v5420_v27  ;;  %v5439_v52 = vpack.c.b16 %v5423_v43, %v5423_v43 }
0x263e   :  { %v5230_v50 = vsel %vm189_vm2, %v5222_v9, 0.0  ;;  %v5456_v11 = vsel %vm481_vm7, %v5434_v8, 0  ;;  %v5359_v8 = vld [vmem:[#allocation7 + $0x148] sm:$0xcc] }
0x263f   :  { %v5462_v12 = vsel %vm481_vm7, %v5436_v10, 0  ;;  %5520 = vmatpush.bf16.msrb.mxu1 %v5456_v11  ;;  %v5358_v10 = vld [vmem:[#allocation7 + $0x140] sm:$0xcc]  ;;  %v5750_v11 = vunpack.c.l.b16 %v5359_v8 }
0x2644   :  { %5228 = vadd.xlane.f32.xlu1 %v5227_v16  ;;  %v5424_v16 = vunpack.c.h.b16 %v5353_v14  ;;  %v5766_v14 = vpack.c.b16 %v5750_v11, %v5750_v11  ;;  %v5364_v11 = vld [vmem:[#allocation7 + $0x170] sm:$0xcc] }
0x2645   :  { %5225 = vadd.xlane.f32.xlu2 %v5224_v17  ;;  %v5421_v17 = vunpack.c.l.b16 %v5352_v15 }
0x2646   :  { %v5440_v9 = vpack.c.b16 %v5424_v16, %v5424_v16  ;;  %v5782_v43 = vrot.slane %v5766_v14, 2 }
0x264c   :  { %5234 = vadd.xlane.f32.xlu1 %v5233_v42  ;;  %v5437_v42 = vpack.c.b16 %v5421_v17, %v5421_v17 }
0x264d   :  { %5231 = vadd.xlane.f32.xlu2 %v5230_v50  ;;  %v5438_v50 = vpack.c.b16 %v5422_v19, %v5422_v19  ;;  %v5749_v19 = vunpack.c.h.b16 %v5358_v10 }
0x2665   :  { %5288 = vrot.lane.b32.xlu2 %v7073_v7, %s6471_s1 }
0x266d   :  { %5291 = vrot.lane.b32.xlu2 %v7085_v22, %s6471_s1 }
0x268f   :  { %v5201_v24 = vpop.xlane.xlu1 %5200 }
0x2690   :  { %6350 = vrcp.f32 %v5201_v24  ;;  %v5471_v24 = vsel %vm481_vm7, %v5439_v52, 0 }
0x2691   :  { %5585 = vmatpush.bf16.msra.mxu2 %v5471_v24 }
0x2696   :  { %v6351_v32 = vpop.eup %6350 }
0x26a7   :  { %v5198_v25 = vpop.xlane.xlu2 %5197 }
0x26a8   :  { %6352 = vrcp.f32 %v5198_v25  ;;  %v5474_v25 = vsel %vm481_vm7, %v5440_v9, 0  ;;  %v5360_v9 = vld [vmem:[#allocation7 + $0x150] sm:$0xcc] }
0x26ae   :  { %v6353_v33 = vpop.eup %6352 }
0x26af   :  { %v5207_v26 = vpop.xlane.xlu1 %5206 }
0x26b0   :  { %v5204_v29 = vpop.xlane.xlu2 %5203  ;;  %6354 = vrcp.f32 %v5207_v26  ;;  %v5465_v26 = vsel %vm481_vm7, %v5437_v42, 0  ;;  %v5752_v42 = vunpack.c.l.b16 %v5360_v9 }
0x26b1   :  { %6356 = vrcp.f32 %v5204_v29  ;;  %v5468_v29 = vsel %vm481_vm7, %v5438_v50, 0  ;;  %v5753_v50 = vunpack.c.h.b16 %v5360_v9 }
0x26b2   :  { %5572 = vmatpush.bf16.msra.mxu1 %v5468_v29  ;;  %v5768_v24 = vpack.c.b16 %v5752_v42, %v5752_v42  ;;  %v5365_v42 = vld [vmem:[#allocation7 + $0x178] sm:$0xcc] }
0x26b6   :  { %v6355_v6 = vpop.eup %6354 }
0x26b7   :  { %v5229_v30 = vpop.xlane.xlu1 %5228  ;;  %v6357_v7 = vpop.eup %6356 }
0x26b8   :  { %v5226_v31 = vpop.xlane.xlu2 %5225  ;;  %v5241_v34 = vmul.f32 %v6351_v32, %v5229_v30 }
0x26b9   :  { %v5240_v35 = vmul.f32 %v6353_v33, %v5226_v31 }
0x26ba   :  { %v5249_v23 = vperm.slane %v5241_v34, %v6573_v0 }
0x26bb   :  { %v5248_v5 = vperm.slane %v5240_v35, %v6573_v0  ;;  %v5355_v35 = vld [vmem:[#allocation7 + $0x168] sm:$0x33] }
0x26bd   :  { %v5252_v4 = vsel %vm272_vm3, %v5249_v23, %v5248_v5  ;;  %v5427_v5 = vunpack.c.l.b16 %v5355_v35 }
0x26bf   :  { %v5235_v36 = vpop.xlane.xlu1 %5234 }
0x26c0   :  { %v5243_v37 = vmul.f32 %v6355_v6, %v5235_v36  ;;  %v5232_v38 = vpop.xlane.xlu2 %5231  ;;  %v5354_v36 = vld [vmem:[#allocation7 + $0x160] sm:$0x33] }
0x26c1   :  { %v5242_v40 = vmul.f32 %v6357_v7, %v5232_v38 }
0x26c2   :  { %v5251_v41 = vperm.slane %v5243_v37, %v6573_v0  ;;  %v5428_v37 = vunpack.c.h.b16 %v5355_v35 }
0x26c3   :  { %v5250_v18 = vperm.slane %v5242_v40, %v6573_v0  ;;  %v5425_v40 = vunpack.c.l.b16 %v5354_v36 }
0x26c5   :  { %v5253_v2 = vsel %vm274_vm4, %v5250_v18, %v5252_v4 }
0x26c6   :  { %v5254_v44 = vsel %vm276_vm5, %v5251_v41, %v5253_v2  ;;  %v5426_v41 = vunpack.c.h.b16 %v5354_v36  ;;  %v5443_v2 = vpack.c.b16 %v5427_v5, %v5427_v5  ;;  %v5368_v36 = vld [vmem:[#allocation5 + $0x5] ss:$8 sm:$0xf]  ;;  %v5362_v5 = vld [vmem:[#allocation7 + $0x160] sm:$0xcc] }
0x26c7   :  { %5256 = vxpose.xlu1.b32.start.end [1/1] (short) (narrow) %v5254_v44, 8  ;;  %v5444_v44 = vpack.c.b16 %v5428_v37, %v5428_v37  ;;  %v5756_v37 = vunpack.c.l.b16 %v5362_v5 }
0x26c8   :  { %v5289_v3 = vpop.permute.xlu2 %5288 }
0x26c9   :  { %6195 = vmatpush.msk.msra.mxu3 %vm83_vm0, %v5289_v3 }
0x26cb   :  { %5546 = vmatpush.bf16.msrb.mxu3 %v5462_v12  ;;  %v5748_v12 = vunpack.c.l.b16 %v5358_v10 }
0x26cd   :  { %v5764_v15 = vpack.c.b16 %v5748_v12, %v5748_v12 }
0x26cf   :  { %v5780_v16 = vrot.slane %v5764_v15, 2 }
0x26d0   :  { %v5292_v48 = vpop.permute.xlu2 %5291 }
0x2721   :  { %5342 = vrot.lane.b32.xlu1 %v7085_v22, %s6472_s21 }
0x276b   :  { %v5272_v47 = vpop.trf.xlu1 }
0x276c   :  { %6196 = vmatmul.msk.f32.vlgmr.msra.gmra.mxu3 %vm79_vm1, %v5272_v47  ;;  %v5441_v47 = vpack.c.b16 %v5425_v40, %v5425_v40 }
0x276d   :  { %5598 = vmatpush.bf16.msra.mxu3 %v5474_v25  ;;  %v5769_v25 = vpack.c.b16 %v5753_v50, %v5753_v50 }
0x2793   :  { %v5343_v7 = vpop.permute.xlu1 %5342 }
0x27ef   :  { %v5316_v51 = vpop.f32.mrf.mxu3 }
0x27f0   :  { %v5317_v56 = vadd.f32 %v5316_v51, %v5292_v48  ;;  %v5442_v48 = vpack.c.b16 %v5426_v41, %v5426_v41 }
0x27f2   :  { %v5319_v0 = vadd.f32 %v5317_v56, %v7078_v21  ;;  %v5417_v21 = vunpack.c.l.b16 %v5350_v60  ;;  %v5483_v56 = vsel %vm481_vm7, %v5443_v2, 0  ;;  %v5363_v2 = vld [vmem:[#allocation7 + $0x168] sm:$0xcc] }
0x27f4   :  { %v5320_v53 = vsel %vm79_vm1, %v5319_v0, 0.0  ;;  %v5433_v28 = vpack.c.b16 %v5417_v21, %v5417_v21 }
0x27f5   :  { %5321 = vadd.xlane.f32.xlu2 %v5320_v53  ;;  %v5477_v53 = vsel %vm481_vm7, %v5441_v47, 0 }
0x27f6   :  { %v5453_v63 = vsel %vm481_vm7, %v5433_v28, 0 }
0x27f7   :  { %5507 = vmatpush.bf16.msrb.mxu0 %v5453_v63 }
0x27fb   :  { %5559 = vmatpush.bf16.msra.mxu0 %v5465_v26  ;;  %v5361_v26 = vld [vmem:[#allocation7 + $0x158] sm:$0xcc] }
0x27fc   :  { %v5754_v29 = vunpack.c.l.b16 %v5361_v26 }
0x280d   :  { %5812 = vrot.lane.b32.xlu2 %v7085_v22, %s6475_s23 }
0x2868   :  { %v5322_v54 = vpop.xlane.xlu2 %5321 }
0x2869   :  { %v5323_v55 = vmul.f32 %v5322_v54, %v6590_v45  ;;  %v5480_v54 = vsel %vm481_vm7, %v5442_v48, 0 }
0x286b   :  { %v5324_v57 = vsub.f32 %v5319_v0, %v5323_v55  ;;  %v5486_v0 = vsel %vm481_vm7, %v5444_v44, 0  ;;  %v5357_v55 = vld [vmem:[#allocation7 + $0x178] sm:$0x33]  ;;  %v5772_v44 = vpack.c.b16 %v5756_v37, %v5756_v37 }
0x286c   :  { %v5373_v37 = vld [vmem:[#allocation5 + $0x45] ss:$8 sm:$0xf0] }
0x286d   :  { %v5325_v58 = vmul.f32 %v5324_v57, %v5324_v57 }
0x286f   :  { %v5326_v59 = vsel %vm79_vm1, %v5325_v58, 0.0  ;;  %v5431_v58 = vunpack.c.l.b16 %v5357_v55 }
0x2870   :  { %5327 = vadd.xlane.f32.xlu0 %v5326_v59  ;;  %v5432_v59 = vunpack.c.h.b16 %v5357_v55 }
0x2871   :  { %v5447_v21 = vpack.c.b16 %v5431_v58, %v5431_v58  ;;  %v5788_v58 = vrot.slane %v5772_v44, 2 }
0x2872   :  { %v5448_v46 = vpack.c.b16 %v5432_v59, %v5432_v59 }
0x2873   :  { %v5495_v63 = vsel %vm481_vm7, %v5447_v21, 0 }
0x2874   :  { %v5498_v1 = vsel %vm481_vm7, %v5448_v46, 0 }
0x2884   :  { %5346 = vrot.lane.b32.xlu0 %v7085_v22, %s6473_s22 }
0x28e3   :  { %v5328_v13 = vpop.xlane.xlu0 %5327 }
0x28e4   :  { %v5329_v61 = vmul.f32 %v5328_v13, %v6590_v45  ;;  %v5751_v13 = vunpack.c.h.b16 %v5359_v8 }
0x28e6   :  { %v5330_v20 = vadd.f32 1e-05, %v5329_v61  ;;  %v5767_v61 = vpack.c.b16 %v5751_v13, %v5751_v13 }
0x28e8   :  { %6358 = vrsqrt.f32 %v5330_v20  ;;  %vm5337_vm2 = vweird.f32 %v5330_v20  ;;  %v5783_v17 = vrot.slane %v5767_v61, 2  ;;  %v5760_v61 = vunpack.c.l.b16 %v5364_v11 }
0x28ea   :  { %v5776_v50 = vpack.c.b16 %v5760_v61, %v5760_v61 }
0x28ee   :  { %v6359_v30 = vpop.eup %6358 }
0x28ef   :  { %v5332_v31 = vmul.f32 %v6359_v30, %v5330_v20  ;;  %vm5338_vm0 = vweird.f32 %v6359_v30  ;;  %v5765_v20 = vpack.c.b16 %v5749_v19, %v5749_v19 }
0x28f0   :  { %vm5339_vm3 = vmor %vm5337_vm2, %vm5338_vm0 }
0x28f1   :  { %v5333_v32 = vmul.f32 %v6359_v30, %v5332_v31  ;;  %v5781_v52 = vrot.slane %v5765_v20, 2  ;;  %v5755_v31 = vunpack.c.h.b16 %v5361_v26 }
0x28f3   :  { %v5334_v33 = vmul.f32 0.5, %v5333_v32  ;;  %v5785_v32 = vrot.slane %v5769_v25, 2 }
0x28f5   :  { %v5335_v34 = vsub.f32 1.5, %v5334_v33  ;;  %v5770_v33 = vpack.c.b16 %v5754_v29, %v5754_v29 }
0x28f6   :  { %v5347_v18 = vpop.permute.xlu0 %5346 }
0x28f7   :  { %v5336_v6 = vmul.f32 %v6359_v30, %v5335_v34  ;;  %v5771_v34 = vpack.c.b16 %v5755_v31, %v5755_v31  ;;  %v5786_v35 = vrot.slane %v5770_v33, 2  ;;  %v5762_v31 = vunpack.c.l.b16 %v5365_v42 }
0x28f9   :  { %v5340_v23 = vsel %vm5339_vm3, %v6359_v30, %v5336_v6  ;;  %v5784_v30 = vrot.slane %v5768_v24, 2  ;;  %v5787_v6 = vrot.slane %v5771_v34, 2 }
0x28fa   :  { %v5341_v38 = vmul.f32 %v5340_v23, %v5324_v57  ;;  %v5356_v57 = vld [vmem:[#allocation7 + $0x170] sm:$0x33] }
0x28fb   :  { %v5429_v60 = vunpack.c.l.b16 %v5356_v57  ;;  %v5430_v49 = vunpack.c.h.b16 %v5356_v57 }
0x28fc   :  { %v5345_v4 = vmul.f32 %v5343_v7, %v5341_v38  ;;  %v5369_v7 = vld [vmem:[#allocation5 + $0x5] ss:$8 sm:$0xf0]  ;;  %v5757_v38 = vunpack.c.h.b16 %v5362_v5 }
0x28fd   :  { %v5445_v28 = vpack.c.b16 %v5429_v60, %v5429_v60  ;;  %v5446_v62 = vpack.c.b16 %v5430_v49, %v5430_v49  ;;  %v7160_v23 = vor.u32 %v5369_v7, %v5368_v36  ;;  %v5372_v5 = vld [vmem:[#allocation5 + $0x45] ss:$8 sm:$0xf] }
0x28fe   :  { %v7132_v3 = vadd.f32 %v5347_v18, %v5345_v4  ;;  %v5773_v47 = vpack.c.b16 %v5757_v38, %v5757_v38 }
0x28ff   :  { %v5489_v39 = vsel %vm481_vm7, %v5445_v28, 0  ;;  %v5492_v27 = vsel %vm481_vm7, %v5446_v62, 0  ;;  %v5377_v40 = vperm.slane %v7160_v23, 0  ;;  %v5378_v41 = vperm.slane %v7160_v23, 1 }
0x2900   :  { %v5366_v51 = vpack.c.bf16 %v7132_v3, %v7132_v3  ;;  %v5379_v55 = vperm.slane %v7160_v23, 2  ;;  %v5380_v57 = vperm.slane %v7160_v23, 3  ;;  %v5789_v59 = vrot.slane %v5773_v47, 2 }
0x2901   :  { %v5383_v33 = vperm.slane %v7160_v23, 6  ;;  %v5384_v34 = vperm.slane %v7160_v23, 7 }
0x2902   :  { %6197 = vmatmul.msk.bf16.vlgmr.msrb.gmra.mxu0 %vm79_vm1, %v5366_v51  ;;  %6198 = vmatmul.msk.bf16.vlgmr.msrb.gmra.mxu1 %vm79_vm1, %v5366_v51 }
0x2903   :  { %6199 = vmatmul.msk.bf16.vlgmr.msrb.gmra.mxu2 %vm79_vm1, %v5366_v51  ;;  %6200 = vmatmul.msk.bf16.vlgmr.msrb.gmra.mxu3 %vm79_vm1, %v5366_v51 }
0x2904   :  { %5637 = vmatpush.bf16.msrb.mxu2 %v5483_v56  ;;  %5650 = vmatpush.bf16.msrb.mxu3 %v5486_v0 }
0x2905   :  { %5611 = vmatpush.bf16.msrb.mxu0 %v5477_v53  ;;  %5624 = vmatpush.bf16.msrb.mxu1 %v5480_v54  ;;  %v5758_v53 = vunpack.c.l.b16 %v5363_v2  ;;  %v5759_v54 = vunpack.c.h.b16 %v5363_v2 }
0x2907   :  { %v5774_v28 = vpack.c.b16 %v5758_v53, %v5758_v53  ;;  %v5775_v62 = vpack.c.b16 %v5759_v54, %v5759_v54 }
0x2909   :  { %v5790_v12 = vrot.slane %v5774_v28, 2  ;;  %v5791_v13 = vrot.slane %v5775_v62, 2 }
0x2912   :  { %6201 = vmatmul.msk.bf16.vlgmr.msra.gmra.mxu0 %vm79_vm1, %v5366_v51  ;;  %6202 = vmatmul.msk.bf16.vlgmr.msra.gmra.mxu1 %vm79_vm1, %v5366_v51 }
0x2913   :  { %6203 = vmatmul.msk.bf16.vlgmr.msra.gmra.mxu2 %vm79_vm1, %v5366_v51  ;;  %6204 = vmatmul.msk.bf16.vlgmr.msra.gmra.mxu3 %vm79_vm1, %v5366_v51 }
0x2914   :  { %5689 = vmatpush.bf16.msra.mxu2 %v5495_v63  ;;  %5702 = vmatpush.bf16.msra.mxu3 %v5498_v1 }
0x2915   :  { %5663 = vmatpush.bf16.msra.mxu0 %v5489_v39  ;;  %5676 = vmatpush.bf16.msra.mxu1 %v5492_v27 }
0x2922   :  { %6205 = vmatmul.msk.bf16.vlgmr.msrb.gmra.mxu0 %vm79_vm1, %v5366_v51  ;;  %6206 = vmatmul.msk.bf16.vlgmr.msrb.gmra.mxu1 %vm79_vm1, %v5366_v51 }
0x2923   :  { %6207 = vmatmul.msk.bf16.vlgmr.msrb.gmra.mxu2 %vm79_vm1, %v5366_v51  ;;  %6208 = vmatmul.msk.bf16.vlgmr.msrb.gmra.mxu3 %vm79_vm1, %v5366_v51 }
0x2924   :  { %5848 = vmatpush.bf16.xpose.msrb.mxu2 %v5782_v43  ;;  %5822 = vmatpush.bf16.xpose.msrb.mxu0 %v5780_v16  ;;  %v5761_v43 = vunpack.c.h.b16 %v5364_v11  ;;  %v5381_v16 = vperm.slane %v7160_v23, 4 }
0x2925   :  { %5861 = vmatpush.bf16.xpose.msrb.mxu3 %v5783_v17  ;;  %5835 = vmatpush.bf16.xpose.msrb.mxu1 %v5781_v52  ;;  %v5382_v17 = vperm.slane %v7160_v23, 5 }
0x2926   :  { %v5777_v24 = vpack.c.b16 %v5761_v43, %v5761_v43 }
0x2932   :  { %6209 = vmatmul.msk.bf16.vlgmr.msra.gmra.mxu0 %vm79_vm1, %v5366_v51  ;;  %6210 = vmatmul.msk.bf16.vlgmr.msra.gmra.mxu1 %vm79_vm1, %v5366_v51 }
0x2933   :  { %6211 = vmatmul.msk.bf16.vlgmr.msra.gmra.mxu2 %vm79_vm1, %v5366_v51  ;;  %6212 = vmatmul.msk.bf16.vlgmr.msra.gmra.mxu3 %vm79_vm1, %v5366_v51 }
0x2934   :  { %5874 = vmatpush.bf16.xpose.msra.mxu0 %v5784_v30  ;;  %5887 = vmatpush.bf16.xpose.msra.mxu1 %v5785_v32  ;;  %v5763_v32 = vunpack.c.h.b16 %v5365_v42 }
0x2935   :  { %5900 = vmatpush.bf16.xpose.msra.mxu2 %v5786_v35  ;;  %5913 = vmatpush.bf16.xpose.msra.mxu3 %v5787_v6  ;;  %v5792_v35 = vrot.slane %v5776_v50, 2  ;;  %v5793_v6 = vrot.slane %v5777_v24, 2 }
0x297f   :  { %v5509_v18 = vpop.f32.mrf.mxu0  ;;  %v5522_v4 = vpop.f32.mrf.mxu1 }
0x2980   :  { %v5510_v48 = vadd.f32 %v5509_v18, %v5377_v40  ;;  %v5523_v51 = vadd.f32 %v5522_v4, %v5378_v41  ;;  %v5778_v41 = vpack.c.b16 %v5762_v31, %v5762_v31  ;;  %v5779_v18 = vpack.c.b16 %v5763_v32, %v5763_v32 }
0x2982   :  { %v5708_v56 = vmax.f32 %v5510_v48, 0.0  ;;  %v5709_v0 = vmax.f32 %v5523_v51, 0.0  ;;  %v5374_v48 = vor.u32 %v5373_v37, %v5372_v5 }
0x2984   :  { %v5724_v60 = vpack.c.bf16 %v5708_v56, %v5708_v56  ;;  %v5725_v49 = vpack.c.bf16 %v5709_v0, %v5709_v0  ;;  %v5794_v56 = vrot.slane %v5778_v41, 2  ;;  %v5795_v0 = vrot.slane %v5779_v18, 2 }
0x2986   :  { %v5535_v21 = vpop.f32.mrf.mxu2  ;;  %v5548_v46 = vpop.f32.mrf.mxu3  ;;  %5823 = vmatmul.bf16.vlgmr.msrb.gmra.mxu0 %v5724_v60  ;;  %5836 = vmatmul.bf16.vlgmr.msrb.gmra.mxu1 %v5725_v49 }
0x2987   :  { %v5536_v63 = vadd.f32 %v5535_v21, %v5379_v55  ;;  %v5549_v1 = vadd.f32 %v5548_v46, %v5380_v57  ;;  %v5511_v39 = vpop.f32.mrf.mxu0  ;;  %v5524_v27 = vpop.f32.mrf.mxu1  ;;  %5926 = vmatpush.bf16.xpose.msrb.mxu0 %v5788_v58  ;;  %5939 = vmatpush.bf16.xpose.msrb.mxu1 %v5789_v59  ;;  %v5385_v55 = vperm.slane %v5374_v48, 0  ;;  %v5386_v57 = vperm.slane %v5374_v48, 1 }
0x2989   :  { %v5710_v8 = vmax.f32 %v5536_v63, 0.0  ;;  %v5711_v10 = vmax.f32 %v5549_v1, 0.0  ;;  %v5387_v63 = vperm.slane %v5374_v48, 2  ;;  %v5388_v1 = vperm.slane %v5374_v48, 3 }
0x298b   :  { %v5726_v14 = vpack.c.bf16 %v5710_v8, %v5710_v8  ;;  %v5727_v15 = vpack.c.bf16 %v5711_v10, %v5711_v10 }
0x298d   :  { %5849 = vmatmul.bf16.vlgmr.msrb.gmra.mxu2 %v5726_v14  ;;  %5862 = vmatmul.bf16.vlgmr.msrb.gmra.mxu3 %v5727_v15 }
0x298e   :  { %v5537_v19 = vpop.f32.mrf.mxu2  ;;  %v5550_v20 = vpop.f32.mrf.mxu3  ;;  %5952 = vmatpush.bf16.xpose.msrb.mxu2 %v5790_v12  ;;  %5965 = vmatpush.bf16.xpose.msrb.mxu3 %v5791_v13 }
0x298f   :  { %v5561_v52 = vpop.f32.mrf.mxu0  ;;  %v5574_v9 = vpop.f32.mrf.mxu1  ;;  %v5390_v19 = vperm.slane %v5374_v48, 5 }
0x2990   :  { %v5562_v25 = vadd.f32 %v5561_v52, %v5381_v16  ;;  %v5575_v26 = vadd.f32 %v5574_v9, %v5382_v17  ;;  %v5389_v17 = vperm.slane %v5374_v48, 4 }
0x2992   :  { %v5712_v29 = vmax.f32 %v5562_v25, 0.0  ;;  %v5713_v30 = vmax.f32 %v5575_v26, 0.0 }
0x2994   :  { %v5728_v36 = vpack.c.bf16 %v5712_v29, %v5712_v29  ;;  %v5729_v7 = vpack.c.bf16 %v5713_v30, %v5713_v30  ;;  %v5391_v29 = vperm.slane %v5374_v48, 6  ;;  %v5392_v30 = vperm.slane %v5374_v48, 7  ;;  %v5813_v48 = vpop.permute.xlu2 %5812 }
0x2996   :  { %v5587_v38 = vpop.f32.mrf.mxu2  ;;  %v5600_v40 = vpop.f32.mrf.mxu3  ;;  %5875 = vmatmul.bf16.vlgmr.msra.gmra.mxu0 %v5728_v36  ;;  %5888 = vmatmul.bf16.vlgmr.msra.gmra.mxu1 %v5729_v7 }
0x2997   :  { %v5588_v4 = vadd.f32 %v5587_v38, %v5383_v33  ;;  %v5601_v2 = vadd.f32 %v5600_v40, %v5384_v34  ;;  %v5563_v44 = vpop.f32.mrf.mxu0  ;;  %v5576_v47 = vpop.f32.mrf.mxu1  ;;  %5978 = vmatpush.bf16.xpose.msra.mxu0 %v5792_v35  ;;  %5991 = vmatpush.bf16.xpose.msra.mxu1 %v5793_v6 }
0x2999   :  { %v5714_v23 = vmax.f32 %v5588_v4, 0.0  ;;  %v5715_v51 = vmax.f32 %v5601_v2, 0.0 }
0x299b   :  { %v5730_v53 = vpack.c.bf16 %v5714_v23, %v5714_v23  ;;  %v5731_v54 = vpack.c.bf16 %v5715_v51, %v5715_v51 }
0x299d   :  { %5901 = vmatmul.bf16.vlgmr.msra.gmra.mxu2 %v5730_v53  ;;  %5914 = vmatmul.bf16.vlgmr.msra.gmra.mxu3 %v5731_v54 }
0x299e   :  { %v5589_v58 = vpop.f32.mrf.mxu2  ;;  %v5602_v59 = vpop.f32.mrf.mxu3  ;;  %6004 = vmatpush.bf16.xpose.msra.mxu2 %v5794_v56  ;;  %6017 = vmatpush.bf16.xpose.msra.mxu3 %v5795_v0 }
0x299f   :  { %v5613_v60 = vpop.f32.mrf.mxu0  ;;  %v5626_v49 = vpop.f32.mrf.mxu1 }
0x29a0   :  { %v5614_v21 = vadd.f32 %v5613_v60, %v5385_v55  ;;  %v5627_v46 = vadd.f32 %v5626_v49, %v5386_v57 }
0x29a2   :  { %v5716_v28 = vmax.f32 %v5614_v21, 0.0  ;;  %v5717_v62 = vmax.f32 %v5627_v46, 0.0 }
0x29a4   :  { %v5732_v39 = vpack.c.bf16 %v5716_v28, %v5716_v28  ;;  %v5733_v27 = vpack.c.bf16 %v5717_v62, %v5717_v62 }
0x29a6   :  { %v5639_v8 = vpop.f32.mrf.mxu2  ;;  %v5652_v10 = vpop.f32.mrf.mxu3  ;;  %5927 = vmatmul.bf16.vlgmr.msrb.gmra.mxu0 %v5732_v39  ;;  %5940 = vmatmul.bf16.vlgmr.msrb.gmra.mxu1 %v5733_v27 }
0x29a7   :  { %v5640_v11 = vadd.f32 %v5639_v8, %v5387_v63  ;;  %v5653_v12 = vadd.f32 %v5652_v10, %v5388_v1  ;;  %v5615_v13 = vpop.f32.mrf.mxu0  ;;  %v5628_v14 = vpop.f32.mrf.mxu1 }
0x29a9   :  { %v5718_v15 = vmax.f32 %v5640_v11, 0.0  ;;  %v5719_v61 = vmax.f32 %v5653_v12, 0.0 }
0x29ab   :  { %v5734_v43 = vpack.c.bf16 %v5718_v15, %v5718_v15  ;;  %v5735_v16 = vpack.c.bf16 %v5719_v61, %v5719_v61 }
0x29ad   :  { %5953 = vmatmul.bf16.vlgmr.msrb.gmra.mxu2 %v5734_v43  ;;  %5966 = vmatmul.bf16.vlgmr.msrb.gmra.mxu3 %v5735_v16 }
0x29ae   :  { %v5641_v20 = vpop.f32.mrf.mxu2  ;;  %v5654_v52 = vpop.f32.mrf.mxu3 }
0x29af   :  { %v5665_v9 = vpop.f32.mrf.mxu0  ;;  %v5678_v42 = vpop.f32.mrf.mxu1 }
0x29b0   :  { %v5666_v50 = vadd.f32 %v5665_v9, %v5389_v17  ;;  %v5679_v24 = vadd.f32 %v5678_v42, %v5390_v19 }
0x29b2   :  { %v5720_v25 = vmax.f32 %v5666_v50, 0.0  ;;  %v5721_v26 = vmax.f32 %v5679_v24, 0.0 }
0x29b4   :  { %v5736_v31 = vpack.c.bf16 %v5720_v25, %v5720_v25  ;;  %v5737_v32 = vpack.c.bf16 %v5721_v26, %v5721_v26 }
0x29b6   :  { %v5691_v33 = vpop.f32.mrf.mxu2  ;;  %v5704_v34 = vpop.f32.mrf.mxu3  ;;  %5979 = vmatmul.bf16.vlgmr.msra.gmra.mxu0 %v5736_v31  ;;  %5992 = vmatmul.bf16.vlgmr.msra.gmra.mxu1 %v5737_v32 }
0x29b7   :  { %v5692_v35 = vadd.f32 %v5691_v33, %v5391_v29  ;;  %v5705_v6 = vadd.f32 %v5704_v34, %v5392_v30  ;;  %v5667_v36 = vpop.f32.mrf.mxu0  ;;  %v5680_v7 = vpop.f32.mrf.mxu1 }
0x29b9   :  { %v5722_v5 = vmax.f32 %v5692_v35, 0.0  ;;  %v5723_v37 = vmax.f32 %v5705_v6, 0.0 }
0x29bb   :  { %v5738_v38 = vpack.c.bf16 %v5722_v5, %v5722_v5  ;;  %v5739_v40 = vpack.c.bf16 %v5723_v37, %v5723_v37 }
0x29bd   :  { %6005 = vmatmul.bf16.vlgmr.msra.gmra.mxu2 %v5738_v38  ;;  %6018 = vmatmul.bf16.vlgmr.msra.gmra.mxu3 %v5739_v40 }
0x29be   :  { %v5693_v41 = vpop.f32.mrf.mxu2  ;;  %v5706_v18 = vpop.f32.mrf.mxu3 }
0x2a03   :  { %v5824_v4 = vpop.f32.mrf.mxu0  ;;  %v5837_v2 = vpop.f32.mrf.mxu1 }
0x2a04   :  { %v5825_v56 = vadd.f32 %v5824_v4, %v5813_v48 }
0x2a06   :  { %v5838_v54 = vadd.f32 %v5837_v2, %v5825_v56 }
0x2a0b   :  { %v5826_v44 = vpop.f32.mrf.mxu0  ;;  %v5839_v47 = vpop.f32.mrf.mxu1 }
0x2a10   :  { %v5850_v23 = vpop.f32.mrf.mxu2  ;;  %v5863_v51 = vpop.f32.mrf.mxu3 }
0x2a11   :  { %v5851_v55 = vadd.f32 %v5850_v23, %v5838_v54 }
0x2a13   :  { %v5876_v0 = vpop.f32.mrf.mxu0  ;;  %v5889_v53 = vpop.f32.mrf.mxu1  ;;  %v5864_v59 = vadd.f32 %v5863_v51, %v5851_v55 }
0x2a15   :  { %v5877_v21 = vadd.f32 %v5876_v0, %v5864_v59 }
0x2a17   :  { %v5890_v62 = vadd.f32 %v5889_v53, %v5877_v21  ;;  %v6067_v21 = vld [vmem:[%s7195_s6] sm:$0x1] }
0x2a18   :  { %v5852_v57 = vpop.f32.mrf.mxu2  ;;  %v5865_v58 = vpop.f32.mrf.mxu3 }
0x2a1b   :  { %v5878_v60 = vpop.f32.mrf.mxu0  ;;  %v5891_v49 = vpop.f32.mrf.mxu1 }
0x2a20   :  { %v5902_v46 = vpop.f32.mrf.mxu2  ;;  %v5915_v28 = vpop.f32.mrf.mxu3 }
0x2a21   :  { %v5903_v39 = vadd.f32 %v5902_v46, %v5890_v62 }
0x2a23   :  { %v5928_v63 = vpop.f32.mrf.mxu0  ;;  %v5941_v1 = vpop.f32.mrf.mxu1  ;;  %v5916_v10 = vadd.f32 %v5915_v28, %v5903_v39 }
0x2a25   :  { %v5929_v13 = vadd.f32 %v5928_v63, %v5916_v10 }
0x2a27   :  { %v5942_v61 = vadd.f32 %v5941_v1, %v5929_v13 }
0x2a28   :  { %v5904_v27 = vpop.f32.mrf.mxu2  ;;  %v5917_v8 = vpop.f32.mrf.mxu3 }
0x2a2b   :  { %v5930_v11 = vpop.f32.mrf.mxu0  ;;  %v5943_v12 = vpop.f32.mrf.mxu1 }
0x2a30   :  { %v5954_v14 = vpop.f32.mrf.mxu2  ;;  %v5967_v15 = vpop.f32.mrf.mxu3 }
0x2a31   :  { %v5955_v43 = vadd.f32 %v5954_v14, %v5942_v61 }
0x2a33   :  { %v5980_v16 = vpop.f32.mrf.mxu0  ;;  %v5993_v17 = vpop.f32.mrf.mxu1  ;;  %v5968_v19 = vadd.f32 %v5967_v15, %v5955_v43 }
0x2a35   :  { %v5981_v9 = vadd.f32 %v5980_v16, %v5968_v19 }
0x2a37   :  { %v5994_v24 = vadd.f32 %v5993_v17, %v5981_v9 }
0x2a38   :  { %v5956_v20 = vpop.f32.mrf.mxu2  ;;  %v5969_v52 = vpop.f32.mrf.mxu3 }
0x2a3b   :  { %v5982_v42 = vpop.f32.mrf.mxu0  ;;  %v5995_v50 = vpop.f32.mrf.mxu1 }
0x2a40   :  { %v6006_v25 = vpop.f32.mrf.mxu2  ;;  %v6019_v26 = vpop.f32.mrf.mxu3 }
0x2a41   :  { %v6007_v29 = vadd.f32 %v6006_v25, %v5994_v24 }
0x2a43   :  { %v6020_v30 = vadd.f32 %v6019_v26, %v6007_v29 }
0x2a45   :  { %v6023_v31 = vadd.f32 %v6020_v30, %v7132_v3 }
0x2a47   :  { %v6024_v32 = vsel %vm79_vm1, %v6023_v31, 0.0 }
0x2a48   :  { %v6008_v33 = vpop.f32.mrf.mxu2  ;;  %v6021_v34 = vpop.f32.mrf.mxu3  ;;  %6025 = vadd.xlane.f32.xlu0 %v6024_v32 }
0x2a5c   :  { %6046 = vrot.lane.b32.xlu0 %v7085_v22, %s6476_s24 }
0x2abb   :  { %v6026_v35 = vpop.xlane.xlu0 %6025 }
0x2abc   :  { %v6027_v6 = vmul.f32 %v6026_v35, %v6590_v45 }
0x2abe   :  { %v6028_v36 = vsub.f32 %v6023_v31, %v6027_v6 }
0x2ac0   :  { %v6029_v7 = vmul.f32 %v6028_v36, %v6028_v36 }
0x2ac2   :  { %v6030_v5 = vsel %vm79_vm1, %v6029_v7, 0.0 }
0x2ac3   :  { %6031 = vadd.xlane.f32.xlu2 %v6030_v5 }
0x2ace   :  { %v6047_v48 = vpop.permute.xlu0 %6046 }
0x2adb   :  { %6050 = vrot.lane.b32.xlu2 %v7085_v22, %s6477_s27 }
0x2b36   :  { %v6032_v3 = vpop.xlane.xlu2 %6031 }
0x2b37   :  { %v6033_v37 = vmul.f32 %v6032_v3, %v6590_v45  ;;  %v6054_v45 = vld [vmem:[%s7195_s6] sm:$0xff] }
0x2b39   :  { %v6034_v38 = vadd.f32 1e-05, %v6033_v37 }
0x2b3b   :  { %6360 = vrsqrt.f32 %v6034_v38  ;;  %vm6041_vm5 = vweird.f32 %v6034_v38 }
0x2b3e   :  { %v6051_v51 = vpop.permute.xlu2 %6050 }
0x2b41   :  { %v6361_v40 = vpop.eup %6360 }
0x2b42   :  { %v6036_v41 = vmul.f32 %v6361_v40, %v6034_v38  ;;  %vm6042_vm4 = vweird.f32 %v6361_v40 }
0x2b43   :  { %vm6043_vm7 = vmor %vm6041_vm5, %vm6042_vm4 }
0x2b44   :  { %v6037_v18 = vmul.f32 %v6361_v40, %v6036_v41 }
0x2b46   :  { %v6038_v4 = vmul.f32 0.5, %v6037_v18 }
0x2b48   :  { %v6039_v2 = vsub.f32 1.5, %v6038_v4 }
0x2b4a   :  { %v6040_v44 = vmul.f32 %v6361_v40, %v6039_v2 }
0x2b4c   :  { %v6044_v47 = vsel %vm6043_vm7, %v6361_v40, %v6040_v44 }
0x2b4d   :  { %v6045_v23 = vmul.f32 %v6044_v47, %v6028_v36 }
0x2b4f   :  { %v6049_v56 = vmul.f32 %v6047_v48, %v6045_v23 }
0x2b51   :  { %v6053_v22 = vadd.f32 %v6051_v51, %v6049_v56 }
0x2b53   :  { %v6055_v0 = vmul.f32 %v6054_v45, %v6053_v22 }
0x2b55   :  { %v6056_v53 = vsel %vm79_vm1, %v6055_v0, 0.0  ;;  %vm6073_vm1 = vcmask 0  }
0x2b56   :  { %6057 = vadd.xlane.f32.xlu0 %v6056_v53 }
0x2bc9   :  { %v6058_v54 = vpop.xlane.xlu0 %6057 }
0x2bca   :  { %v6059_v55 = vrot.slane %v6058_v54, 4 }
0x2bcc   :  { %v6060_v57 = vadd.f32 %v6059_v55, %v6058_v54 }
0x2bce   :  { %v6061_v58 = vrot.slane %v6060_v57, 2 }
0x2bd0   :  { %v6062_v59 = vadd.f32 %v6061_v58, %v6060_v57 }
0x2bd2   :  { %v6063_v60 = vrot.slane %v6062_v59, 1 }
0x2bd4   :  { %v6064_v49 = vadd.f32 %v6063_v60, %v6062_v59 }
0x2bd6   :  { %6213 = vpush %v6064_v49 }
0x2c07   :  { %s6214_s17 = spop %6213 }
0x2c08   :  { %v6066_v46 = vstv %s6214_s17 }
0x2c09   :  { %v6068_v28 = vadd.f32 %v6067_v21, %v6066_v46 }
0x2c0b   :  { %6070 = vrot.lane.b32.xlu1 %v6068_v28, %s6478_s2 }
0x2c7d   :  { %v6071_v62 = vpop.permute.xlu1 %6070 }
0x2c7e   :  { %6074 = vst.msk [vmem:[#allocation8] sm:$0x1] %vm6073_vm1, %v6071_v62 }
0x2c7f   :  { %6085 = dma.vmem_to_hbm [thread:$0]  %s6081_s19, 16, %s6083_s0, [#allocation4]  }
0x2c80   :  { %6463 = dma.done.wait [#allocation4], 16  }
0x2c81   :  { %6464 = vsyncadd [#allocation4], 4294967280 }
0x2c82   :  { %6090 = vsyncpa [#allocation3], 1 }
0x2c83   :  { %6091 = vsyncpa [#allocation6], 1 }
0x2c84   :  { %6092 = vsyncpa [#allocation4], 1 }

</bundles_post_ra>
